<compile_context>
chip_gen: v7x
topology: tpu7x:2x2x1
jax: 0.10.0
libtpu: 0.0.40
codegen_flags: <defaults>
</compile_context>

<pallas_src>
import functools

import jax
import jax.numpy as jnp
import numpy as np
from jax import lax
from jax.experimental import pallas as pl
from jax.experimental.pallas import tpu as pltpu

K_SIZE = 3
PAD = 1        # stride=(1,1), dilation=(1,1) for the default padding=1
EPS = 1e-5     # PyTorch BatchNorm2d default eps


def _conv_tile(x_ref, w_ref, patch_ref, row_block, tile_h):
    """Bias-free 3x3 conv of one haloed row block as a single K=9*Cin MXU matmul.

    x_ref:     (1, H+2, W+2, Cin) bf16  -- whole padded image, VMEM resident
    w_ref:     (9*Cin, Cpad) bf16
    patch_ref: (TM, 9*Cin) bf16 VMEM scratch (im2col patch)
    returns    (TM, Cpad) f32, TM = tile_h * W
    """
    _, hp2, wp2, cin = x_ref.shape
    wsp = wp2 - 2 * PAD
    tm = tile_h * wsp
    row0 = pl.multiple_of(row_block * tile_h, tile_h)
    xr = x_ref[0, pl.ds(row0, tile_h + 2 * PAD), :, :]          # (TH+2, W+2, Cin)
    for tap in range(K_SIZE * K_SIZE):
        dy, dx = divmod(tap, K_SIZE)
        piece = xr[dy:dy + tile_h, dx:dx + wsp, :].reshape(tm, cin)
        patch_ref[:, tap * cin:(tap + 1) * cin] = piece
    return jnp.dot(patch_ref[...], w_ref[...], preferred_element_type=jnp.float32)


def _stats_kernel(x_ref, w_ref, stats_ref, patch_ref, *, tile_h):
    # Pass 1: per-image partial sums / sums-of-squares of the bias-free conv.
    # Resident (1, 2, Cpad) accumulator across the row-block ("arbitrary") axis;
    # the batch axis is "parallel" so v7x's two TensorCores split the sweep.
    i = pl.program_id(1)

    @pl.when(i == 0)
    def _():
        stats_ref[...] = jnp.zeros_like(stats_ref)

    conv = _conv_tile(x_ref, w_ref, patch_ref, i, tile_h)       # (TM, Cpad) f32
    s = jnp.sum(conv, axis=0, keepdims=True)
    sq = jnp.sum(conv * conv, axis=0, keepdims=True)
    stats_ref[0] += jnp.concatenate([s, sq], axis=0)            # (2, Cpad)


def _apply_kernel(x_ref, w_ref, params_ref, o_ref, patch_ref, *, tile_h, cout):
    # Pass 2: recompute the cheap conv tile, apply folded BN affine + ReLU,
    # store the exact-size (no channel padding) bf16 tile.
    i = pl.program_id(1)
    conv = _conv_tile(x_ref, w_ref, patch_ref, i, tile_h)       # (TM, Cpad) f32
    scale = params_ref[0:1, :]
    shift = params_ref[1:2, :]
    y = jnp.maximum(conv * scale + shift, 0.0)                  # (TM, Cpad) f32
    o_ref[0] = y[:, :cout].astype(o_ref.dtype)                  # (TM, Cout) bf16


def _pick_tile_h(h, wsp, target_tm=1024):
    # Largest divisor of H with tile_h*W <= target; keep the output block
    # sublane-aligned (TM % 8 == 0) unless the block is the full image.
    cands = [t for t in range(1, h + 1) if h % t == 0 and t * wsp <= target_tm]
    aligned = [t for t in cands if (t * wsp) % 8 == 0 or t == h]
    return max(aligned) if aligned else h


def _vmem_limit_bytes():
    # v5e/v6e: 128 MiB physical VMEM; v7x: 64 MiB per TensorCore.
    try:
        cap = getattr(pltpu.get_tpu_info(), "vmem_capacity_bytes", 64 * 1024 * 1024)
    except Exception:
        cap = 64 * 1024 * 1024
    return max(32 * 1024 * 1024, min(100 * 1024 * 1024, int(cap) * 3 // 4))


def cbr_forward(x_nchw, w_hwio, bias, gamma, beta, *, target_tm=1024):
    n, cin, h, wsp = x_nchw.shape
    kh, kw, wcin, cout = w_hwio.shape
    assert (kh, kw) == (K_SIZE, K_SIZE) and wcin == cin
    # BatchNorm2d in the module is sized for in_planes but applied to out_planes.
    assert cin == cout, "CBR module is only valid when in_planes == out_planes"

    tile_h = _pick_tile_h(h, wsp, target_tm)
    nb = h // tile_h
    tm = tile_h * wsp
    m = n * h * wsp
    cpad = ((cout + 127) // 128) * 128              # MXU N dim / BN lane width
    kdim = K_SIZE * K_SIZE * cin

    # NHWC, spatial zero-pad, bf16 for the MXU stream (no halo duplication).
    x_nhwc = jnp.transpose(x_nchw, (0, 2, 3, 1)).astype(jnp.bfloat16)
    xp = jnp.pad(x_nhwc, ((0, 0), (PAD, PAD), (PAD, PAD), (0, 0)))

    # Weights (3,3,Cin,Cout) -> one fused (9*Cin, Cpad) bf16 matmul operand.
    w_flat = w_hwio.reshape(kdim, cout)
    w_pad = (jnp.zeros((kdim, cpad), jnp.float32)
             .at[:, :cout].set(w_flat).astype(jnp.bfloat16))

    x_spec = pl.BlockSpec((1, h + 2 * PAD, wsp + 2 * PAD, cin),
                          lambda nI, i: (nI, 0, 0, 0))          # whole image per n
    w_spec = pl.BlockSpec((kdim, cpad), lambda nI, i: (0, 0))
    vmem_limit = _vmem_limit_bytes()
    grid = (n, nb)
    patch_scratch = pltpu.VMEM((tm, kdim), jnp.bfloat16)        # im2col patch

    # ---- Pass 1: per-image partial BN statistics (sum / sum-of-squares). ----
    partial = pl.pallas_call(
        functools.partial(_stats_kernel, tile_h=tile_h),
        out_shape=jax.ShapeDtypeStruct((n, 2, cpad), jnp.float32),
        grid=grid,
        in_specs=[x_spec, w_spec],
        out_specs=pl.BlockSpec((1, 2, cpad), lambda nI, i: (nI, 0, 0)),
        scratch_shapes=[patch_scratch],
        compiler_params=pltpu.CompilerParams(
            dimension_semantics=("parallel", "arbitrary"),
            vmem_limit_bytes=vmem_limit),
    )(xp, w_pad)
    stats = jnp.sum(partial, axis=0)                            # (2, Cpad)

    # ---- Fold batch mean/var + gamma/beta into one per-channel scale/shift. ----
    # (The conv bias cancels exactly against the batch-mean subtraction.)
    gamma_p = jnp.zeros((cpad,), jnp.float32).at[:cout].set(gamma)
    beta_p = jnp.zeros((cpad,), jnp.float32).at[:cout].set(beta)
    mean_nb = stats[0] / m                                      # mean of bias-free conv
    # TODO(synk): E[x^2]-E[x]^2 in f32 is adequate here; switch to centered/Welford
    # partials if tolerances tighten for very large N*H*W.
    var = jnp.maximum(stats[1] / m - mean_nb * mean_nb, 0.0)
    inv_std = lax.rsqrt(var + EPS)
    scale = gamma_p * inv_std
    shift = beta_p - mean_nb * scale
    params = jnp.stack([scale, shift], axis=0)                  # (2, Cpad)
    del bias  # provably cancelled by batch-mean subtraction; kept for API parity

    # ---- Pass 2: normalize + ReLU, exact-size bf16 output (no channel padding). ----
    out = pl.pallas_call(
        functools.partial(_apply_kernel, tile_h=tile_h, cout=cout),
        out_shape=jax.ShapeDtypeStruct((n, h * wsp, cout), jnp.bfloat16),
        grid=grid,
        in_specs=[x_spec, w_spec, pl.BlockSpec((2, cpad), lambda nI, i: (0, 0))],
        out_specs=pl.BlockSpec((1, tm, cout), lambda nI, i: (nI, i, 0)),
        scratch_shapes=[patch_scratch],
        compiler_params=pltpu.CompilerParams(
            dimension_semantics=("parallel", "arbitrary"),
            vmem_limit_bytes=vmem_limit),
    )(xp, w_pad, params)

    out = out.reshape(n, h, wsp, cout).astype(jnp.float32)
    return jnp.transpose(out, (0, 3, 1, 2))                     # back to NCHW


def cbr_reference(x_nchw, w_hwio, bias, gamma, beta):
    # Pure-JAX/XLA reference.  Inputs are rounded to bf16 to mirror the kernel's
    # MXU input precision; all arithmetic is f32.
    xq = x_nchw.astype(jnp.bfloat16).astype(jnp.float32)
    wq = w_hwio.astype(jnp.bfloat16).astype(jnp.float32)
    x_nhwc = jnp.transpose(xq, (0, 2, 3, 1))
    conv = lax.conv_general_dilated(
        x_nhwc, wq, window_strides=(1, 1),
        padding=[(PAD, PAD), (PAD, PAD)],
        dimension_numbers=("NHWC", "HWIO", "NHWC"))
    conv = conv + bias
    mean = jnp.mean(conv, axis=(0, 1, 2), keepdims=True)
    var = jnp.mean((conv - mean) ** 2, axis=(0, 1, 2), keepdims=True)
    y = (conv - mean) * lax.rsqrt(var + EPS) * gamma + beta
    return jnp.transpose(jnp.maximum(y, 0.0), (0, 3, 1, 2))


if __name__ == "__main__":
    N, C, H, W = 2, 4, 16, 16
    COUT = 4                               # must equal C (see BN note above)

    key = jax.random.PRNGKey(0)
    kx, kw, kb, kg, kbt = jax.random.split(key, 5)
    x = jax.random.normal(kx, (N, C, H, W), dtype=jnp.float32)
    w = jax.random.normal(kw, (K_SIZE, K_SIZE, C, COUT), dtype=jnp.float32) * 0.1
    b = jax.random.normal(kb, (COUT,), dtype=jnp.float32) * 0.1
    gamma = 1.0 + 0.1 * jax.random.normal(kg, (COUT,), dtype=jnp.float32)
    beta = 0.1 * jax.random.normal(kbt, (COUT,), dtype=jnp.float32)

    fwd = jax.jit(cbr_forward)
    out = jax.block_until_ready(fwd(x, w, b, gamma, beta))
    ref = cbr_reference(x, w, b, gamma, beta)

    assert out.shape == (N, COUT, H, W)
    # Tolerance absorbs the bf16 output store (<=~0.4% relative on O(1) values).
    np.testing.assert_allclose(np.asarray(out), np.asarray(ref),
                               rtol=2e-2, atol=2e-2)
    print("KERNEL_OK")
</pallas_src>

<mosaic_0001>
module attributes {stable_mosaic.version = 11 : i64} {
  func.func @_stats_kernel(%arg0: i32, %arg1: i32, %arg2: memref<1x18x18x4xbf16, #tpu.memory_space<vmem>>, %arg3: memref<36x128xbf16, #tpu.memory_space<vmem>>, %arg4: memref<1x2x128xf32, #tpu.memory_space<vmem>>, %arg5: memref<256x36xbf16, #tpu.memory_space<vmem>>) attributes {dimension_semantics = [#tpu.dimension_semantics<parallel>, #tpu.dimension_semantics<arbitrary>], iteration_bounds = array<i64: 2, 1>, scalar_prefetch = 0 : i64, scratch_operands = 1 : i64, tpu.core_type = #tpu.core_type<tc>, window_params = [{transform_indices = @transform_0, window_bounds = array<i64: 1, 18, 18, 4>}, {pipeline_mode = #tpu.pipeline_mode<synchronous>, transform_indices = @transform_1, window_bounds = array<i64: 36, 128>}, {transform_indices = @transform_2, window_bounds = array<i64: 1, 2, 128>}]} {
    %c0_i32 = arith.constant 0 : i32
    %0 = arith.cmpi eq, %arg1, %c0_i32 : i32
    %1 = arith.extui %0 : i1 to i32
    %c0_i32_0 = arith.constant 0 : i32
    %2 = arith.cmpi ne, %1, %c0_i32_0 : i32
    scf.if %2 {
      %cst_25 = arith.constant 0.000000e+00 : f32
      %50 = vector.broadcast %cst_25 : f32 to vector<1x2x128xf32>
      %c0_26 = arith.constant 0 : index
      %c0_27 = arith.constant 0 : index
      %c0_28 = arith.constant 0 : index
      %51 = vector.load %arg4[%c0_26, %c0_27, %c0_28] : memref<1x2x128xf32, #tpu.memory_space<vmem>>, vector<1x2x128xf32>
      tpu.vector_store %arg4[%c0_26, %c0_27, %c0_28], %50 {strides = array<i32>} : memref<1x2x128xf32, #tpu.memory_space<vmem>>, vector<1x2x128xf32>,
    } else {
    }
    %c16_i32 = arith.constant 16 : i32
    %3 = arith.muli %arg1, %c16_i32 : i32
    %4 = tpu.assume_multiple %3, 16 : i32
    %c0 = arith.constant 0 : index
    %5 = arith.index_cast %4 : i32 to index
    %c0_1 = arith.constant 0 : index
    %c0_2 = arith.constant 0 : index
    %6 = vector.load %arg2[%c0, %5, %c0_1, %c0_2] : memref<1x18x18x4xbf16, #tpu.memory_space<vmem>>, vector<1x18x18x4xbf16>
    %7 = vector.shape_cast %6 : vector<1x18x18x4xbf16> to vector<18x18x4xbf16>
    %8 = vector.extract_strided_slice %7 {offsets = [0, 0, 0], sizes = [16, 16, 4], strides = [1, 1, 1]} : vector<18x18x4xbf16> to vector<16x16x4xbf16>
    %9 = vector.shape_cast %8 : vector<16x16x4xbf16> to vector<256x4xbf16>
    %c0_3 = arith.constant 0 : index
    %c0_4 = arith.constant 0 : index
    %10 = vector.load %arg5[%c0_3, %c0_4] : memref<256x36xbf16, #tpu.memory_space<vmem>>, vector<256x4xbf16>
    tpu.vector_store %arg5[%c0_3, %c0_4], %9 {strides = array<i32>} : memref<256x36xbf16, #tpu.memory_space<vmem>>, vector<256x4xbf16>,
    %11 = vector.extract_strided_slice %7 {offsets = [0, 1, 0], sizes = [16, 16, 4], strides = [1, 1, 1]} : vector<18x18x4xbf16> to vector<16x16x4xbf16>
    %12 = vector.shape_cast %11 : vector<16x16x4xbf16> to vector<256x4xbf16>
    %c0_5 = arith.constant 0 : index
    %c4 = arith.constant 4 : index
    %13 = vector.load %arg5[%c0_5, %c4] : memref<256x36xbf16, #tpu.memory_space<vmem>>, vector<256x4xbf16>
    tpu.vector_store %arg5[%c0_5, %c4], %12 {strides = array<i32>} : memref<256x36xbf16, #tpu.memory_space<vmem>>, vector<256x4xbf16>,
    %14 = vector.extract_strided_slice %7 {offsets = [0, 2, 0], sizes = [16, 16, 4], strides = [1, 1, 1]} : vector<18x18x4xbf16> to vector<16x16x4xbf16>
    %15 = vector.shape_cast %14 : vector<16x16x4xbf16> to vector<256x4xbf16>
    %c0_6 = arith.constant 0 : index
    %c8 = arith.constant 8 : index
    %16 = vector.load %arg5[%c0_6, %c8] : memref<256x36xbf16, #tpu.memory_space<vmem>>, vector<256x4xbf16>
    tpu.vector_store %arg5[%c0_6, %c8], %15 {strides = array<i32>} : memref<256x36xbf16, #tpu.memory_space<vmem>>, vector<256x4xbf16>,
    %17 = vector.extract_strided_slice %7 {offsets = [1, 0, 0], sizes = [16, 16, 4], strides = [1, 1, 1]} : vector<18x18x4xbf16> to vector<16x16x4xbf16>
    %18 = vector.shape_cast %17 : vector<16x16x4xbf16> to vector<256x4xbf16>
    %c0_7 = arith.constant 0 : index
    %c12 = arith.constant 12 : index
    %19 = vector.load %arg5[%c0_7, %c12] : memref<256x36xbf16, #tpu.memory_space<vmem>>, vector<256x4xbf16>
    tpu.vector_store %arg5[%c0_7, %c12], %18 {strides = array<i32>} : memref<256x36xbf16, #tpu.memory_space<vmem>>, vector<256x4xbf16>,
    %20 = vector.extract_strided_slice %7 {offsets = [1, 1, 0], sizes = [16, 16, 4], strides = [1, 1, 1]} : vector<18x18x4xbf16> to vector<16x16x4xbf16>
    %21 = vector.shape_cast %20 : vector<16x16x4xbf16> to vector<256x4xbf16>
    %c0_8 = arith.constant 0 : index
    %c16 = arith.constant 16 : index
    %22 = vector.load %arg5[%c0_8, %c16] : memref<256x36xbf16, #tpu.memory_space<vmem>>, vector<256x4xbf16>
    tpu.vector_store %arg5[%c0_8, %c16], %21 {strides = array<i32>} : memref<256x36xbf16, #tpu.memory_space<vmem>>, vector<256x4xbf16>,
    %23 = vector.extract_strided_slice %7 {offsets = [1, 2, 0], sizes = [16, 16, 4], strides = [1, 1, 1]} : vector<18x18x4xbf16> to vector<16x16x4xbf16>
    %24 = vector.shape_cast %23 : vector<16x16x4xbf16> to vector<256x4xbf16>
    %c0_9 = arith.constant 0 : index
    %c20 = arith.constant 20 : index
    %25 = vector.load %arg5[%c0_9, %c20] : memref<256x36xbf16, #tpu.memory_space<vmem>>, vector<256x4xbf16>
    tpu.vector_store %arg5[%c0_9, %c20], %24 {strides = array<i32>} : memref<256x36xbf16, #tpu.memory_space<vmem>>, vector<256x4xbf16>,
    %26 = vector.extract_strided_slice %7 {offsets = [2, 0, 0], sizes = [16, 16, 4], strides = [1, 1, 1]} : vector<18x18x4xbf16> to vector<16x16x4xbf16>
    %27 = vector.shape_cast %26 : vector<16x16x4xbf16> to vector<256x4xbf16>
    %c0_10 = arith.constant 0 : index
    %c24 = arith.constant 24 : index
    %28 = vector.load %arg5[%c0_10, %c24] : memref<256x36xbf16, #tpu.memory_space<vmem>>, vector<256x4xbf16>
    tpu.vector_store %arg5[%c0_10, %c24], %27 {strides = array<i32>} : memref<256x36xbf16, #tpu.memory_space<vmem>>, vector<256x4xbf16>,
    %29 = vector.extract_strided_slice %7 {offsets = [2, 1, 0], sizes = [16, 16, 4], strides = [1, 1, 1]} : vector<18x18x4xbf16> to vector<16x16x4xbf16>
    %30 = vector.shape_cast %29 : vector<16x16x4xbf16> to vector<256x4xbf16>
    %c0_11 = arith.constant 0 : index
    %c28 = arith.constant 28 : index
    %31 = vector.load %arg5[%c0_11, %c28] : memref<256x36xbf16, #tpu.memory_space<vmem>>, vector<256x4xbf16>
    tpu.vector_store %arg5[%c0_11, %c28], %30 {strides = array<i32>} : memref<256x36xbf16, #tpu.memory_space<vmem>>, vector<256x4xbf16>,
    %32 = vector.extract_strided_slice %7 {offsets = [2, 2, 0], sizes = [16, 16, 4], strides = [1, 1, 1]} : vector<18x18x4xbf16> to vector<16x16x4xbf16>
    %33 = vector.shape_cast %32 : vector<16x16x4xbf16> to vector<256x4xbf16>
    %c0_12 = arith.constant 0 : index
    %c32 = arith.constant 32 : index
    %34 = vector.load %arg5[%c0_12, %c32] : memref<256x36xbf16, #tpu.memory_space<vmem>>, vector<256x4xbf16>
    tpu.vector_store %arg5[%c0_12, %c32], %33 {strides = array<i32>} : memref<256x36xbf16, #tpu.memory_space<vmem>>, vector<256x4xbf16>,
    %c0_13 = arith.constant 0 : index
    %c0_14 = arith.constant 0 : index
    %35 = vector.load %arg5[%c0_13, %c0_14] : memref<256x36xbf16, #tpu.memory_space<vmem>>, vector<256x36xbf16>
    %c0_15 = arith.constant 0 : index
    %c0_16 = arith.constant 0 : index
    %36 = vector.load %arg3[%c0_15, %c0_16] : memref<36x128xbf16, #tpu.memory_space<vmem>>, vector<36x128xbf16>
    %cst = arith.constant dense<0.000000e+00> : vector<256x128xf32>
    %37 = tpu.matmul %35, %36, %cst {dimension_numbers = #tpu.dot_dimension_numbers<[1], [0], [0], [1], [0, 0, 1, 1], [], []>} : vector<256x36xbf16>, vector<36x128xbf16>, vector<256x128xf32> -> vector<256x128xf32>
    %cst_17 = arith.constant dense<0.000000e+00> : vector<128xf32>
    %38 = vector.multi_reduction <add>, %37, %cst_17 [0] : vector<256x128xf32> to vector<128xf32>
    %39 = vector.shape_cast %38 : vector<128xf32> to vector<1x128xf32>
    %40 = arith.mulf %37, %37 : vector<256x128xf32>
    %cst_18 = arith.constant dense<0.000000e+00> : vector<128xf32>
    %41 = vector.multi_reduction <add>, %40, %cst_18 [0] : vector<256x128xf32> to vector<128xf32>
    %42 = vector.shape_cast %41 : vector<128xf32> to vector<1x128xf32>
    %c0_19 = arith.constant 0 : index
    %c0_20 = arith.constant 0 : index
    %c0_21 = arith.constant 0 : index
    %43 = vector.load %arg4[%c0_19, %c0_20, %c0_21] : memref<1x2x128xf32, #tpu.memory_space<vmem>>, vector<1x2x128xf32>
    %44 = vector.shape_cast %43 : vector<1x2x128xf32> to vector<2x128xf32>
    %45 = tpu.concatenate %39, %42 in 0 : vector<1x128xf32>, vector<1x128xf32> -> vector<2x128xf32>
    %46 = arith.addf %44, %45 : vector<2x128xf32>
    %c0_22 = arith.constant 0 : index
    %c0_23 = arith.constant 0 : index
    %c0_24 = arith.constant 0 : index
    %47 = vector.load %arg4[%c0_22, %c0_23, %c0_24] : memref<1x2x128xf32, #tpu.memory_space<vmem>>, vector<1x2x128xf32>
    %48 = vector.shape_cast %47 : vector<1x2x128xf32> to vector<2x128xf32>
    %49 = vector.shape_cast %46 : vector<2x128xf32> to vector<1x2x128xf32>
    tpu.vector_store %arg4[%c0_22, %c0_23, %c0_24], %49 {strides = array<i32>} : memref<1x2x128xf32, #tpu.memory_space<vmem>>, vector<1x2x128xf32>,
    return
  }
  func.func @transform_0(%arg0: i32, %arg1: i32) -> (i32, i32, i32, i32) {
    %c0_i32 = arith.constant 0 : i32
    %c0_i32_0 = arith.constant 0 : i32
    %c0_i32_1 = arith.constant 0 : i32
    %c0_i32_2 = arith.constant 0 : i32
    return %arg0, %c0_i32, %c0_i32_0, %c0_i32_1 : i32, i32, i32, i32
  }
  func.func @transform_1(%arg0: i32, %arg1: i32) -> (i32, i32) {
    %c0_i32 = arith.constant 0 : i32
    %c0_i32_0 = arith.constant 0 : i32
    %c0_i32_1 = arith.constant 0 : i32
    return %c0_i32, %c0_i32_0 : i32, i32
  }
  func.func @transform_2(%arg0: i32, %arg1: i32) -> (i32, i32, i32) {
    %c0_i32 = arith.constant 0 : i32
    %c0_i32_0 = arith.constant 0 : i32
    %c0_i32_1 = arith.constant 0 : i32
    return %arg0, %c0_i32, %c0_i32_0 : i32, i32, i32
  }
}

module attributes {stable_mosaic.version = 11 : i64} {
  func.func @_apply_kernel(%arg0: i32, %arg1: i32, %arg2: memref<1x18x18x4xbf16, #tpu.memory_space<vmem>>, %arg3: memref<36x128xbf16, #tpu.memory_space<vmem>>, %arg4: memref<2x128xf32, #tpu.memory_space<vmem>>, %arg5: memref<1x256x4xbf16, #tpu.memory_space<vmem>>, %arg6: memref<256x36xbf16, #tpu.memory_space<vmem>>) attributes {dimension_semantics = [#tpu.dimension_semantics<parallel>, #tpu.dimension_semantics<arbitrary>], iteration_bounds = array<i64: 2, 1>, scalar_prefetch = 0 : i64, scratch_operands = 1 : i64, tpu.core_type = #tpu.core_type<tc>, window_params = [{transform_indices = @transform_0, window_bounds = array<i64: 1, 18, 18, 4>}, {pipeline_mode = #tpu.pipeline_mode<synchronous>, transform_indices = @transform_1, window_bounds = array<i64: 36, 128>}, {pipeline_mode = #tpu.pipeline_mode<synchronous>, transform_indices = @transform_2, window_bounds = array<i64: 2, 128>}, {transform_indices = @transform_3, window_bounds = array<i64: 1, 256, 4>}]} {
    %c16_i32 = arith.constant 16 : i32
    %0 = arith.muli %arg1, %c16_i32 : i32
    %1 = tpu.assume_multiple %0, 16 : i32
    %c0 = arith.constant 0 : index
    %2 = arith.index_cast %1 : i32 to index
    %c0_0 = arith.constant 0 : index
    %c0_1 = arith.constant 0 : index
    %3 = vector.load %arg2[%c0, %2, %c0_0, %c0_1] : memref<1x18x18x4xbf16, #tpu.memory_space<vmem>>, vector<1x18x18x4xbf16>
    %4 = vector.shape_cast %3 : vector<1x18x18x4xbf16> to vector<18x18x4xbf16>
    %5 = vector.extract_strided_slice %4 {offsets = [0, 0, 0], sizes = [16, 16, 4], strides = [1, 1, 1]} : vector<18x18x4xbf16> to vector<16x16x4xbf16>
    %6 = vector.shape_cast %5 : vector<16x16x4xbf16> to vector<256x4xbf16>
    %c0_2 = arith.constant 0 : index
    %c0_3 = arith.constant 0 : index
    %7 = vector.load %arg6[%c0_2, %c0_3] : memref<256x36xbf16, #tpu.memory_space<vmem>>, vector<256x4xbf16>
    tpu.vector_store %arg6[%c0_2, %c0_3], %6 {strides = array<i32>} : memref<256x36xbf16, #tpu.memory_space<vmem>>, vector<256x4xbf16>,
    %8 = vector.extract_strided_slice %4 {offsets = [0, 1, 0], sizes = [16, 16, 4], strides = [1, 1, 1]} : vector<18x18x4xbf16> to vector<16x16x4xbf16>
    %9 = vector.shape_cast %8 : vector<16x16x4xbf16> to vector<256x4xbf16>
    %c0_4 = arith.constant 0 : index
    %c4 = arith.constant 4 : index
    %10 = vector.load %arg6[%c0_4, %c4] : memref<256x36xbf16, #tpu.memory_space<vmem>>, vector<256x4xbf16>
    tpu.vector_store %arg6[%c0_4, %c4], %9 {strides = array<i32>} : memref<256x36xbf16, #tpu.memory_space<vmem>>, vector<256x4xbf16>,
    %11 = vector.extract_strided_slice %4 {offsets = [0, 2, 0], sizes = [16, 16, 4], strides = [1, 1, 1]} : vector<18x18x4xbf16> to vector<16x16x4xbf16>
    %12 = vector.shape_cast %11 : vector<16x16x4xbf16> to vector<256x4xbf16>
    %c0_5 = arith.constant 0 : index
    %c8 = arith.constant 8 : index
    %13 = vector.load %arg6[%c0_5, %c8] : memref<256x36xbf16, #tpu.memory_space<vmem>>, vector<256x4xbf16>
    tpu.vector_store %arg6[%c0_5, %c8], %12 {strides = array<i32>} : memref<256x36xbf16, #tpu.memory_space<vmem>>, vector<256x4xbf16>,
    %14 = vector.extract_strided_slice %4 {offsets = [1, 0, 0], sizes = [16, 16, 4], strides = [1, 1, 1]} : vector<18x18x4xbf16> to vector<16x16x4xbf16>
    %15 = vector.shape_cast %14 : vector<16x16x4xbf16> to vector<256x4xbf16>
    %c0_6 = arith.constant 0 : index
    %c12 = arith.constant 12 : index
    %16 = vector.load %arg6[%c0_6, %c12] : memref<256x36xbf16, #tpu.memory_space<vmem>>, vector<256x4xbf16>
    tpu.vector_store %arg6[%c0_6, %c12], %15 {strides = array<i32>} : memref<256x36xbf16, #tpu.memory_space<vmem>>, vector<256x4xbf16>,
    %17 = vector.extract_strided_slice %4 {offsets = [1, 1, 0], sizes = [16, 16, 4], strides = [1, 1, 1]} : vector<18x18x4xbf16> to vector<16x16x4xbf16>
    %18 = vector.shape_cast %17 : vector<16x16x4xbf16> to vector<256x4xbf16>
    %c0_7 = arith.constant 0 : index
    %c16 = arith.constant 16 : index
    %19 = vector.load %arg6[%c0_7, %c16] : memref<256x36xbf16, #tpu.memory_space<vmem>>, vector<256x4xbf16>
    tpu.vector_store %arg6[%c0_7, %c16], %18 {strides = array<i32>} : memref<256x36xbf16, #tpu.memory_space<vmem>>, vector<256x4xbf16>,
    %20 = vector.extract_strided_slice %4 {offsets = [1, 2, 0], sizes = [16, 16, 4], strides = [1, 1, 1]} : vector<18x18x4xbf16> to vector<16x16x4xbf16>
    %21 = vector.shape_cast %20 : vector<16x16x4xbf16> to vector<256x4xbf16>
    %c0_8 = arith.constant 0 : index
    %c20 = arith.constant 20 : index
    %22 = vector.load %arg6[%c0_8, %c20] : memref<256x36xbf16, #tpu.memory_space<vmem>>, vector<256x4xbf16>
    tpu.vector_store %arg6[%c0_8, %c20], %21 {strides = array<i32>} : memref<256x36xbf16, #tpu.memory_space<vmem>>, vector<256x4xbf16>,
    %23 = vector.extract_strided_slice %4 {offsets = [2, 0, 0], sizes = [16, 16, 4], strides = [1, 1, 1]} : vector<18x18x4xbf16> to vector<16x16x4xbf16>
    %24 = vector.shape_cast %23 : vector<16x16x4xbf16> to vector<256x4xbf16>
    %c0_9 = arith.constant 0 : index
    %c24 = arith.constant 24 : index
    %25 = vector.load %arg6[%c0_9, %c24] : memref<256x36xbf16, #tpu.memory_space<vmem>>, vector<256x4xbf16>
    tpu.vector_store %arg6[%c0_9, %c24], %24 {strides = array<i32>} : memref<256x36xbf16, #tpu.memory_space<vmem>>, vector<256x4xbf16>,
    %26 = vector.extract_strided_slice %4 {offsets = [2, 1, 0], sizes = [16, 16, 4], strides = [1, 1, 1]} : vector<18x18x4xbf16> to vector<16x16x4xbf16>
    %27 = vector.shape_cast %26 : vector<16x16x4xbf16> to vector<256x4xbf16>
    %c0_10 = arith.constant 0 : index
    %c28 = arith.constant 28 : index
    %28 = vector.load %arg6[%c0_10, %c28] : memref<256x36xbf16, #tpu.memory_space<vmem>>, vector<256x4xbf16>
    tpu.vector_store %arg6[%c0_10, %c28], %27 {strides = array<i32>} : memref<256x36xbf16, #tpu.memory_space<vmem>>, vector<256x4xbf16>,
    %29 = vector.extract_strided_slice %4 {offsets = [2, 2, 0], sizes = [16, 16, 4], strides = [1, 1, 1]} : vector<18x18x4xbf16> to vector<16x16x4xbf16>
    %30 = vector.shape_cast %29 : vector<16x16x4xbf16> to vector<256x4xbf16>
    %c0_11 = arith.constant 0 : index
    %c32 = arith.constant 32 : index
    %31 = vector.load %arg6[%c0_11, %c32] : memref<256x36xbf16, #tpu.memory_space<vmem>>, vector<256x4xbf16>
    tpu.vector_store %arg6[%c0_11, %c32], %30 {strides = array<i32>} : memref<256x36xbf16, #tpu.memory_space<vmem>>, vector<256x4xbf16>,
    %c0_12 = arith.constant 0 : index
    %c0_13 = arith.constant 0 : index
    %32 = vector.load %arg6[%c0_12, %c0_13] : memref<256x36xbf16, #tpu.memory_space<vmem>>, vector<256x36xbf16>
    %c0_14 = arith.constant 0 : index
    %c0_15 = arith.constant 0 : index
    %33 = vector.load %arg3[%c0_14, %c0_15] : memref<36x128xbf16, #tpu.memory_space<vmem>>, vector<36x128xbf16>
    %cst = arith.constant dense<0.000000e+00> : vector<256x128xf32>
    %34 = tpu.matmul %32, %33, %cst {dimension_numbers = #tpu.dot_dimension_numbers<[1], [0], [0], [1], [0, 0, 1, 1], [], []>} : vector<256x36xbf16>, vector<36x128xbf16>, vector<256x128xf32> -> vector<256x128xf32>
    %c0_16 = arith.constant 0 : index
    %c0_17 = arith.constant 0 : index
    %35 = vector.load %arg4[%c0_16, %c0_17] : memref<2x128xf32, #tpu.memory_space<vmem>>, vector<1x128xf32>
    %c1 = arith.constant 1 : index
    %c0_18 = arith.constant 0 : index
    %36 = vector.load %arg4[%c1, %c0_18] : memref<2x128xf32, #tpu.memory_space<vmem>>, vector<1x128xf32>
    %37 = vector.broadcast %35 : vector<1x128xf32> to vector<256x128xf32>
    %38 = arith.mulf %34, %37 : vector<256x128xf32>
    %39 = vector.broadcast %36 : vector<1x128xf32> to vector<256x128xf32>
    %40 = arith.addf %38, %39 : vector<256x128xf32>
    %cst_19 = arith.constant 0.000000e+00 : f32
    %41 = vector.broadcast %cst_19 : f32 to vector<256x128xf32>
    %42 = arith.maximumf %40, %41 : vector<256x128xf32>
    %43 = vector.extract_strided_slice %42 {offsets = [0, 0], sizes = [256, 4], strides = [1, 1]} : vector<256x128xf32> to vector<256x4xf32>
    %44 = arith.truncf %43 : vector<256x4xf32> to vector<256x4xbf16>
    %c0_20 = arith.constant 0 : index
    %c0_21 = arith.constant 0 : index
    %c0_22 = arith.constant 0 : index
    %45 = vector.load %arg5[%c0_20, %c0_21, %c0_22] : memref<1x256x4xbf16, #tpu.memory_space<vmem>>, vector<1x256x4xbf16>
    %46 = vector.shape_cast %45 : vector<1x256x4xbf16> to vector<256x4xbf16>
    %47 = vector.shape_cast %44 : vector<256x4xbf16> to vector<1x256x4xbf16>
    tpu.vector_store %arg5[%c0_20, %c0_21, %c0_22], %47 {strides = array<i32>} : memref<1x256x4xbf16, #tpu.memory_space<vmem>>, vector<1x256x4xbf16>,
    return
  }
  func.func @transform_0(%arg0: i32, %arg1: i32) -> (i32, i32, i32, i32) {
    %c0_i32 = arith.constant 0 : i32
    %c0_i32_0 = arith.constant 0 : i32
    %c0_i32_1 = arith.constant 0 : i32
    %c0_i32_2 = arith.constant 0 : i32
    return %arg0, %c0_i32, %c0_i32_0, %c0_i32_1 : i32, i32, i32, i32
  }
  func.func @transform_1(%arg0: i32, %arg1: i32) -> (i32, i32) {
    %c0_i32 = arith.constant 0 : i32
    %c0_i32_0 = arith.constant 0 : i32
    %c0_i32_1 = arith.constant 0 : i32
    return %c0_i32, %c0_i32_0 : i32, i32
  }
  func.func @transform_2(%arg0: i32, %arg1: i32) -> (i32, i32) {
    %c0_i32 = arith.constant 0 : i32
    %c0_i32_0 = arith.constant 0 : i32
    %c0_i32_1 = arith.constant 0 : i32
    return %c0_i32, %c0_i32_0 : i32, i32
  }
  func.func @transform_3(%arg0: i32, %arg1: i32) -> (i32, i32, i32) {
    %c0_i32 = arith.constant 0 : i32
    %c0_i32_0 = arith.constant 0 : i32
    return %arg0, %arg1, %c0_i32 : i32, i32, i32
  }
}

</mosaic_0001>

<bundles_post_ra>
// kernel: cbr_forward.3
= control target key start
LH: loop header
LB: loop body
LE: loop exit
PB: predicated region body
PF: predicated region fallthrough
CT: control target
= control target key end

     0   :  { %s2523_s12 = smov 0   ;;  %s2525_s13 = smov 0   ;;  %s3723_s0 = inlined_call_operand.vmem [shape: bf16[2,18,18,4], index: 0, kind: input, shape index: {}]   ;;  %s3724_s1 = inlined_call_operand.vmem [shape: bf16[36,128], index: 1, kind: input, shape index: {}]   ;;  %s3725_s2 = inlined_call_operand.vmem [shape: f32[2,128], index: 2, kind: input, shape index: {}]   ;;  %s3726_s3 = inlined_call_operand.vmem [shape: bf16[2,256,4], index: 3, kind: output, shape index: {}]  }
   0x1   :  { %s2527_s14 = smov 0  }
   0x2 LB: > { %s25_s15 = sadd.s32 1, %s2489_s13  ;;  %p2190_p0 = scmp.ge.s32.totalorder %s2493_s14, 1  ;;  %s2493_s14 = sphi %s2527_s14, %s13_s14   ;;  %s2489_s13 = sphi %s2525_s13, %s3762_s13   ;;  %s2485_s12 = sphi %s2523_s12, %s3761_s12  }
   0x3   : > { %p27_p1 = scmp.ge.s32.totalorder %s25_s15, 2  ;;  %p151_p2 = scmp.lt.s32.totalorder %s2493_s14, 3 }
   0x5   : > { %s3764_s15 = smov (%p27_p1, %s25_s15), 0  ;;  %p152_p3 = pnand %p2190_p0, %p151_p2 }
   0x7   : > { %155 = sbr.rel (%p152_p3) target bundleno = 637 (0x27d), region = 32 }
   0xe   : > { %p179_p4 = scmp.lt.s32.totalorder %s2485_s12, 1  ;;  %vm349_vm0 = vcmask 31744   ;;  %vm882_vm1 = vcmask 1042432   ;;  %vm883_vm2 = vcmask 1046532   ;;  %vm366_vm3 = vsmask.f32 3328 }
   0xf   : > { %vm367_vm4 = vsmask.f32 7440  ;;  %s2495_s20 = smov 12   ;;  %vm2579_vm5 = vmor %vm882_vm1, %vm883_vm2  ;;  %s2496_s21 = smov 8   ;;  %vm1671_vm7 = vcmask 1041408   ;;  %vm849_vm8 = vcmask 64544  }
  0x10   : > { %s3766_s12 = smov (!%p179_p4, %s2485_s12), 1  ;;  %vm2624_vm6 = vmor %vm366_vm3, %vm367_vm4  ;;  %s2497_s22 = smov 4   ;;  %vm1093_vm9 = vcmask 97344   ;;  %vm1163_vm10 = vcmask 130144   ;;  %vm1255_vm11 = vcmask 162944   ;;  %vm1331_vm12 = vcmask 195744  }
  0x11   : > { %s2419_s16 = smul.u32 216, %s3766_s12  ;;  %s2498_s23 = smov 16   ;;  %vm1401_vm13 = vcmask 228544   ;;  %vm1493_vm14 = vcmask 261344   ;;  %vm1569_vm15 = vcmask 294144   ;;  %vm2070_vm1 = vcmask 27648  }
  0x12   : > { %s2499_s24 = smov 20   ;;  %s2500_s25 = smov 24  }
  0x13   : > { %s2547_s19 = scalar_lea.vmem %s3723_s0, %s2419_s16  ;;  %s2501_s26 = smov 28  }
  0x14   : > { %v2550_v0 = vld [vmem:[%s2547_s19 + $0x6c] sm:$0xf]  ;;  %v2553_v1 = vld [vmem:[%s2547_s19 + $0x70] sm:$0xf]  ;;  %v2565_v12 = vld [vmem:[%s2547_s19 + $0x60] sm:$0xf] }
  0x15   : > { %v202_v2 = vld [vmem:[%s2547_s19 + $0xc] sm:$0xf]  ;;  %v2558_v3 = vcombine.low %v2550_v0, %v2553_v1  ;;  %v586_v4 = vshrl.u32 %v2550_v0, 16  ;;  %v589_v5 = vshll.u32 %v2550_v0, 16  ;;  %v599_v6 = vshrl.u32 %v2553_v1, 16  ;;  %s2502_s29 = smov 32  }
  0x16   : > { %v203_v7 = vld [vmem:[%s2547_s19 + $0x10] sm:$0xf]  ;;  %v394_v9 = vshrl.u32 %v202_v2, 16  ;;  %v397_v10 = vshll.u32 %v202_v2, 16  ;;  %v2572_v14 = vld [vmem:[%s2547_s19 + $0x64] sm:$0xf] }
  0x17   : > { %3738 = vst [vmem:[#allocation3_spill] sm:$0xff] %v2558_v3  ;;  %v2195_v8 = vcombine.low %v202_v2, %v203_v7  ;;  %v403_v11 = vshll.u32 %v203_v7, 16  ;;  %1131 = vrot.lane.b32.xlu1 %v2558_v3, %s2495_s20  ;;  %v407_v13 = vshrl.u32 %v203_v7, 16  ;;  %359 = vst.msk [vmem:[#allocation2 + $0x48] sm:$0xff] %vm349_vm0, %v2558_v3  ;;  %v2575_v15 = vld [vmem:[%s2547_s19 + $0x68] sm:$0x1] }
  0x18   : > { %v2234_v17 = vrot.slane %v2565_v12, 9  ;;  %v396_v18 = vrot.slane %v394_v9, 4  ;;  %v399_v19 = vrot.slane %v397_v10, 5  ;;  %v943_v20 = vrot.slane %v2572_v14, 5  ;;  %v2589_v22 = vld [vmem:[%s2547_s19] sm:$0xf] }
  0x19   : > { %1115 = vrot.lane.b32.xlu0 %v2195_v8, %s2495_s20  ;;  %351 = vst.msk [vmem:[#allocation2 + $0x8] sm:$0xff] %vm349_vm0, %v2195_v8  ;;  %v946_v21 = vrot.slane %v2575_v15, 5  ;;  %v409_v23 = vrot.slane %v407_v13, 4  ;;  %v2592_v24 = vld [vmem:[%s2547_s19 + $0x4] sm:$0xf]  ;;  %v2226_v26 = vrot.slane %v2589_v22, 9 }
  0x1a   : > { %v201_v25 = vld [vmem:[%s2547_s19 + $0x8] sm:$0x1]  ;;  %v944_v27 = vsel %vm2579_vm5, %v2234_v17, %v943_v20  ;;  %v945_v28 = vrot.slane %v943_v20, 4  ;;  %v887_v29 = vrot.slane %v2592_v24, 5  ;;  %v2600_v31 = vld [vmem:[%s2547_s19 + $0x74] sm:$0x1]  ;;  %v400_v48 = vor.u32 %v399_v19, %v396_v18 }
  0x1b   : > { %v890_v30 = vrot.slane %v201_v25, 5  ;;  %v2235_v32 = vrot.slane %v2550_v0, 9  ;;  %v950_v33 = vrot.slane %v2553_v1, 5  ;;  %v953_v34 = vrot.slane %v2600_v31, 5  ;;  %v204_v35 = vld [vmem:[%s2547_s19 + $0x14] sm:$0x1] }
  0x1c   : > { %v2227_v36 = vrot.slane %v202_v2, 9  ;;  %v947_v37 = vsel %vm2579_vm5, %v945_v28, %v946_v21  ;;  %v888_v38 = vsel %vm2579_vm5, %v2226_v26, %v887_v29  ;;  %v889_v39 = vrot.slane %v887_v29, 4  ;;  %s2321_s11 = sshll.u32 %s3766_s12, 7 }
  0x1d   : > { %v894_v40 = vrot.slane %v203_v7, 5  ;;  %v2610_v41 = vcombine.low %v944_v27, %v947_v37  ;;  %v951_v42 = vsel %vm2579_vm5, %v2235_v32, %v950_v33  ;;  %v952_v43 = vrot.slane %v950_v33, 4  ;;  %s3591_s18 = scalar_lea.vmem %s3726_s3, %s2321_s11 }
  0x1e   : > { %v897_v44 = vrot.slane %v204_v35, 5  ;;  %v891_v45 = vsel %vm2579_vm5, %v889_v39, %v890_v30  ;;  %v405_v52 = vrot.slane %v403_v11, 5  ;;  %v413_v53 = vshll.u32 %v204_v35, 16 }
  0x1f   : > { %3741 = vst [vmem:[#allocation4_spill] sm:$0xff] %v2610_v41  ;;  %v895_v46 = vsel %vm2579_vm5, %v2227_v36, %v894_v40  ;;  %v896_v47 = vrot.slane %v894_v40, 4  ;;  %1061 = vrot.lane.b32.xlu1 %v2610_v41, %s2496_s21  ;;  %v2242_v49 = vcombine.low %v888_v38, %v891_v45  ;;  %v954_v50 = vsel %vm2579_vm5, %v952_v43, %v953_v34  ;;  %v2663_v34 = vld [vmem:[%s2547_s19 + $0x78] sm:$0xf]  ;;  %v2668_v38 = vld [vmem:[%s2547_s19 + $0x7c] sm:$0xf] }
  0x20   : > { %v2628_v54 = vcombine.low %v951_v42, %v954_v50  ;;  %v401_v56 = vrot.slane %v400_v48, 4  ;;  %v370_v57 = vshrl.u32 %v2589_v22, 16  ;;  %v410_v59 = vor.u32 %v409_v23, %v405_v52  ;;  %v2677_v48 = vld [vmem:[%s2547_s19 + $0x18] sm:$0xf] }
  0x21   : > { %v898_v55 = vsel %vm2579_vm5, %v896_v47, %v897_v44  ;;  %1045 = vrot.lane.b32.xlu0 %v2242_v49, %s2496_s21  ;;  %v415_v60 = vrot.slane %v413_v53, 5  ;;  %v373_v61 = vshll.u32 %v2589_v22, 16  ;;  %v379_v2 = vshll.u32 %v2592_v24, 16  ;;  %v2680_v49 = vld [vmem:[%s2547_s19 + $0x1c] sm:$0xf] }
  0x22   : > { %3744 = vst [vmem:[#allocation5_spill] sm:$0xff] %v2628_v54  ;;  %v2634_v58 = vcombine.low %v895_v46, %v898_v55  ;;  %v406_v62 = vsel %vm2624_vm6, %v401_v56, %v405_v52  ;;  %v372_v63 = vrot.slane %v370_v57, 4  ;;  %v383_v7 = vshrl.u32 %v2592_v24, 16 }
  0x23   : > { %1063 = vrot.lane.b32.xlu1 %v2628_v54, %s2496_s21  ;;  %v411_v8 = vrot.slane %v410_v59, 4  ;;  %v375_v9 = vrot.slane %v373_v61, 5  ;;  %v389_v10 = vshll.u32 %v201_v25, 16  ;;  %v588_v11 = vrot.slane %v586_v4, 4 }
  0x24   : > { %v381_v13 = vrot.slane %v379_v2, 5  ;;  %v385_v17 = vrot.slane %v383_v7, 4  ;;  %v591_v18 = vrot.slane %v589_v5, 5  ;;  %v595_v19 = vshll.u32 %v2553_v1, 16 }
  0x25   : > { %1047 = vrot.lane.b32.xlu0 %v2634_v58, %s2496_s21  ;;  %v416_v20 = vsel %vm2624_vm6, %v411_v8, %v415_v60  ;;  %v376_v21 = vor.u32 %v375_v9, %v372_v63  ;;  %v391_v23 = vrot.slane %v389_v10, 5  ;;  %v601_v25 = vrot.slane %v599_v6, 4  ;;  %v2694_v60 = vld [vmem:[%s2547_s19 + $0x80] sm:$0x1] }
  0x26   : > { %v2654_v4 = vcombine.low %v406_v62, %v416_v20  ;;  %v386_v26 = vor.u32 %v385_v17, %v381_v13  ;;  %v592_v27 = vor.u32 %v591_v18, %v588_v11  ;;  %v597_v0 = vrot.slane %v595_v19, 5  ;;  %v2715_v19 = vld [vmem:[%s2547_s19 + $0x20] sm:$0x1] }
  0x27   : > { %v377_v5 = vrot.slane %v376_v21, 4  ;;  %v605_v28 = vshll.u32 %v2600_v31, 16  ;;  %v562_v29 = vshrl.u32 %v2565_v12, 16  ;;  %v565_v30 = vshll.u32 %v2565_v12, 16 }
  0x28   : > { %803 = vrot.lane.b32.xlu1 %v2654_v4, %s2497_s22  ;;  %v387_v1 = vrot.slane %v386_v26, 4  ;;  %v593_v32 = vrot.slane %v592_v27, 4  ;;  %v602_v6 = vor.u32 %v601_v25, %v597_v0  ;;  %v571_v33 = vshll.u32 %v2572_v14, 16 }
  0x29   : > { %v382_v31 = vsel %vm2624_vm6, %v377_v5, %v381_v13  ;;  %v607_v35 = vrot.slane %v605_v28, 5  ;;  %v564_v36 = vrot.slane %v562_v29, 4  ;;  %v567_v37 = vrot.slane %v565_v30, 5 }
  0x2a   : > { %v392_v39 = vsel %vm2624_vm6, %v387_v1, %v391_v23  ;;  %v598_v40 = vsel %vm2624_vm6, %v593_v32, %v597_v0  ;;  %v603_v42 = vrot.slane %v602_v6, 4  ;;  %v573_v43 = vrot.slane %v571_v33, 5 }
  0x2b   : > { %v2210_v44 = vcombine.low %v382_v31, %v392_v39  ;;  %v568_v45 = vor.u32 %v567_v37, %v564_v36  ;;  %v575_v46 = vshrl.u32 %v2572_v14, 16  ;;  %v581_v47 = vshll.u32 %v2575_v15, 16  ;;  %v2727_v36 = vld [vmem:[%s2547_s19 + $0x84] sm:$0xf]  ;;  %v2730_v37 = vld [vmem:[%s2547_s19 + $0x88] sm:$0xf] }
  0x2c   : > { %v608_v50 = vsel %vm2624_vm6, %v603_v42, %v607_v35  ;;  %v2686_v52 = vcombine.low %v2663_v34, %v2668_v38  ;;  %v610_v53 = vshrl.u32 %v2663_v34, 16  ;;  %v613_v55 = vshll.u32 %v2663_v34, 16 }
  0x2d   : > { %801 = vrot.lane.b32.xlu0 %v2210_v44, %s2497_s22  ;;  %v2691_v56 = vcombine.low %v598_v40, %v608_v50  ;;  %v569_v15 = vrot.slane %v568_v45, 4  ;;  %v577_v57 = vrot.slane %v575_v46, 4  ;;  %v583_v59 = vrot.slane %v581_v47, 5 }
  0x2e   : > { %v623_v61 = vshrl.u32 %v2668_v38, 16  ;;  %360 = vst.msk [vmem:[#allocation2 + $0x50] sm:$0xff] %vm349_vm0, %v2686_v52  ;;  %v2701_v62 = vcombine.low %v2677_v48, %v2680_v49  ;;  %v418_v63 = vshrl.u32 %v2677_v48, 16  ;;  %v421_v2 = vshll.u32 %v2677_v48, 16 }
  0x2f   : > { %3745 = vst [vmem:[#allocation6_spill] sm:$0xff] %v2691_v56  ;;  %819 = vrot.lane.b32.xlu1 %v2691_v56, %s2497_s22  ;;  %v574_v7 = vsel %vm2624_vm6, %v569_v15, %v573_v43  ;;  %v578_v8 = vor.u32 %v577_v57, %v573_v43  ;;  %v431_v9 = vshrl.u32 %v2680_v49, 16  ;;  %v612_v10 = vrot.slane %v610_v53, 4  ;;  %v2747_v53 = vld [vmem:[%s2547_s19 + $0x24] sm:$0xf] }
  0x30   : > { %352 = vst.msk [vmem:[#allocation2 + $0x10] sm:$0xff] %vm349_vm0, %v2701_v62  ;;  %v615_v11 = vrot.slane %v613_v55, 5  ;;  %v619_v13 = vshll.u32 %v2668_v38, 16  ;;  %v625_v17 = vrot.slane %v623_v61, 4  ;;  %v629_v18 = vshll.u32 %v2694_v60, 16 }
  0x31   : > { %v579_v20 = vrot.slane %v578_v8, 4  ;;  %v420_v21 = vrot.slane %v418_v63, 4  ;;  %v423_v23 = vrot.slane %v421_v2, 5  ;;  %v427_v25 = vshll.u32 %v2680_v49, 16  ;;  %v2750_v55 = vld [vmem:[%s2547_s19 + $0x28] sm:$0xf] }
  0x32   : > { %v616_v26 = vor.u32 %v615_v11, %v612_v10  ;;  %v621_v27 = vrot.slane %v619_v13, 5  ;;  %v433_v0 = vrot.slane %v431_v9, 4  ;;  %v437_v30 = vshll.u32 %v2715_v19, 16 }
  0x33   : > { %v584_v5 = vsel %vm2624_vm6, %v579_v20, %v583_v59  ;;  %1133 = vrot.lane.b32.xlu1 %v2686_v52, %s2495_s20  ;;  %v424_v28 = vor.u32 %v423_v23, %v420_v21  ;;  %v429_v29 = vrot.slane %v427_v25, 5  ;;  %v631_v33 = vrot.slane %v629_v18, 5 }
  0x34   : > { %v2723_v1 = vcombine.low %v574_v7, %v584_v5  ;;  %v617_v32 = vrot.slane %v616_v26, 4  ;;  %v626_v6 = vor.u32 %v625_v17, %v621_v27  ;;  %v957_v35 = vrot.slane %v2668_v38, 5  ;;  %v2798_v26 = vld [vmem:[%s2547_s19 + $0x90] sm:$0xf] }
  0x35   : > { %v434_v31 = vor.u32 %v433_v0, %v429_v29  ;;  %v425_v42 = vrot.slane %v424_v28, 4  ;;  %v439_v38 = vrot.slane %v437_v30, 5  ;;  %v2236_v44 = vrot.slane %v2663_v34, 9 }
  0x36   : > { %3746 = vst [vmem:[#allocation7_spill] sm:$0xff] %v2723_v1  ;;  %817 = vrot.lane.b32.xlu0 %v2723_v1, %s2497_s22  ;;  %v622_v39 = vsel %vm2624_vm6, %v617_v32, %v621_v27  ;;  %v627_v40 = vrot.slane %v626_v6, 4  ;;  %v959_v46 = vrot.slane %v957_v35, 4  ;;  %v960_v47 = vrot.slane %v2694_v60, 5  ;;  %v2801_v27 = vld [vmem:[%s2547_s19 + $0x94] sm:$0xf] }
  0x37   : > { %1223 = vrot.lane.b32.xlu1 %v2691_v56, %s2498_s23  ;;  %v435_v43 = vrot.slane %v434_v31, 4  ;;  %v2744_v50 = vcombine.low %v2727_v36, %v2730_v37  ;;  %v430_v34 = vsel %vm2624_vm6, %v425_v42, %v429_v29  ;;  %v958_v59 = vsel %vm2579_vm5, %v2236_v44, %v957_v35  ;;  %v2819_v31 = vld [vmem:[%s2547_s19 + $0x34] sm:$0xf] }
  0x38   : > { %v632_v45 = vsel %vm2624_vm6, %v627_v40, %v631_v33  ;;  %v901_v60 = vrot.slane %v2680_v49, 5  ;;  %v2769_v61 = vcombine.low %v2747_v53, %v2750_v55  ;;  %v961_v63 = vsel %vm2579_vm5, %v959_v46, %v960_v47  ;;  %v2816_v33 = vld [vmem:[%s2547_s19 + $0x30] sm:$0xf] }
  0x39   : > { %v2752_v15 = vcombine.low %v622_v39, %v632_v45  ;;  %361 = vst.msk [vmem:[#allocation2 + $0x58] sm:$0xff] %vm349_vm0, %v2744_v50  ;;  %v440_v57 = vsel %vm2624_vm6, %v435_v43, %v439_v38  ;;  %v634_v2 = vshrl.u32 %v2727_v36, 16  ;;  %v637_v7 = vshll.u32 %v2727_v36, 16  ;;  %v2828_v39 = vld [vmem:[%s2547_s19 + $0x2c] sm:$0x1] }
  0x3a   : > { %1117 = vrot.lane.b32.xlu0 %v2701_v62, %s2495_s20  ;;  %v647_v8 = vshrl.u32 %v2730_v37, 16  ;;  %353 = vst.msk [vmem:[#allocation2 + $0x18] sm:$0xff] %vm349_vm0, %v2769_v61  ;;  %v643_v9 = vshll.u32 %v2730_v37, 16  ;;  %v2781_v49 = vcombine.low %v430_v34, %v440_v57  ;;  %v2228_v10 = vrot.slane %v2677_v48, 9 }
  0x3b   : > { %1225 = vrot.lane.b32.xlu1 %v2752_v15, %s2498_s23  ;;  %v2786_v11 = vcombine.low %v958_v59, %v961_v63  ;;  %v903_v13 = vrot.slane %v901_v60, 4  ;;  %v904_v17 = vrot.slane %v2715_v19, 5  ;;  %v636_v18 = vrot.slane %v634_v2, 4  ;;  %v2853_v2 = vld [vmem:[%s2547_s19 + $0x9c] sm:$0xf] }
  0x3c   : > { %v639_v20 = vrot.slane %v637_v7, 5  ;;  %v645_v21 = vrot.slane %v643_v9, 5  ;;  %v649_v23 = vrot.slane %v647_v8, 4  ;;  %v902_v48 = vsel %vm2579_vm5, %v2228_v10, %v901_v60 }
  0x3d   : > { %v442_v25 = vshrl.u32 %v2747_v53, 16  ;;  %v905_v19 = vsel %vm2579_vm5, %v903_v13, %v904_v17  ;;  %v445_v0 = vshll.u32 %v2747_v53, 16  ;;  %v455_v5 = vshrl.u32 %v2750_v55, 16  ;;  %v2861_v13 = vld [vmem:[%s2547_s19 + $0xa0] sm:$0xf] }
  0x3e   : > { %1207 = vrot.lane.b32.xlu0 %v2654_v4, %s2498_s23  ;;  %v2790_v4 = vld [vmem:[%s2547_s19 + $0x8c] sm:$0x1]  ;;  %v451_v28 = vshll.u32 %v2750_v55, 16  ;;  %v640_v29 = vor.u32 %v639_v20, %v636_v18  ;;  %v650_v30 = vor.u32 %v649_v23, %v645_v21  ;;  %v2813_v6 = vcombine.low %v2798_v26, %v2801_v27 }
  0x3f   : > { %1299 = vrot.lane.b32.xlu1 %v2628_v54, %s2499_s24  ;;  %v653_v32 = vshll.u32 %v2790_v4, 16  ;;  %v2823_v35 = vcombine.low %v902_v48, %v905_v19  ;;  %v444_v40 = vrot.slane %v442_v25, 4  ;;  %v447_v42 = vrot.slane %v445_v0, 5  ;;  %v2872_v48 = vld [vmem:[%s2547_s19 + $0x3c] sm:$0xf] }
  0x40   : > { %v2830_v43 = vrot.slane %v451_v28, 5  ;;  %v457_v38 = vrot.slane %v455_v5, 4  ;;  %362 = vst.msk [vmem:[#allocation2 + $0x60] sm:$0xff] %vm349_vm0, %v2813_v6  ;;  %v641_v44 = vrot.slane %v640_v29, 4  ;;  %v651_v45 = vrot.slane %v650_v30, 4 }
  0x41   : > { %v2836_v46 = vcombine.low %v2816_v33, %v2819_v31  ;;  %v448_v47 = vor.u32 %v447_v42, %v444_v40  ;;  %v658_v60 = vshrl.u32 %v2798_v26, 16  ;;  %v661_v63 = vshll.u32 %v2798_v26, 16  ;;  %v2880_v28 = vld [vmem:[%s2547_s19 + $0x40] sm:$0xf] }
  0x42   : > { %1209 = vrot.lane.b32.xlu0 %v2781_v49, %s2498_s23  ;;  %v458_v34 = vor.u32 %v457_v38, %v2830_v43  ;;  %v646_v57 = vsel %vm2624_vm6, %v641_v44, %v645_v21  ;;  %v964_v8 = vrot.slane %v2730_v37, 5  ;;  %v671_v9 = vshrl.u32 %v2801_v27, 16  ;;  %v2896_v38 = vld [vmem:[%s2547_s19 + $0x98] sm:$0x1] }
  0x43   : > { %1301 = vrot.lane.b32.xlu1 %v2786_v11, %s2499_s24  ;;  %354 = vst.msk [vmem:[#allocation2 + $0x20] sm:$0xff] %vm349_vm0, %v2836_v46  ;;  %v667_v10 = vshll.u32 %v2801_v27, 16  ;;  %v449_v18 = vrot.slane %v448_v47, 4  ;;  %v2237_v21 = vrot.slane %v2727_v36, 9  ;;  %v466_v37 = vshrl.u32 %v2816_v33, 16 }
  0x44   : > { %v459_v20 = vrot.slane %v458_v34, 4  ;;  %v469_v23 = vshll.u32 %v2816_v33, 16  ;;  %v967_v25 = vrot.slane %v2790_v4, 5  ;;  %v660_v19 = vrot.slane %v658_v60, 4  ;;  %v2904_v44 = vld [vmem:[%s2547_s19 + $0x38] sm:$0x1] }
  0x45   : > { %v663_v0 = vrot.slane %v661_v63, 5  ;;  %v2877_v5 = vcombine.low %v2853_v2, %v2861_v13  ;;  %v966_v36 = vrot.slane %v964_v8, 4  ;;  %v2885_v29 = vrot.slane %v667_v10, 5  ;;  %v2467_v10 = vld [vmem:[%s3724_s1 + $0x8] sm:$0xff]  }
  0x46   : > { %1283 = vrot.lane.b32.xlu0 %v2634_v58, %s2499_s24  ;;  %v655_v58 = vrot.slane %v653_v32, 5  ;;  %v673_v30 = vrot.slane %v671_v9, 4  ;;  %v454_v4 = vsel %vm2624_vm6, %v449_v18, %v2830_v43  ;;  %v911_v42 = vrot.slane %v2828_v39, 5 }
  0x47   : > { %1369 = vrot.lane.b32.xlu1 %v2686_v52, %s2500_s25  ;;  %v461_v52 = vshll.u32 %v2828_v39, 16  ;;  %363 = vst.msk [vmem:[#allocation2 + $0x68] sm:$0xff] %vm349_vm0, %v2877_v5  ;;  %v2908_v43 = vcombine.low %v2872_v48, %v2880_v28  ;;  %v965_v39 = vsel %vm2579_vm5, %v2237_v21, %v964_v8  ;;  %v664_v47 = vor.u32 %v663_v0, %v660_v19 }
  0x48   : > { %v656_v59 = vsel %vm2624_vm6, %v651_v45, %v655_v58  ;;  %v468_v45 = vrot.slane %v466_v37, 4  ;;  %v471_v58 = vrot.slane %v469_v23, 5  ;;  %v475_v34 = vshll.u32 %v2819_v31, 16 }
  0x49   : > { %v463_v7 = vrot.slane %v461_v52, 5  ;;  %v2865_v17 = vcombine.low %v646_v57, %v656_v59  ;;  %v479_v52 = vshrl.u32 %v2819_v31, 16  ;;  %v968_v59 = vsel %vm2579_vm5, %v966_v36, %v967_v25  ;;  %355 = vst.msk [vmem:[#allocation2 + $0x28] sm:$0xff] %vm349_vm0, %v2908_v43 }
  0x4a   : > { %1285 = vrot.lane.b32.xlu0 %v2823_v35, %s2499_s24  ;;  %v674_v60 = vor.u32 %v673_v30, %v2885_v29  ;;  %v677_v63 = vshll.u32 %v2896_v38, 16  ;;  %v485_v9 = vshll.u32 %v2904_v44, 16  ;;  %v472_v18 = vor.u32 %v471_v58, %v468_v45  ;;  %v2949_v30 = vld [vmem:[%s2547_s19 + $0xa4] sm:$0x1] }
  0x4b   : > { %1371 = vrot.lane.b32.xlu1 %v2744_v50, %s2500_s25  ;;  %v464_v32 = vsel %vm2624_vm6, %v459_v20, %v463_v7  ;;  %v2934_v20 = vcombine.low %v965_v39, %v968_v59  ;;  %v665_v21 = vrot.slane %v664_v47, 4  ;;  %v2936_v37 = vrot.slane %v475_v34, 5 }
  0x4c   : > { %v2916_v57 = vcombine.low %v454_v4, %v464_v32  ;;  %v481_v23 = vrot.slane %v479_v52, 4  ;;  %v675_v25 = vrot.slane %v674_v60, 4  ;;  %v679_v19 = vrot.slane %v677_v63, 5  ;;  %v2985_v60 = vld [vmem:[%s2547_s19 + $0xa8] sm:$0xf] }
  0x4d   : > { %v2238_v0 = vrot.slane %v2798_v26, 9  ;;  %v2945_v36 = vrot.slane %v485_v9, 5  ;;  %v2194_v4 = vcombine.low %v2589_v22, %v2592_v24  ;;  %v2239_v32 = vrot.slane %v2853_v2, 9  ;;  %v2964_v22 = vld [vmem:[%s2547_s19 + $0x44] sm:$0x1] }
  0x4e   : > { %1353 = vrot.lane.b32.xlu0 %v2701_v62, %s2500_s25  ;;  %v908_v62 = vrot.slane %v2750_v55, 5  ;;  %v2229_v55 = vrot.slane %v2747_v53, 9  ;;  %v2466_v53 = vld [vmem:[%s3724_s1] sm:$0xff]   ;;  %v974_v26 = vrot.slane %v2896_v38, 5  ;;  %v2231_v24 = vrot.slane %v2872_v48, 9 }
  0x4f   : > { %1461 = vrot.lane.b32.xlu1 %v2752_v15, %s2501_s26  ;;  %2373 = vmatprep.subr.bf16.mxu0 %v2466_v53  ;;  %350 = vst.msk [vmem:[#allocation2] sm:$0xff] %vm349_vm0, %v2194_v4  ;;  %v922_v38 = vrot.slane %v2880_v28, 5  ;;  %v680_v45 = vsel %vm2624_vm6, %v675_v25, %v679_v19  ;;  %v925_v39 = vrot.slane %v2964_v22, 5  ;;  %v242_v63 = vld [vmem:[%s2547_s19 + $0xac] sm:$0xf]  ;;  %v709_v4 = vshll.u32 %v2985_v60, 16 }
  0x50   : > { %v910_v40 = vrot.slane %v908_v62, 4  ;;  %2411 = vmatprep.subr.bf16.mxu1 %v2466_v53  ;;  %2374 = vmatpush3.bf16.msra.mxu0 %v2466_v53  ;;  %v909_v7 = vsel %vm2579_vm5, %v2229_v55, %v908_v62  ;;  %v971_v55 = vrot.slane %v2801_v27, 5  ;;  %v670_v27 = vsel %vm2624_vm6, %v665_v21, %v2885_v29  ;;  %v3003_v21 = vld [vmem:[%s2547_s19 + $0x4c] sm:$0xf] }
  0x51   : > { %2414 = vmatpush3.bf16.msra.mxu1 %v2466_v53  ;;  %2375 = vmatprep.subr.bf16.mxu0 %v2467_v10  ;;  %v482_v53 = vor.u32 %v481_v23, %v2936_v37  ;;  %v923_v34 = vsel %vm2579_vm5, %v2231_v24, %v922_v38  ;;  %v924_v59 = vrot.slane %v922_v38, 4  ;;  %v3005_v23 = vcombine.low %v670_v27, %v680_v45 }
  0x52   : > { %1355 = vrot.lane.b32.xlu0 %v2769_v61, %s2500_s25  ;;  %v912_v8 = vsel %vm2579_vm5, %v910_v40, %v911_v42  ;;  %2412 = vmatprep.subr.bf16.mxu1 %v2467_v10  ;;  %v2954_v40 = vrot.slane %v472_v18, 4  ;;  %v978_v42 = vrot.slane %v2861_v13, 5  ;;  %v2980_v52 = vsel %vm2579_vm5, %v2238_v0, %v971_v55  ;;  %v3000_v18 = vld [vmem:[%s2547_s19 + $0x48] sm:$0xf] }
  0x53   : > { %1463 = vrot.lane.b32.xlu1 %v2865_v17, %s2501_s26  ;;  %v2940_v62 = vcombine.low %v909_v7, %v912_v8  ;;  %v973_v47 = vrot.slane %v971_v55, 4  ;;  %v3007_v25 = vrot.slane %v482_v53, 4  ;;  %v926_v0 = vsel %vm2579_vm5, %v924_v59, %v925_v39 }
  0x54   : > { %2376 = vmatpush3.bf16.msra.mxu0 %v2467_v10  ;;  %v979_v29 = vsel %vm2579_vm5, %v2239_v32, %v978_v42  ;;  %v980_v58 = vrot.slane %v978_v42, 4  ;;  %v3015_v55 = vcombine.low %v923_v34, %v926_v0  ;;  %v243_v32 = vld [vmem:[%s2547_s19 + $0xb0] sm:$0x1]  ;;  %v719_v42 = vshrl.u32 %v242_v63, 16 }
  0x55   : > { %2415 = vmatpush3.bf16.msra.mxu1 %v2467_v10  ;;  %v2997_v10 = vcombine.low %v2565_v12, %v2572_v14  ;;  %v3020_v12 = vcombine.low %v2985_v60, %v242_v63  ;;  %v706_v14 = vshrl.u32 %v2985_v60, 16  ;;  %v517_v27 = vshll.u32 %v3000_v18, 16 }
  0x56   : > { %1445 = vrot.lane.b32.xlu0 %v2781_v49, %s2501_s26  ;;  %v3035_v53 = vsel %vm2579_vm5, %v973_v47, %v974_v26  ;;  %v527_v24 = vshrl.u32 %v3003_v21, 16  ;;  %v711_v45 = vrot.slane %v709_v4, 5  ;;  %v721_v39 = vrot.slane %v719_v42, 4 }
  0x57   : > { %1537 = vrot.lane.b32.xlu1 %v2786_v11, %s2502_s29  ;;  %3747 = vst [vmem:[#allocation8_spill] sm:$0xff] %v2997_v10  ;;  %358 = vst.msk [vmem:[#allocation2 + $0x40] sm:$0xff] %vm349_vm0, %v2997_v10  ;;  %v708_v38 = vrot.slane %v706_v14, 4  ;;  %v725_v34 = vshll.u32 %v243_v32, 16  ;;  %v519_v47 = vrot.slane %v517_v27, 5  ;;  %v2240_v56 = vrot.slane %v2985_v60, 9 }
  0x58   : > { %364 = vst.msk [vmem:[#allocation2 + $0x70] sm:$0xff] %vm349_vm0, %v3020_v12  ;;  %v529_v0 = vrot.slane %v527_v24, 4  ;;  %v988_v3 = vrot.slane %v243_v32, 5  ;;  %v929_v32 = vrot.slane %v3003_v21, 5 }
  0x59   : > { %v712_v26 = vor.u32 %v711_v45, %v708_v38  ;;  %v727_v8 = vrot.slane %v725_v34, 5  ;;  %v985_v45 = vrot.slane %v242_v63, 5  ;;  %v2232_v34 = vrot.slane %v3000_v18, 9 }
  0x5a   : > { %1447 = vrot.lane.b32.xlu0 %v2916_v57, %s2501_s26 }
  0x5b   : > { %821 = vrot.lane.b32.xlu1 %v2752_v15, %s2497_s22  ;;  %v981_v15 = vrot.slane %v2949_v30, 5  ;;  %v713_v42 = vrot.slane %v712_v26, 4 }
  0x5d   : > { %v982_v9 = vsel %vm2579_vm5, %v980_v58, %v981_v15  ;;  %v514_v15 = vshrl.u32 %v3000_v18, 16  ;;  %v715_v58 = vshll.u32 %v242_v63, 16  ;;  %v986_v63 = vsel %vm2579_vm5, %v2240_v56, %v985_v45 }
  0x5e   : > { %1521 = vrot.lane.b32.xlu0 %v2823_v35, %s2502_s29  ;;  %v3009_v19 = vcombine.low %v979_v29, %v982_v9  ;;  %v219_v29 = vld [vmem:[%s2547_s19 + $0x50] sm:$0x1]  ;;  %v523_v9 = vshll.u32 %v3003_v21, 16  ;;  %v930_v56 = vsel %vm2579_vm5, %v2232_v34, %v929_v32 }
  0x5f   : > { %1539 = vrot.lane.b32.xlu1 %v2934_v20, %s2502_s29  ;;  %v516_v59 = vrot.slane %v514_v15, 4  ;;  %v717_v4 = vrot.slane %v715_v58, 5  ;;  %v533_v7 = vshll.u32 %v219_v29, 16 }
  0x60   : > { %v525_v15 = vrot.slane %v523_v9, 5 }
  0x61   : > { %v520_v54 = vor.u32 %v519_v47, %v516_v59  ;;  %v722_v38 = vor.u32 %v721_v39, %v717_v4  ;;  %v535_v27 = vrot.slane %v533_v7, 5  ;;  %v3056_v59 = vld [vmem:[%s2547_s19 + $0xb4] sm:$0xf]  ;;  %v987_v7 = vrot.slane %v985_v45, 4  ;;  %v3064_v39 = vld [vmem:[%s2547_s19 + $0xb8] sm:$0xf] }
  0x62   : > { %805 = vrot.lane.b32.xlu0 %v2781_v49, %s2497_s22  ;;  %v3029_v49 = vcombine.low %v3000_v18, %v3003_v21  ;;  %v530_v58 = vor.u32 %v529_v0, %v525_v15  ;;  %v932_v47 = vrot.slane %v219_v29, 5  ;;  %v931_v21 = vrot.slane %v929_v32, 4 }
  0x63   : > { %823 = vrot.lane.b32.xlu1 %v2865_v17, %s2497_s22  ;;  %v521_v24 = vrot.slane %v520_v54, 4  ;;  %v723_v60 = vrot.slane %v722_v38, 4  ;;  %v989_v0 = vsel %vm2579_vm5, %v987_v7, %v988_v3  ;;  %v3091_v3 = vcombine.low %v3056_v59, %v3064_v39 }
  0x64   : > { %356 = vst.msk [vmem:[#allocation2 + $0x30] sm:$0xff] %vm349_vm0, %v3029_v49  ;;  %v531_v26 = vrot.slane %v530_v58, 4  ;;  %v730_v45 = vshrl.u32 %v3056_v59, 16  ;;  %v743_v58 = vshrl.u32 %v3064_v39, 16 }
  0x65   : > { %v526_v18 = vsel %vm2624_vm6, %v521_v24, %v525_v15  ;;  %v728_v9 = vsel %vm2624_vm6, %v723_v60, %v727_v8  ;;  %v3087_v15 = vcombine.low %v986_v63, %v989_v0  ;;  %v3102_v24 = vld [vmem:[%s2547_s19 + $0xbc] sm:$0x1]  ;;  %365 = vst.msk [vmem:[#allocation2 + $0x78] sm:$0xff] %vm349_vm0, %v3091_v3  ;;  %v488_v63 = vsel %vm2624_vm6, %v3007_v25, %v2945_v36 }
  0x66   : > { %1523 = vrot.lane.b32.xlu0 %v2940_v62, %s2502_s29  ;;  %v536_v8 = vsel %vm2624_vm6, %v531_v26, %v535_v27  ;;  %v222_v60 = vld [vmem:[%s2547_s19 + $0x5c] sm:$0x1]  ;;  %v2468_v26 = vld [vmem:[%s3724_s1 + $0x10] ss:$0 sps:$4 sm:$0x33]   ;;  %v745_v0 = vrot.slane %v743_v58, 4 }
  0x67   : > { %1065 = vrot.lane.b32.xlu1 %v2786_v11, %s2496_s21  ;;  %v718_v11 = vsel %vm2624_vm6, %v713_v42, %v717_v4  ;;  %v3076_v4 = vld [vmem:[%s2547_s19 + $0x54] sm:$0xf]  ;;  %v3079_v42 = vld [vmem:[%s2547_s19 + $0x58] sm:$0xf]  ;;  %v3095_v38 = vcombine.low %v526_v18, %v536_v8  ;;  %v732_v18 = vrot.slane %v730_v45, 4  ;;  %v749_v36 = vshll.u32 %v3102_v24, 16  ;;  %2417 = vmatprep.subr.msk.bf16.mxu0 %vm1671_vm7, %v2468_v26 }
  0x68   : > { %v3083_v29 = vcombine.low %v718_v11, %v728_v9  ;;  %v733_v11 = vshll.u32 %v3056_v59, 16  ;;  %v538_v34 = vshrl.u32 %v3076_v4, 16  ;;  %v541_v7 = vshll.u32 %v3076_v4, 16  ;;  %2418 = vmatprep.subr.msk.bf16.mxu1 %vm1671_vm7, %v2468_v26 }
  0x69   : > { %v551_v32 = vshrl.u32 %v3079_v42, 16  ;;  %v739_v9 = vshll.u32 %v3064_v39, 16  ;;  %v751_v54 = vrot.slane %v749_v36, 5  ;;  %v557_v14 = vshll.u32 %v222_v60, 16 }
  0x6a   : > { %807 = vrot.lane.b32.xlu0 %v2916_v57, %s2497_s22  ;;  %v540_v25 = vrot.slane %v538_v34, 4  ;;  %v1673_v34 = vsel %vm1671_vm7, %v2468_v26, 0 }
  0x6b   : > { %1067 = vrot.lane.b32.xlu1 %v2934_v20, %s2496_s21  ;;  %v553_v8 = vrot.slane %v551_v32, 4  ;;  %v741_v45 = vrot.slane %v739_v9, 5  ;;  %2378 = vmatpush3.bf16.msra.mxu0 %v1673_v34 }
  0x6c   : > { %2416 = vmatpush3.bf16.msra.mxu1 %v1673_v34  ;;  %v3751_v34 = vshrl.u32 %v2853_v2, 16 }
  0x6d   : > { %v746_v10 = vor.u32 %v745_v0, %v741_v45  ;;  %v939_v0 = vrot.slane %v222_v60, 5 }
  0x6e   : > { %1049 = vrot.lane.b32.xlu0 %v2823_v35, %s2496_s21  ;;  %v933_v35 = vsel %vm2579_vm5, %v931_v21, %v932_v47  ;;  %v735_v47 = vrot.slane %v733_v11, 5  ;;  %v547_v21 = vshll.u32 %v3079_v42, 16  ;;  %v2241_v11 = vrot.slane %v3056_v59, 9 }
  0x6f   : > { %1135 = vrot.lane.b32.xlu1 %v2744_v50, %s2495_s20  ;;  %v3104_v27 = vcombine.low %v930_v56, %v933_v35  ;;  %v3111_v50 = vcombine.low %v3076_v4, %v3079_v42  ;;  %v543_v56 = vrot.slane %v541_v7, 5  ;;  %v747_v9 = vrot.slane %v746_v10, 4 }
  0x70   : > { %v736_v35 = vor.u32 %v735_v47, %v732_v18  ;;  %v549_v1 = vrot.slane %v547_v21, 5  ;;  %v992_v18 = vrot.slane %v3064_v39, 5  ;;  %v995_v47 = vrot.slane %v3102_v24, 5 }
  0x71   : > { %3748 = vst [vmem:[#allocation9_spill] sm:$0xff] %v3111_v50  ;;  %357 = vst.msk [vmem:[#allocation2 + $0x38] sm:$0xff] %vm349_vm0, %v3111_v50  ;;  %v544_v41 = vor.u32 %v543_v56, %v540_v25  ;;  %v559_v50 = vrot.slane %v557_v14, 5  ;;  %v936_v14 = vrot.slane %v3079_v42, 5  ;;  %v752_v10 = vsel %vm2624_vm6, %v747_v9, %v751_v54 }
  0x72   : > { %1051 = vrot.lane.b32.xlu0 %v2940_v62, %s2496_s21  ;;  %v737_v58 = vrot.slane %v736_v35, 4  ;;  %v554_v32 = vor.u32 %v553_v8, %v549_v1  ;;  %v993_v26 = vsel %vm2579_vm5, %v2241_v11, %v992_v18  ;;  %v994_v39 = vrot.slane %v992_v18, 4 }
  0x73   : > { %1137 = vrot.lane.b32.xlu1 %v2813_v6, %s2495_s20  ;;  %v545_v7 = vrot.slane %v544_v41, 4  ;;  %v691_v54 = vshll.u32 %v2861_v13, 16  ;;  %v499_v18 = vshll.u32 %v2880_v28, 16  ;;  %vm1622_vm0 = vcmask 293888  }
  0x74   : > { %v742_v59 = vsel %vm2624_vm6, %v737_v58, %v741_v45  ;;  %v555_v41 = vrot.slane %v554_v32, 4  ;;  %v996_v25 = vsel %vm2579_vm5, %v994_v39, %v995_v47  ;;  %v3750_v45 = vrot.slane %v2819_v31, 5 }
  0x75   : > { %v3157_v42 = vcombine.low %v742_v59, %v752_v10  ;;  %v3166_v21 = vcombine.low %v993_v26, %v996_v25  ;;  %v918_v58 = vrot.slane %v2904_v44, 5  ;;  %v503_v32 = vshrl.u32 %v2880_v28, 16 }
  0x76   : > { %1119 = vrot.lane.b32.xlu0 %v2769_v61, %s2495_s20  ;;  %v2233_v61 = vrot.slane %v3076_v4, 9  ;;  %v938_v4 = vrot.slane %v936_v14, 4  ;;  %v560_v36 = vsel %vm2624_vm6, %v555_v41, %v559_v50  ;;  %v3749_v50 = vsel %vm2624_vm6, %v2954_v40, %v2936_v37 }
  0x77   : > { %1227 = vrot.lane.b32.xlu1 %v2865_v17, %s2498_s23  ;;  %v550_v17 = vsel %vm2624_vm6, %v545_v7, %v549_v1  ;;  %v695_v1 = vshrl.u32 %v2861_v13, 16  ;;  %v3179_v35 = vcombine.low %v3749_v50, %v488_v63  ;;  %v2230_v13 = vrot.slane %v2816_v33, 9 }
  0x78   : > { %v937_v24 = vsel %vm2579_vm5, %v2233_v61, %v936_v14  ;;  %v3164_v56 = vcombine.low %v550_v17, %v560_v36  ;;  %v940_v60 = vsel %vm2579_vm5, %v938_v4, %v939_v0  ;;  %v917_v11 = vrot.slane %v3750_v45, 4 }
  0x79   : > { %v3170_v8 = vcombine.low %v937_v24, %v940_v60  ;;  %v684_v7 = vrot.slane %v3751_v34, 4  ;;  %v3752_v37 = vshll.u32 %v2853_v2, 16  ;;  %v693_v63 = vrot.slane %v691_v54, 5 }
  0x7a   : > { %1121 = vrot.lane.b32.xlu0 %v2836_v46, %s2495_s20  ;;  %v697_v33 = vrot.slane %v695_v1, 4  ;;  %v3753_v44 = vmov %v3750_v45  ;;  %v493_v2 = vshll.u32 %v2872_v48, 16  ;;  %v701_v31 = vshll.u32 %v2949_v30, 16 }
  0x7b   : > { %1229 = vrot.lane.b32.xlu1 %v3005_v23, %s2498_s23  ;;  %v687_v40 = vrot.slane %v3752_v37, 5  ;;  %v501_v17 = vrot.slane %v499_v18, 5  ;;  %v509_v10 = vshll.u32 %v2964_v22, 16 }
  0x7c   : > { %v698_v59 = vor.u32 %v697_v33, %v693_v63  ;;  %v495_v14 = vrot.slane %v493_v2, 5  ;;  %v703_v39 = vrot.slane %v701_v31, 5 }
  0x7d   : > { %v688_v47 = vor.u32 %v687_v40, %v684_v7  ;;  %v511_v25 = vrot.slane %v509_v10, 5 }
  0x7e   : > { %1211 = vrot.lane.b32.xlu0 %v2916_v57, %s2498_s23  ;;  %v3189_v57 = vcombine.low %v2980_v52, %v3035_v53  ;;  %v919_v52 = vsel %vm2579_vm5, %v917_v11, %v918_v58  ;;  %v490_v53 = vshrl.u32 %v2872_v48, 16  ;;  %v505_v48 = vrot.slane %v503_v32, 4 }
  0x7f   : > { %1303 = vrot.lane.b32.xlu1 %v2934_v20, %s2499_s24  ;;  %v916_v20 = vsel %vm2579_vm5, %v2230_v13, %v3753_v44  ;;  %v689_v41 = vrot.slane %v688_v47, 4  ;;  %v699_v26 = vrot.slane %v698_v59, 4 }
  0x80   : > { %v3212_v9 = vcombine.low %v916_v20, %v919_v52  ;;  %v492_v61 = vrot.slane %v490_v53, 4  ;;  %v506_v30 = vor.u32 %v505_v48, %v501_v17 }
  0x81   : > { %v704_v24 = vsel %vm2624_vm6, %v699_v26, %v703_v39 }
  0x82   : > { %1213 = vrot.lane.b32.xlu0 %v3179_v35, %s2498_s23  ;;  %v507_v36 = vrot.slane %v506_v30, 4 }
  0x83   : > { %1305 = vrot.lane.b32.xlu1 %v3189_v57, %s2499_s24 }
  0x86   : > { %1287 = vrot.lane.b32.xlu0 %v2940_v62, %s2499_s24  ;;  %v496_v62 = vor.u32 %v495_v14, %v492_v61  ;;  %v3754_v61 = vld [vmem:[#allocation9_spill] sm:$0xff] }
  0x87   : > { %1373 = vrot.lane.b32.xlu1 %v2813_v6, %s2500_s25  ;;  %v694_v6 = vsel %vm2624_vm6, %v689_v41, %v693_v63 }
  0x88   : > { %v3229_v0 = vcombine.low %v694_v6, %v704_v24  ;;  %v497_v1 = vrot.slane %v496_v62, 4  ;;  %v3364_v6 = vld [vmem:[%s2547_s19 + $0xc4] sm:$0xf] }
  0x89   : > { %v1132_v28 = vpop.permute.xlu1 %1131 }
  0x8a   : > { %1289 = vrot.lane.b32.xlu0 %v3212_v9, %s2499_s24  ;;  %v502_v22 = vsel %vm2624_vm6, %v497_v1, %v501_v17  ;;  %v1194_v1 = vshrl.u32 %v3364_v6, 16 }
  0x8b   : > { %1375 = vrot.lane.b32.xlu1 %v2877_v5, %s2500_s25  ;;  %v1116_v4 = vpop.permute.xlu0 %1115 }
  0x8e   : > { %1357 = vrot.lane.b32.xlu0 %v2836_v46, %s2500_s25  ;;  %v512_v46 = vsel %vm2624_vm6, %v507_v36, %v511_v25  ;;  %v1190_v36 = vshll.u32 %v3364_v6, 16 }
  0x8f   : > { %1465 = vrot.lane.b32.xlu1 %v3005_v23, %s2501_s26  ;;  %v3241_v13 = vcombine.low %v502_v22, %v512_v46 }
  0x90   : > { %v1192_v46 = vrot.slane %v1190_v36, 5 }
  0x91   : > { %v1062_v54 = vpop.permute.xlu1 %1061 }
  0x92   : > { %1359 = vrot.lane.b32.xlu0 %v2908_v43, %s2500_s25 }
  0x93   : > { %1467 = vrot.lane.b32.xlu1 %v3229_v0, %s2501_s26  ;;  %v1046_v60 = vpop.permute.xlu0 %1045 }
  0x95   : > { %v1064_v50 = vpop.permute.xlu1 %1063 }
  0x96   : > { %1449 = vrot.lane.b32.xlu0 %v3179_v35, %s2501_s26 }
  0x97   : > { %1541 = vrot.lane.b32.xlu1 %v3189_v57, %s2502_s29  ;;  %v1048_v45 = vpop.permute.xlu0 %1047 }
  0x9a   : > { %1451 = vrot.lane.b32.xlu0 %v3241_v13, %s2501_s26  ;;  %v804_v11 = vpop.permute.xlu1 %803 }
  0x9b   : > { %825 = vrot.lane.b32.xlu1 %v3005_v23, %s2497_s22  ;;  %851 = vst.msk [vmem:[#allocation2 + $0x8] sm:$0xff] %vm849_vm8, %v804_v11 }
  0x9c   : > { %1095 = vst.msk [vmem:[#allocation2 + $0x8] sm:$0xff] %vm1093_vm9, %v1048_v45 }
  0x9e   : > { %1525 = vrot.lane.b32.xlu0 %v3212_v9, %s2502_s29 }
  0x9f   : > { %v802_v58 = vpop.permute.xlu0 %801  ;;  %1543 = vrot.lane.b32.xlu1 %v3009_v19, %s2502_s29 }
  0xa0   : > { %850 = vst.msk [vmem:[#allocation2] sm:$0xff] %vm849_vm8, %v802_v58 }
  0xa1   : > { %1094 = vst.msk [vmem:[#allocation2] sm:$0xff] %vm1093_vm9, %v1046_v60  ;;  %v820_v34 = vpop.permute.xlu1 %819  ;;  %v1196_v60 = vrot.slane %v1194_v1, 4 }
  0xa2   : > { %809 = vrot.lane.b32.xlu0 %v3179_v35, %s2497_s22  ;;  %859 = vst.msk [vmem:[#allocation2 + $0x48] sm:$0xff] %vm849_vm8, %v820_v34 }
  0xa3   : > { %1164 = vst.msk [vmem:[#allocation2] sm:$0xff] %vm1163_vm10, %v1116_v4  ;;  %827 = vrot.lane.b32.xlu1 %v3229_v0, %s2497_s22 }
  0xa4   : > { %1103 = vst.msk [vmem:[#allocation2 + $0x48] sm:$0xff] %vm1093_vm9, %v1064_v50 }
  0xa5   : > { %v1134_v23 = vpop.permute.xlu1 %1133 }
  0xa6   : > { %1527 = vrot.lane.b32.xlu0 %v3015_v55, %s2502_s29  ;;  %1173 = vst.msk [vmem:[#allocation2 + $0x48] sm:$0xff] %vm1163_vm10, %v1134_v23 }
  0xa7   : > { %1069 = vrot.lane.b32.xlu1 %v3189_v57, %s2496_s21 }
  0xa8   : > { %v818_v7 = vpop.permute.xlu0 %817 }
  0xa9   : > { %858 = vst.msk [vmem:[#allocation2 + $0x40] sm:$0xff] %vm849_vm8, %v818_v7  ;;  %v1224_v35 = vpop.permute.xlu1 %1223 }
  0xaa   : > { %1102 = vst.msk [vmem:[#allocation2 + $0x40] sm:$0xff] %vm1093_vm9, %v1062_v54  ;;  %811 = vrot.lane.b32.xlu0 %v3241_v13, %s2497_s22 }
  0xab   : > { %1172 = vst.msk [vmem:[#allocation2 + $0x40] sm:$0xff] %vm1163_vm10, %v1132_v28  ;;  %1071 = vrot.lane.b32.xlu1 %v3009_v19, %s2496_s21 }
  0xac   : > { %v1118_v37 = vpop.permute.xlu0 %1117  ;;  %1264 = vst.msk [vmem:[#allocation2 + $0x40] sm:$0xff] %vm1255_vm11, %v1224_v35 }
  0xad   : > { %1165 = vst.msk [vmem:[#allocation2 + $0x8] sm:$0xff] %vm1163_vm10, %v1118_v37  ;;  %v1226_v57 = vpop.permute.xlu1 %1225 }
  0xae   : > { %1053 = vrot.lane.b32.xlu0 %v3212_v9, %s2496_s21  ;;  %1265 = vst.msk [vmem:[#allocation2 + $0x48] sm:$0xff] %vm1255_vm11, %v1226_v57 }
  0xaf   : > { %1139 = vrot.lane.b32.xlu1 %v2877_v5, %s2495_s20 }
  0xb0   : > { %v1208_v40 = vpop.permute.xlu0 %1207 }
  0xb1   : > { %1256 = vst.msk [vmem:[#allocation2] sm:$0xff] %vm1255_vm11, %v1208_v40  ;;  %v1300_v63 = vpop.permute.xlu1 %1299 }
  0xb2   : > { %1055 = vrot.lane.b32.xlu0 %v3015_v55, %s2496_s21  ;;  %1340 = vst.msk [vmem:[#allocation2 + $0x40] sm:$0xff] %vm1331_vm12, %v1300_v63 }
  0xb3   : > { %1141 = vrot.lane.b32.xlu1 %v3020_v12, %s2495_s20 }
  0xb4   : > { %v1210_v33 = vpop.permute.xlu0 %1209 }
  0xb5   : > { %1257 = vst.msk [vmem:[#allocation2 + $0x8] sm:$0xff] %vm1255_vm11, %v1210_v33  ;;  %v1302_v44 = vpop.permute.xlu1 %1301 }
  0xb6   : > { %1123 = vrot.lane.b32.xlu0 %v2908_v43, %s2495_s20  ;;  %1341 = vst.msk [vmem:[#allocation2 + $0x48] sm:$0xff] %vm1331_vm12, %v1302_v44 }
  0xb7   : > { %1231 = vrot.lane.b32.xlu1 %v3229_v0, %s2498_s23 }
  0xb8   : > { %v1284_v5 = vpop.permute.xlu0 %1283 }
  0xb9   : > { %1332 = vst.msk [vmem:[#allocation2] sm:$0xff] %vm1331_vm12, %v1284_v5  ;;  %v1370_v20 = vpop.permute.xlu1 %1369 }
  0xba   : > { %1125 = vrot.lane.b32.xlu0 %v3029_v49, %s2495_s20  ;;  %1410 = vst.msk [vmem:[#allocation2 + $0x40] sm:$0xff] %vm1401_vm13, %v1370_v20 }
  0xbb   : > { %1233 = vrot.lane.b32.xlu1 %v3083_v29, %s2498_s23 }
  0xbc   : > { %v1286_v52 = vpop.permute.xlu0 %1285 }
  0xbd   : > { %1333 = vst.msk [vmem:[#allocation2 + $0x8] sm:$0xff] %vm1331_vm12, %v1286_v52  ;;  %v1372_v43 = vpop.permute.xlu1 %1371 }
  0xbe   : > { %1215 = vrot.lane.b32.xlu0 %v3241_v13, %s2498_s23  ;;  %1411 = vst.msk [vmem:[#allocation2 + $0x48] sm:$0xff] %vm1401_vm13, %v1372_v43  ;;  %v249_v13 = vld [vmem:[%s2547_s19 + $0xc8] sm:$0x1] }
  0xbf   : > { %1307 = vrot.lane.b32.xlu1 %v3009_v19, %s2499_s24  ;;  %v1200_v58 = vshll.u32 %v249_v13, 16  ;;  %v1278_v43 = vrot.slane %v249_v13, 5 }
  0xc0   : > { %v1354_v53 = vpop.permute.xlu0 %1353 }
  0xc1   : > { %1402 = vst.msk [vmem:[#allocation2] sm:$0xff] %vm1401_vm13, %v1354_v53  ;;  %v1462_v2 = vpop.permute.xlu1 %1461  ;;  %v1202_v57 = vrot.slane %v1200_v58, 5  ;;  %v3758_v58 = vld [vmem:[#allocation3_spill] sm:$0xff] }
  0xc2   : > { %1217 = vrot.lane.b32.xlu0 %v3095_v38, %s2498_s23  ;;  %1502 = vst.msk [vmem:[#allocation2 + $0x40] sm:$0xff] %vm1493_vm14, %v1462_v2 }
  0xc3   : > { %1309 = vrot.lane.b32.xlu1 %v3087_v15, %s2499_s24 }
  0xc4   : > { %v1356_v32 = vpop.permute.xlu0 %1355 }
  0xc5   : > { %1403 = vst.msk [vmem:[#allocation2 + $0x8] sm:$0xff] %vm1401_vm13, %v1356_v32  ;;  %v1464_v18 = vpop.permute.xlu1 %1463  ;;  %v3420_v32 = vld [vmem:[%s2547_s19 + $0xcc] sm:$0xf] }
  0xc6   : > { %1291 = vrot.lane.b32.xlu0 %v3015_v55, %s2499_s24  ;;  %1503 = vst.msk [vmem:[#allocation2 + $0x48] sm:$0xff] %vm1493_vm14, %v1464_v18  ;;  %v3423_v18 = vld [vmem:[%s2547_s19 + $0xd0] sm:$0xf]  ;;  %v2264_v13 = vrot.slane %v3420_v32, 9 }
  0xc7   : > { %1377 = vrot.lane.b32.xlu1 %v3020_v12, %s2500_s25 }
  0xc8   : > { %v1446_v19 = vpop.permute.xlu0 %1445 }
  0xc9   : > { %1494 = vst.msk [vmem:[#allocation2] sm:$0xff] %vm1493_vm14, %v1446_v19  ;;  %v1538_v47 = vpop.permute.xlu1 %1537  ;;  %v3755_v19 = vld [vmem:[#allocation8_spill] sm:$0xff] }
  0xca   : > { %1293 = vrot.lane.b32.xlu0 %v3104_v27, %s2499_s24  ;;  %1578 = vst.msk [vmem:[#allocation2 + $0x40] sm:$0xff] %vm1569_vm15, %v1538_v47 }
  0xcb   : > { %1379 = vrot.lane.b32.xlu1 %v3091_v3, %s2500_s25 }
  0xcc   : > { %v1448_v59 = vpop.permute.xlu0 %1447 }
  0xcd   : > { %1495 = vst.msk [vmem:[#allocation2 + $0x8] sm:$0xff] %vm1493_vm14, %v1448_v59  ;;  %v822_v55 = vpop.permute.xlu1 %821 }
  0xce   : > { %1361 = vrot.lane.b32.xlu0 %v3029_v49, %s2500_s25  ;;  %860 = vst.msk [vmem:[#allocation2 + $0x50] sm:$0xff] %vm849_vm8, %v822_v55  ;;  %v1419_v55 = vshrl.u32 %v3420_v32, 16 }
  0xcf   : > { %1469 = vrot.lane.b32.xlu1 %v3083_v29, %s2501_s26 }
  0xd0   : > { %v1522_v12 = vpop.permute.xlu0 %1521 }
  0xd1   : > { %1570 = vst.msk [vmem:[#allocation2] sm:$0xff] %vm1569_vm15, %v1522_v12  ;;  %v1540_v31 = vpop.permute.xlu1 %1539  ;;  %v1594_v9 = vld [vmem:[#allocation2 + $0x40] sm:$0xff]  ;;  %v1422_v12 = vshll.u32 %v3420_v32, 16 }
  0xd2   : > { %1363 = vrot.lane.b32.xlu0 %v3754_v61, %s2500_s25  ;;  %1579 = vst.msk [vmem:[#allocation2 + $0x48] sm:$0xff] %vm1569_vm15, %v1540_v31  ;;  %2395 = vmatprep.mubr.msk.bf16.mxu1 %vm1622_vm0, %v1594_v9  ;;  %v1432_v31 = vshrl.u32 %v3423_v18, 16  ;;  %v1428_v9 = vshll.u32 %v3423_v18, 16 }
  0xd3   : > { %1471 = vrot.lane.b32.xlu1 %v3157_v42, %s2501_s26 }
  0xd4   : > { %v806_v49 = vpop.permute.xlu0 %805 }
  0xd5   : > { %852 = vst.msk [vmem:[#allocation2 + $0x10] sm:$0xff] %vm849_vm8, %v806_v49  ;;  %v824_v14 = vpop.permute.xlu1 %823 }
  0xd6   : > { %1453 = vrot.lane.b32.xlu0 %v3095_v38, %s2501_s26  ;;  %861 = vst.msk [vmem:[#allocation2 + $0x58] sm:$0xff] %vm849_vm8, %v824_v14 }
  0xd7   : > { %1545 = vrot.lane.b32.xlu1 %v3087_v15, %s2502_s29 }
  0xd8   : > { %v1524_v17 = vpop.permute.xlu0 %1523  ;;  %v1586_v48 = vld [vmem:[#allocation2] sm:$0xff] }
  0xd9   : > { %1571 = vst.msk [vmem:[#allocation2 + $0x8] sm:$0xff] %vm1569_vm15, %v1524_v17  ;;  %2379 = vmatprep.mubr.msk.bf16.mxu0 %vm1622_vm0, %v1586_v48  ;;  %v1066_v41 = vpop.permute.xlu1 %1065  ;;  %v1595_v26 = vld [vmem:[#allocation2 + $0x48] sm:$0xff]  ;;  %v1421_v17 = vrot.slane %v1419_v55, 4  ;;  %v1424_v48 = vrot.slane %v1422_v12, 5 }
  0xda   : > { %1455 = vrot.lane.b32.xlu0 %v3164_v56, %s2501_s26  ;;  %1104 = vst.msk [vmem:[#allocation2 + $0x50] sm:$0xff] %vm1093_vm9, %v1066_v41  ;;  %2396 = vmatmul.mubr.msk.bf16.vlgmr.msra.gmra.mrb[0].mxu1 %vm1622_vm0, %v1595_v26  ;;  %v1430_v41 = vrot.slane %v1428_v9, 5  ;;  %v1434_v26 = vrot.slane %v1432_v31, 4 }
  0xdb   : > { %829 = vrot.lane.b32.xlu1 %v3083_v29, %s2497_s22  ;;  %v3361_v29 = vld [vmem:[%s2547_s19 + $0xc0] sm:$0xf] }
  0xdc   : > { %v808_v39 = vpop.permute.xlu0 %807  ;;  %v1181_v4 = vshrl.u32 %v3361_v29, 16  ;;  %v1184_v0 = vshll.u32 %v3361_v29, 16  ;;  %v3396_v23 = vcombine.low %v3361_v29, %v3364_v6  ;;  %v2260_v20 = vrot.slane %v3361_v29, 9 }
  0xdd   : > { %853 = vst.msk [vmem:[#allocation2 + $0x18] sm:$0xff] %vm849_vm8, %v808_v39  ;;  %v1068_v28 = vpop.permute.xlu1 %1067 }
  0xde   : > { %1529 = vrot.lane.b32.xlu0 %v3104_v27, %s2502_s29  ;;  %1105 = vst.msk [vmem:[#allocation2 + $0x58] sm:$0xff] %vm1093_vm9, %v1068_v28  ;;  %v1183_v54 = vrot.slane %v1181_v4, 4  ;;  %v1186_v22 = vrot.slane %v1184_v0, 5  ;;  %v252_v28 = vld [vmem:[%s2547_s19 + $0xd4] sm:$0x1] }
  0xdf   : > { %1547 = vrot.lane.b32.xlu1 %v3166_v21, %s2502_s29  ;;  %v1516_v51 = vrot.slane %v252_v28, 5 }
  0xe0   : > { %v1050_v62 = vpop.permute.xlu0 %1049  ;;  %v1587_v30 = vld [vmem:[#allocation2 + $0x8] sm:$0xff]  ;;  %v1187_v11 = vor.u32 %v1186_v22, %v1183_v54  ;;  %v1513_v22 = vrot.slane %v3423_v18, 5 }
  0xe1   : > { %1096 = vst.msk [vmem:[#allocation2 + $0x10] sm:$0xff] %vm1093_vm9, %v1050_v62  ;;  %2380 = vmatmul.mubr.msk.bf16.vlgmr.msra.gmra.mrb[0].mxu0 %vm1622_vm0, %v1587_v30  ;;  %v1136_v10 = vpop.permute.xlu1 %1135  ;;  %v3756_v62 = vld [vmem:[#allocation7_spill] sm:$0xff]  ;;  %v1425_v30 = vor.u32 %v1424_v48, %v1421_v17 }
  0xe2   : > { %813 = vrot.lane.b32.xlu0 %v3095_v38, %s2497_s22  ;;  %1174 = vst.msk [vmem:[#allocation2 + $0x50] sm:$0xff] %vm1163_vm10, %v1136_v10  ;;  %v1188_v35 = vrot.slane %v1187_v11, 4  ;;  %v1438_v10 = vshll.u32 %v252_v28, 16 }
  0xe3   : > { %831 = vrot.lane.b32.xlu1 %v3157_v42, %s2497_s22  ;;  %v1426_v4 = vrot.slane %v1425_v30, 4 }
  0xe4   : > { %v1052_v24 = vpop.permute.xlu0 %1051  ;;  %v1193_v63 = vsel %vm2624_vm6, %v1188_v35, %v1192_v46  ;;  %v1440_v1 = vrot.slane %v1438_v10, 5 }
  0xe5   : > { %1097 = vst.msk [vmem:[#allocation2 + $0x18] sm:$0xff] %vm1093_vm9, %v1052_v24  ;;  %v1138_v25 = vpop.permute.xlu1 %1137 }
  0xe6   : > { %1531 = vrot.lane.b32.xlu0 %v3170_v8, %s2502_s29  ;;  %1175 = vst.msk [vmem:[#allocation2 + $0x58] sm:$0xff] %vm1163_vm10, %v1138_v25  ;;  %v3757_v25 = vld [vmem:[#allocation4_spill] sm:$0xff] }
  0xe7   : > { %1073 = vrot.lane.b32.xlu1 %v3087_v15, %s2496_s21  ;;  %v1197_v15 = vor.u32 %v1196_v60, %v1192_v46 }
  0xe8   : > { %v1120_v38 = vpop.permute.xlu0 %1119 }
  0xe9   : > { %1166 = vst.msk [vmem:[#allocation2 + $0x10] sm:$0xff] %vm1163_vm10, %v1120_v38  ;;  %v1228_v50 = vpop.permute.xlu1 %1227  ;;  %v1198_v37 = vrot.slane %v1197_v15, 4  ;;  %v1431_v38 = vsel %vm2624_vm6, %v1426_v4, %v1430_v41 }
  0xea   : > { %815 = vrot.lane.b32.xlu0 %v3164_v56, %s2497_s22  ;;  %1266 = vst.msk [vmem:[#allocation2 + $0x50] sm:$0xff] %vm1255_vm11, %v1228_v50 }
  0xeb   : > { %1075 = vrot.lane.b32.xlu1 %v3166_v21, %s2496_s21  ;;  %v1203_v33 = vsel %vm2624_vm6, %v1198_v37, %v1202_v57 }
  0xec   : > { %v1122_v45 = vpop.permute.xlu0 %1121  ;;  %v3415_v5 = vcombine.low %v1193_v63, %v1203_v33 }
  0xed   : > { %1167 = vst.msk [vmem:[#allocation2 + $0x18] sm:$0xff] %vm1163_vm10, %v1122_v45  ;;  %v1230_v34 = vpop.permute.xlu1 %1229  ;;  %v1515_v45 = vrot.slane %v1513_v22, 4 }
  0xee   : > { %1057 = vrot.lane.b32.xlu0 %v3104_v27, %s2496_s21  ;;  %1267 = vst.msk [vmem:[#allocation2 + $0x58] sm:$0xff] %vm1255_vm11, %v1230_v34 }
  0xef   : > { %1143 = vrot.lane.b32.xlu1 %v3091_v3, %s2495_s20  ;;  %v1275_v3 = vrot.slane %v3364_v6, 5  ;;  %v2262_v6 = vcombine.low %v3420_v32, %v3423_v18 }
  0xf0   : > { %v1212_v7 = vpop.permute.xlu0 %1211 }
  0xf1   : > { %1258 = vst.msk [vmem:[#allocation2 + $0x10] sm:$0xff] %vm1255_vm11, %v1212_v7  ;;  %v1304_v40 = vpop.permute.xlu1 %1303  ;;  %v1277_v52 = vrot.slane %v1275_v3, 4  ;;  %v1517_v7 = vsel %vm2579_vm5, %v1515_v45, %v1516_v51 }
  0xf2   : > { %1059 = vrot.lane.b32.xlu0 %v3170_v8, %s2496_s21  ;;  %1342 = vst.msk [vmem:[#allocation2 + $0x50] sm:$0xff] %vm1331_vm12, %v1304_v40 }
  0xf3   : > { %1145 = vrot.lane.b32.xlu1 %v3396_v23, %s2495_s20  ;;  %v1279_v47 = vsel %vm2579_vm5, %v1277_v52, %v1278_v43  ;;  %v3760_v52 = vld [vmem:[#allocation5_spill] sm:$0xff] }
  0xf4   : > { %v1214_v27 = vpop.permute.xlu0 %1213 }
  0xf5   : > { %1259 = vst.msk [vmem:[#allocation2 + $0x18] sm:$0xff] %vm1255_vm11, %v1214_v27  ;;  %v1306_v44 = vpop.permute.xlu1 %1305  ;;  %v3759_v27 = vld [vmem:[#allocation6_spill] sm:$0xff] }
  0xf6   : > { %1127 = vrot.lane.b32.xlu0 %v3754_v61, %s2495_s20  ;;  %1343 = vst.msk [vmem:[#allocation2 + $0x58] sm:$0xff] %vm1331_vm12, %v1306_v44 }
  0xf7   : > { %1235 = vrot.lane.b32.xlu1 %v3157_v42, %s2498_s23  ;;  %v1276_v42 = vsel %vm2579_vm5, %v2260_v20, %v1275_v3 }
  0xf8   : > { %v1288_v53 = vpop.permute.xlu0 %1287  ;;  %v2261_v49 = vcombine.low %v1276_v42, %v1279_v47 }
  0xf9   : > { %1334 = vst.msk [vmem:[#allocation2 + $0x10] sm:$0xff] %vm1331_vm12, %v1288_v53  ;;  %v1374_v2 = vpop.permute.xlu1 %1373 }
  0xfa   : > { %1129 = vrot.lane.b32.xlu0 %v3755_v19, %s2495_s20  ;;  %1412 = vst.msk [vmem:[#allocation2 + $0x50] sm:$0xff] %vm1401_vm13, %v1374_v2 }
  0xfb   : > { %1237 = vrot.lane.b32.xlu1 %v3415_v5, %s2498_s23 }
  0xfc   : > { %v1290_v59 = vpop.permute.xlu0 %1289 }
  0xfd   : > { %1335 = vst.msk [vmem:[#allocation2 + $0x18] sm:$0xff] %vm1331_vm12, %v1290_v59  ;;  %v1376_v61 = vpop.permute.xlu1 %1375 }
  0xfe   : > { %1219 = vrot.lane.b32.xlu0 %v3164_v56, %s2498_s23  ;;  %1413 = vst.msk [vmem:[#allocation2 + $0x58] sm:$0xff] %vm1401_vm13, %v1376_v61 }
  0xff   : > { %1311 = vrot.lane.b32.xlu1 %v3166_v21, %s2499_s24  ;;  %v1435_v21 = vor.u32 %v1434_v26, %v1430_v41 }
 0x100   : > { %v1358_v14 = vpop.permute.xlu0 %1357 }
 0x101   : > { %1404 = vst.msk [vmem:[#allocation2 + $0x10] sm:$0xff] %vm1401_vm13, %v1358_v14  ;;  %v1466_v39 = vpop.permute.xlu1 %1465  ;;  %v1436_v0 = vrot.slane %v1435_v21, 4 }
 0x102   : > { %1221 = vrot.lane.b32.xlu0 %v3756_v62, %s2498_s23  ;;  %1504 = vst.msk [vmem:[#allocation2 + $0x50] sm:$0xff] %vm1493_vm14, %v1466_v39 }
 0x103   : > { %1313 = vrot.lane.b32.xlu1 %v2261_v49, %s2499_s24  ;;  %v1441_v54 = vsel %vm2624_vm6, %v1436_v0, %v1440_v1 }
 0x104   : > { %v1360_v56 = vpop.permute.xlu0 %1359  ;;  %v2263_v60 = vcombine.low %v1431_v38, %v1441_v54 }
 0x105   : > { %1405 = vst.msk [vmem:[#allocation2 + $0x18] sm:$0xff] %vm1401_vm13, %v1360_v56  ;;  %v1468_v29 = vpop.permute.xlu1 %1467 }
 0x106   : > { %1295 = vrot.lane.b32.xlu0 %v3170_v8, %s2499_s24  ;;  %1505 = vst.msk [vmem:[#allocation2 + $0x58] sm:$0xff] %vm1493_vm14, %v1468_v29 }
 0x107   : > { %1381 = vrot.lane.b32.xlu1 %v3396_v23, %s2500_s25  ;;  %v1514_v23 = vsel %vm2579_vm5, %v2264_v13, %v1513_v22 }
 0x108   : > { %v1450_v24 = vpop.permute.xlu0 %1449  ;;  %v2265_v37 = vcombine.low %v1514_v23, %v1517_v7 }
 0x109   : > { %1496 = vst.msk [vmem:[#allocation2 + $0x10] sm:$0xff] %vm1493_vm14, %v1450_v24  ;;  %v1542_v36 = vpop.permute.xlu1 %1541 }
 0x10a   : > { %1297 = vrot.lane.b32.xlu0 %v3757_v25, %s2499_s24  ;;  %1580 = vst.msk [vmem:[#allocation2 + $0x50] sm:$0xff] %vm1569_vm15, %v1542_v36 }
 0x10b   : > { %1383 = vrot.lane.b32.xlu1 %v2262_v6, %s2500_s25 }
 0x10c   : > { %v1452_v8 = vpop.permute.xlu0 %1451 }
 0x10d   : > { %1497 = vst.msk [vmem:[#allocation2 + $0x18] sm:$0xff] %vm1493_vm14, %v1452_v8  ;;  %v826_v46 = vpop.permute.xlu1 %825 }
 0x10e   : > { %1365 = vrot.lane.b32.xlu0 %v3755_v19, %s2500_s25  ;;  %862 = vst.msk [vmem:[#allocation2 + $0x60] sm:$0xff] %vm849_vm8, %v826_v46 }
 0x10f   : > { %1473 = vrot.lane.b32.xlu1 %v3415_v5, %s2501_s26 }
 0x110   : > { %v1526_v50 = vpop.permute.xlu0 %1525 }
 0x111   : > { %1572 = vst.msk [vmem:[#allocation2 + $0x10] sm:$0xff] %vm1569_vm15, %v1526_v50  ;;  %v1544_v11 = vpop.permute.xlu1 %1543  ;;  %v1596_v15 = vld [vmem:[#allocation2 + $0x50] sm:$0xff] }
 0x112   : > { %1367 = vrot.lane.b32.xlu0 %v3758_v58, %s2500_s25  ;;  %1581 = vst.msk [vmem:[#allocation2 + $0x58] sm:$0xff] %vm1569_vm15, %v1544_v11  ;;  %2399 = vmatprep.mubr.msk.bf16.mxu1 %vm1622_vm0, %v1596_v15 }
 0x113   : > { %1475 = vrot.lane.b32.xlu1 %v2263_v60, %s2501_s26 }
 0x114   : > { %v810_v34 = vpop.permute.xlu0 %809 }
 0x115   : > { %854 = vst.msk [vmem:[#allocation2 + $0x20] sm:$0xff] %vm849_vm8, %v810_v34  ;;  %v828_v35 = vpop.permute.xlu1 %827 }
 0x116   : > { %1457 = vrot.lane.b32.xlu0 %v3756_v62, %s2501_s26  ;;  %863 = vst.msk [vmem:[#allocation2 + $0x68] sm:$0xff] %vm849_vm8, %v828_v35 }
 0x117   : > { %1549 = vrot.lane.b32.xlu1 %v2261_v49, %s2502_s29 }
 0x118   : > { %v1528_v57 = vpop.permute.xlu0 %1527  ;;  %v1588_v40 = vld [vmem:[#allocation2 + $0x10] sm:$0xff] }
 0x119   : > { %1573 = vst.msk [vmem:[#allocation2 + $0x18] sm:$0xff] %vm1569_vm15, %v1528_v57  ;;  %2383 = vmatprep.mubr.msk.bf16.mxu0 %vm1622_vm0, %v1588_v40  ;;  %v1070_v3 = vpop.permute.xlu1 %1069  ;;  %v1597_v16 = vld [vmem:[#allocation2 + $0x58] sm:$0xff] }
 0x11a   : > { %1459 = vrot.lane.b32.xlu0 %v3759_v27, %s2501_s26  ;;  %1106 = vst.msk [vmem:[#allocation2 + $0x60] sm:$0xff] %vm1093_vm9, %v1070_v3  ;;  %2400 = vmatmul.mubr.msk.bf16.gmra.mrb[4].mxu1 %vm1622_vm0, %v1597_v16 }
 0x11b   : > { %1551 = vrot.lane.b32.xlu1 %v2265_v37, %s2502_s29 }
 0x11c   : > { %v812_v63 = vpop.permute.xlu0 %811 }
 0x11d   : > { %855 = vst.msk [vmem:[#allocation2 + $0x28] sm:$0xff] %vm849_vm8, %v812_v63  ;;  %v1072_v33 = vpop.permute.xlu1 %1071 }
 0x11e   : > { %1533 = vrot.lane.b32.xlu0 %v3757_v25, %s2502_s29  ;;  %1107 = vst.msk [vmem:[#allocation2 + $0x68] sm:$0xff] %vm1093_vm9, %v1072_v33 }
 0x120   : > { %v1054_v44 = vpop.permute.xlu0 %1053  ;;  %v1589_v5 = vld [vmem:[#allocation2 + $0x18] sm:$0xff] }
 0x121   : > { %1098 = vst.msk [vmem:[#allocation2 + $0x20] sm:$0xff] %vm1093_vm9, %v1054_v44  ;;  %2384 = vmatmul.mubr.msk.bf16.gmra.mrb[4].mxu0 %vm1622_vm0, %v1589_v5  ;;  %v1140_v20 = vpop.permute.xlu1 %1139 }
 0x122   : > { %1535 = vrot.lane.b32.xlu0 %v3760_v52, %s2502_s29  ;;  %1176 = vst.msk [vmem:[#allocation2 + $0x60] sm:$0xff] %vm1163_vm10, %v1140_v20 }
 0x124   : > { %v1056_v43 = vpop.permute.xlu0 %1055 }
 0x125   : > { %1099 = vst.msk [vmem:[#allocation2 + $0x28] sm:$0xff] %vm1093_vm9, %v1056_v43  ;;  %v1142_v53 = vpop.permute.xlu1 %1141  ;;  %v3573_v43 = vld [vmem:[%s3725_s2] ss:$0 sm:$0xff] }
 0x126   : > { %1177 = vst.msk [vmem:[#allocation2 + $0x68] sm:$0xff] %vm1163_vm10, %v1142_v53  ;;  %v3578_v53 = vld [vmem:[%s3725_s2 + $0x1] ss:$0 sm:$0xff] }
 0x128   : > { %v1124_v2 = vpop.permute.xlu0 %1123 }
 0x129   : > { %1168 = vst.msk [vmem:[#allocation2 + $0x20] sm:$0xff] %vm1163_vm10, %v1124_v2  ;;  %v1232_v32 = vpop.permute.xlu1 %1231 }
 0x12a   : > { %1268 = vst.msk [vmem:[#allocation2 + $0x60] sm:$0xff] %vm1255_vm11, %v1232_v32 }
 0x12c   : > { %v1126_v18 = vpop.permute.xlu0 %1125 }
 0x12d   : > { %1169 = vst.msk [vmem:[#allocation2 + $0x28] sm:$0xff] %vm1163_vm10, %v1126_v18  ;;  %v1234_v19 = vpop.permute.xlu1 %1233 }
 0x12e   : > { %1269 = vst.msk [vmem:[#allocation2 + $0x68] sm:$0xff] %vm1255_vm11, %v1234_v19 }
 0x130   : > { %v1216_v42 = vpop.permute.xlu0 %1215 }
 0x131   : > { %1260 = vst.msk [vmem:[#allocation2 + $0x20] sm:$0xff] %vm1255_vm11, %v1216_v42  ;;  %v1308_v47 = vpop.permute.xlu1 %1307 }
 0x132   : > { %1344 = vst.msk [vmem:[#allocation2 + $0x60] sm:$0xff] %vm1331_vm12, %v1308_v47 }
 0x134   : > { %v1218_v59 = vpop.permute.xlu0 %1217 }
 0x135   : > { %1261 = vst.msk [vmem:[#allocation2 + $0x28] sm:$0xff] %vm1255_vm11, %v1218_v59  ;;  %v1310_v55 = vpop.permute.xlu1 %1309 }
 0x136   : > { %1345 = vst.msk [vmem:[#allocation2 + $0x68] sm:$0xff] %vm1331_vm12, %v1310_v55 }
 0x138   : > { %v1292_v12 = vpop.permute.xlu0 %1291 }
 0x139   : > { %1336 = vst.msk [vmem:[#allocation2 + $0x20] sm:$0xff] %vm1331_vm12, %v1292_v12  ;;  %v1378_v31 = vpop.permute.xlu1 %1377 }
 0x13a   : > { %1414 = vst.msk [vmem:[#allocation2 + $0x60] sm:$0xff] %vm1401_vm13, %v1378_v31 }
 0x13c   : > { %v1294_v9 = vpop.permute.xlu0 %1293 }
 0x13d   : > { %1337 = vst.msk [vmem:[#allocation2 + $0x28] sm:$0xff] %vm1331_vm12, %v1294_v9  ;;  %v1380_v61 = vpop.permute.xlu1 %1379 }
 0x13e   : > { %1415 = vst.msk [vmem:[#allocation2 + $0x68] sm:$0xff] %vm1401_vm13, %v1380_v61 }
 0x140   : > { %v1362_v49 = vpop.permute.xlu0 %1361 }
 0x141   : > { %1406 = vst.msk [vmem:[#allocation2 + $0x20] sm:$0xff] %vm1401_vm13, %v1362_v49  ;;  %v1470_v14 = vpop.permute.xlu1 %1469 }
 0x142   : > { %1506 = vst.msk [vmem:[#allocation2 + $0x60] sm:$0xff] %vm1493_vm14, %v1470_v14 }
 0x144   : > { %v1364_v17 = vpop.permute.xlu0 %1363 }
 0x145   : > { %1407 = vst.msk [vmem:[#allocation2 + $0x28] sm:$0xff] %vm1401_vm13, %v1364_v17  ;;  %v1472_v48 = vpop.permute.xlu1 %1471 }
 0x146   : > { %1507 = vst.msk [vmem:[#allocation2 + $0x68] sm:$0xff] %vm1493_vm14, %v1472_v48 }
 0x148   : > { %v1454_v41 = vpop.permute.xlu0 %1453 }
 0x149   : > { %1498 = vst.msk [vmem:[#allocation2 + $0x20] sm:$0xff] %vm1493_vm14, %v1454_v41  ;;  %v1546_v26 = vpop.permute.xlu1 %1545 }
 0x14a   : > { %1582 = vst.msk [vmem:[#allocation2 + $0x60] sm:$0xff] %vm1569_vm15, %v1546_v26 }
 0x14c   : > { %v1456_v39 = vpop.permute.xlu0 %1455 }
 0x14d   : > { %1499 = vst.msk [vmem:[#allocation2 + $0x28] sm:$0xff] %vm1493_vm14, %v1456_v39  ;;  %v830_v28 = vpop.permute.xlu1 %829 }
 0x14e   : > { %864 = vst.msk [vmem:[#allocation2 + $0x70] sm:$0xff] %vm849_vm8, %v830_v28 }
 0x150   : > { %v1530_v62 = vpop.permute.xlu0 %1529 }
 0x151   : > { %1574 = vst.msk [vmem:[#allocation2 + $0x20] sm:$0xff] %vm1569_vm15, %v1530_v62  ;;  %v1548_v56 = vpop.permute.xlu1 %1547  ;;  %v1598_v30 = vld [vmem:[#allocation2 + $0x60] sm:$0xff] }
 0x152   : > { %1583 = vst.msk [vmem:[#allocation2 + $0x68] sm:$0xff] %vm1569_vm15, %v1548_v56  ;;  %2403 = vmatprep.mubr.msk.bf16.mxu1 %vm1622_vm0, %v1598_v30 }
 0x154   : > { %v814_v21 = vpop.permute.xlu0 %813 }
 0x155   : > { %856 = vst.msk [vmem:[#allocation2 + $0x30] sm:$0xff] %vm849_vm8, %v814_v21  ;;  %v832_v10 = vpop.permute.xlu1 %831 }
 0x156   : > { %865 = vst.msk [vmem:[#allocation2 + $0x78] sm:$0xff] %vm849_vm8, %v832_v10 }
 0x158   : > { %v1532_v29 = vpop.permute.xlu0 %1531  ;;  %v1590_v6 = vld [vmem:[#allocation2 + $0x20] sm:$0xff] }
 0x159   : > { %1575 = vst.msk [vmem:[#allocation2 + $0x28] sm:$0xff] %vm1569_vm15, %v1532_v29  ;;  %2387 = vmatprep.mubr.msk.bf16.mxu0 %vm1622_vm0, %v1590_v6  ;;  %v1074_v24 = vpop.permute.xlu1 %1073  ;;  %v1599_v4 = vld [vmem:[#allocation2 + $0x68] sm:$0xff] }
 0x15a   : > { %1108 = vst.msk [vmem:[#allocation2 + $0x70] sm:$0xff] %vm1093_vm9, %v1074_v24  ;;  %2404 = vmatmul.mubr.msk.bf16.gmra.mrb[8].mxu1 %vm1622_vm0, %v1599_v4 }
 0x15c   : > { %v816_v0 = vpop.permute.xlu0 %815 }
 0x15d   : > { %857 = vst.msk [vmem:[#allocation2 + $0x38] sm:$0xff] %vm849_vm8, %v816_v0  ;;  %v1076_v1 = vpop.permute.xlu1 %1075 }
 0x15e   : > { %1109 = vst.msk [vmem:[#allocation2 + $0x78] sm:$0xff] %vm1093_vm9, %v1076_v1 }
 0x160   : > { %v1058_v36 = vpop.permute.xlu0 %1057  ;;  %v1591_v25 = vld [vmem:[#allocation2 + $0x28] sm:$0xff] }
 0x161   : > { %1100 = vst.msk [vmem:[#allocation2 + $0x30] sm:$0xff] %vm1093_vm9, %v1058_v36  ;;  %2388 = vmatmul.mubr.msk.bf16.gmra.mrb[8].mxu0 %vm1622_vm0, %v1591_v25  ;;  %v1144_v8 = vpop.permute.xlu1 %1143 }
 0x162   : > { %1178 = vst.msk [vmem:[#allocation2 + $0x70] sm:$0xff] %vm1163_vm10, %v1144_v8 }
 0x164   : > { %v1060_v38 = vpop.permute.xlu0 %1059 }
 0x165   : > { %1101 = vst.msk [vmem:[#allocation2 + $0x38] sm:$0xff] %vm1093_vm9, %v1060_v38  ;;  %v1146_v54 = vpop.permute.xlu1 %1145 }
 0x166   : > { %1179 = vst.msk [vmem:[#allocation2 + $0x78] sm:$0xff] %vm1163_vm10, %v1146_v54 }
 0x168   : > { %v1128_v22 = vpop.permute.xlu0 %1127 }
 0x169   : > { %1170 = vst.msk [vmem:[#allocation2 + $0x30] sm:$0xff] %vm1163_vm10, %v1128_v22  ;;  %v1236_v46 = vpop.permute.xlu1 %1235 }
 0x16a   : > { %1270 = vst.msk [vmem:[#allocation2 + $0x70] sm:$0xff] %vm1255_vm11, %v1236_v46 }
 0x16c   : > { %v1130_v60 = vpop.permute.xlu0 %1129 }
 0x16d   : > { %1171 = vst.msk [vmem:[#allocation2 + $0x38] sm:$0xff] %vm1163_vm10, %v1130_v60  ;;  %v1238_v50 = vpop.permute.xlu1 %1237 }
 0x16e   : > { %1271 = vst.msk [vmem:[#allocation2 + $0x78] sm:$0xff] %vm1255_vm11, %v1238_v50 }
 0x170   : > { %v1220_v13 = vpop.permute.xlu0 %1219 }
 0x171   : > { %1262 = vst.msk [vmem:[#allocation2 + $0x30] sm:$0xff] %vm1255_vm11, %v1220_v13  ;;  %v1312_v45 = vpop.permute.xlu1 %1311 }
 0x172   : > { %1346 = vst.msk [vmem:[#allocation2 + $0x70] sm:$0xff] %vm1331_vm12, %v1312_v45 }
 0x174   : > { %v1222_v51 = vpop.permute.xlu0 %1221 }
 0x175   : > { %1263 = vst.msk [vmem:[#allocation2 + $0x38] sm:$0xff] %vm1255_vm11, %v1222_v51  ;;  %v1314_v11 = vpop.permute.xlu1 %1313 }
 0x176   : > { %1347 = vst.msk [vmem:[#allocation2 + $0x78] sm:$0xff] %vm1331_vm12, %v1314_v11 }
 0x178   : > { %v1296_v15 = vpop.permute.xlu0 %1295 }
 0x179   : > { %1338 = vst.msk [vmem:[#allocation2 + $0x30] sm:$0xff] %vm1331_vm12, %v1296_v15  ;;  %v1382_v58 = vpop.permute.xlu1 %1381 }
 0x17a   : > { %1416 = vst.msk [vmem:[#allocation2 + $0x70] sm:$0xff] %vm1401_vm13, %v1382_v58 }
 0x17c   : > { %v1298_v34 = vpop.permute.xlu0 %1297 }
 0x17d   : > { %1339 = vst.msk [vmem:[#allocation2 + $0x38] sm:$0xff] %vm1331_vm12, %v1298_v34  ;;  %v1384_v23 = vpop.permute.xlu1 %1383 }
 0x17e   : > { %1417 = vst.msk [vmem:[#allocation2 + $0x78] sm:$0xff] %vm1401_vm13, %v1384_v23 }
 0x180   : > { %v1366_v7 = vpop.permute.xlu0 %1365 }
 0x181   : > { %1408 = vst.msk [vmem:[#allocation2 + $0x30] sm:$0xff] %vm1401_vm13, %v1366_v7  ;;  %v1474_v35 = vpop.permute.xlu1 %1473 }
 0x182   : > { %1508 = vst.msk [vmem:[#allocation2 + $0x70] sm:$0xff] %vm1493_vm14, %v1474_v35 }
 0x184   : > { %v1368_v37 = vpop.permute.xlu0 %1367 }
 0x185   : > { %1409 = vst.msk [vmem:[#allocation2 + $0x38] sm:$0xff] %vm1401_vm13, %v1368_v37  ;;  %v1476_v57 = vpop.permute.xlu1 %1475 }
 0x186   : > { %1509 = vst.msk [vmem:[#allocation2 + $0x78] sm:$0xff] %vm1493_vm14, %v1476_v57 }
 0x188   : > { %v1458_v40 = vpop.permute.xlu0 %1457 }
 0x189   : > { %1500 = vst.msk [vmem:[#allocation2 + $0x30] sm:$0xff] %vm1493_vm14, %v1458_v40  ;;  %v1550_v3 = vpop.permute.xlu1 %1549 }
 0x18a   : > { %1584 = vst.msk [vmem:[#allocation2 + $0x70] sm:$0xff] %vm1569_vm15, %v1550_v3 }
 0x18c   : > { %v1460_v16 = vpop.permute.xlu0 %1459 }
 0x18d   : > { %1501 = vst.msk [vmem:[#allocation2 + $0x38] sm:$0xff] %vm1493_vm14, %v1460_v16  ;;  %v1552_v27 = vpop.permute.xlu1 %1551 }
 0x18e   : > { %1585 = vst.msk [vmem:[#allocation2 + $0x78] sm:$0xff] %vm1569_vm15, %v1552_v27 }
 0x190   : > { %v1534_v63 = vpop.permute.xlu0 %1533 }
 0x191   : > { %1576 = vst.msk [vmem:[#allocation2 + $0x30] sm:$0xff] %vm1569_vm15, %v1534_v63  ;;  %v1600_v33 = vld [vmem:[#allocation2 + $0x70] sm:$0xff] }
 0x192   : > { %2407 = vmatprep.mubr.msk.bf16.mxu1 %vm1622_vm0, %v1600_v33 }
 0x194   : > { %v1536_v44 = vpop.permute.xlu0 %1535 }
 0x195   : > { %1577 = vst.msk [vmem:[#allocation2 + $0x38] sm:$0xff] %vm1569_vm15, %v1536_v44  ;;  %v1601_v5 = vld [vmem:[#allocation2 + $0x78] sm:$0xff] }
 0x196   : > { %2408 = vmatmul.mubr.msk.bf16.gmra.mrb[12].mxu1 %vm1622_vm0, %v1601_v5 }
 0x198   : > { %v1592_v20 = vld [vmem:[#allocation2 + $0x30] sm:$0xff] }
 0x199   : > { %2391 = vmatprep.mubr.msk.bf16.mxu0 %vm1622_vm0, %v1592_v20 }
 0x19c   : > { %v1593_v52 = vld [vmem:[#allocation2 + $0x38] sm:$0xff] }
 0x19d   : > { %2392 = vmatmul.mubr.msk.bf16.gmra.mrb[12].mxu0 %vm1622_vm0, %v1593_v52 }
 0x1ad   : > { %v2397_v2 = vpop.f32.mrb[0].mxu1 }
 0x1ae   : > { %v1860_v32 = vmul.f32 %v2397_v2, %v3573_v43  ;;  %v1773_v18 = vpop.f32.mrb[1].mxu1 }
 0x1af   : > { %v1858_v19 = vmul.f32 %v3573_v43, %v1773_v18  ;;  %v2398_v42 = vpop.f32.mrb[2].mxu1 }
 0x1b0   : > { %v1896_v47 = vadd.f32 %v3578_v53, %v1860_v32  ;;  %v1861_v59 = vmul.f32 %v2398_v42, %v3573_v43  ;;  %v1776_v55 = vpop.f32.mrb[3].mxu1 }
 0x1b1   : > { %v1894_v12 = vadd.f32 %v3578_v53, %v1858_v19  ;;  %v1859_v31 = vmul.f32 %v3573_v43, %v1776_v55 }
 0x1b2   : > { %v1928_v9 = vmax.f32 %v1896_v47, 0.0  ;;  %v1897_v61 = vadd.f32 %v3578_v53, %v1861_v59 }
 0x1b3   : > { %v1926_v49 = vmax.f32 %v1894_v12, 0.0  ;;  %v1895_v14 = vadd.f32 %v3578_v53, %v1859_v31 }
 0x1b4   : > { %v2381_v17 = vpop.f32.mrb[0].mxu0  ;;  %v2340_v48 = vpack.c.bf16 %v1928_v9, %v1928_v9  ;;  %v1929_v41 = vmax.f32 %v1897_v61, 0.0 }
 0x1b5   : > { %v1844_v26 = vmul.f32 %v2381_v17, %v3573_v43  ;;  %v1709_v39 = vpop.f32.mrb[1].mxu0  ;;  %v2338_v28 = vpack.c.bf16 %v1926_v49, %v1926_v49  ;;  %v1927_v62 = vmax.f32 %v1895_v14, 0.0 }
 0x1b6   : > { %2089 = vst.msk [vmem:[%s3591_s18 + $0x48] sm:$0xf] %vm2070_vm1, %v2340_v48  ;;  %v1842_v56 = vmul.f32 %v3573_v43, %v1709_v39  ;;  %v2382_v30 = vpop.f32.mrb[2].mxu0  ;;  %v2341_v21 = vpack.c.bf16 %v1929_v41, %v1929_v41 }
 0x1b7   : > { %v1880_v10 = vadd.f32 %v3578_v53, %v1844_v26  ;;  %2087 = vst.msk [vmem:[%s3591_s18 + $0x40] sm:$0xf] %vm2070_vm1, %v2338_v28  ;;  %v1845_v29 = vmul.f32 %v2382_v30, %v3573_v43  ;;  %v1712_v6 = vpop.f32.mrb[3].mxu0  ;;  %v2339_v24 = vpack.c.bf16 %v1927_v62, %v1927_v62 }
 0x1b8   : > { %v1878_v4 = vadd.f32 %v3578_v53, %v1842_v56  ;;  %2090 = vst.msk [vmem:[%s3591_s18 + $0x4c] sm:$0xf] %vm2070_vm1, %v2341_v21  ;;  %v1843_v0 = vmul.f32 %v3573_v43, %v1712_v6 }
 0x1b9   : > { %v1912_v1 = vmax.f32 %v1880_v10, 0.0  ;;  %v1881_v36 = vadd.f32 %v3578_v53, %v1845_v29  ;;  %2088 = vst.msk [vmem:[%s3591_s18 + $0x44] sm:$0xf] %vm2070_vm1, %v2339_v24 }
 0x1ba   : > { %v1910_v25 = vmax.f32 %v1878_v4, 0.0  ;;  %v1879_v8 = vadd.f32 %v3578_v53, %v1843_v0 }
 0x1bb   : > { %v2324_v38 = vpack.c.bf16 %v1912_v1, %v1912_v1  ;;  %v1913_v54 = vmax.f32 %v1881_v36, 0.0 }
 0x1bc   : > { %v2322_v22 = vpack.c.bf16 %v1910_v25, %v1910_v25  ;;  %v1911_v46 = vmax.f32 %v1879_v8, 0.0 }
 0x1bd   : > { %2073 = vst.msk [vmem:[%s3591_s18 + $0x8] sm:$0xf] %vm2070_vm1, %v2324_v38  ;;  %v2325_v60 = vpack.c.bf16 %v1913_v54, %v1913_v54 }
 0x1be   : > { %2071 = vst.msk [vmem:[%s3591_s18] sm:$0xf] %vm2070_vm1, %v2322_v22  ;;  %v2323_v50 = vpack.c.bf16 %v1911_v46, %v1911_v46 }
 0x1bf   : > { %2074 = vst.msk [vmem:[%s3591_s18 + $0xc] sm:$0xf] %vm2070_vm1, %v2325_v60 }
 0x1c0   : > { %2072 = vst.msk [vmem:[%s3591_s18 + $0x4] sm:$0xf] %vm2070_vm1, %v2323_v50 }
 0x1ed   : > { %v2401_v13 = vpop.f32.mrb[4].mxu1 }
 0x1ee   : > { %v1864_v45 = vmul.f32 %v2401_v13, %v3573_v43  ;;  %v1789_v51 = vpop.f32.mrb[5].mxu1 }
 0x1ef   : > { %v1862_v11 = vmul.f32 %v3573_v43, %v1789_v51  ;;  %v2402_v15 = vpop.f32.mrb[6].mxu1 }
 0x1f0   : > { %v1900_v58 = vadd.f32 %v3578_v53, %v1864_v45  ;;  %v1865_v34 = vmul.f32 %v2402_v15, %v3573_v43  ;;  %v1792_v23 = vpop.f32.mrb[7].mxu1 }
 0x1f1   : > { %v1898_v7 = vadd.f32 %v3578_v53, %v1862_v11  ;;  %v1863_v35 = vmul.f32 %v3573_v43, %v1792_v23 }
 0x1f2   : > { %v1932_v37 = vmax.f32 %v1900_v58, 0.0  ;;  %v1901_v57 = vadd.f32 %v3578_v53, %v1865_v34 }
 0x1f3   : > { %v1930_v40 = vmax.f32 %v1898_v7, 0.0  ;;  %v1899_v3 = vadd.f32 %v3578_v53, %v1863_v35 }
 0x1f4   : > { %v2385_v16 = vpop.f32.mrb[4].mxu0  ;;  %v2344_v27 = vpack.c.bf16 %v1932_v37, %v1932_v37  ;;  %v1933_v63 = vmax.f32 %v1901_v57, 0.0 }
 0x1f5   : > { %v1848_v33 = vmul.f32 %v2385_v16, %v3573_v43  ;;  %v1725_v44 = vpop.f32.mrb[5].mxu0  ;;  %v2342_v5 = vpack.c.bf16 %v1930_v40, %v1930_v40  ;;  %v1931_v20 = vmax.f32 %v1899_v3, 0.0 }
 0x1f6   : > { %2093 = vst.msk [vmem:[%s3591_s18 + $0x58] sm:$0xf] %vm2070_vm1, %v2344_v27  ;;  %v1846_v52 = vmul.f32 %v3573_v43, %v1725_v44  ;;  %v2386_v2 = vpop.f32.mrb[6].mxu0  ;;  %v2345_v32 = vpack.c.bf16 %v1933_v63, %v1933_v63 }
 0x1f7   : > { %v1884_v18 = vadd.f32 %v3578_v53, %v1848_v33  ;;  %2091 = vst.msk [vmem:[%s3591_s18 + $0x50] sm:$0xf] %vm2070_vm1, %v2342_v5  ;;  %v1849_v19 = vmul.f32 %v2386_v2, %v3573_v43  ;;  %v1728_v42 = vpop.f32.mrb[7].mxu0  ;;  %v2343_v47 = vpack.c.bf16 %v1931_v20, %v1931_v20 }
 0x1f8   : > { %v1882_v59 = vadd.f32 %v3578_v53, %v1846_v52  ;;  %2094 = vst.msk [vmem:[%s3591_s18 + $0x5c] sm:$0xf] %vm2070_vm1, %v2345_v32  ;;  %v1847_v55 = vmul.f32 %v3573_v43, %v1728_v42 }
 0x1f9   : > { %v1916_v12 = vmax.f32 %v1884_v18, 0.0  ;;  %v1885_v31 = vadd.f32 %v3578_v53, %v1849_v19  ;;  %2092 = vst.msk [vmem:[%s3591_s18 + $0x54] sm:$0xf] %vm2070_vm1, %v2343_v47 }
 0x1fa   : > { %v1914_v9 = vmax.f32 %v1882_v59, 0.0  ;;  %v1883_v61 = vadd.f32 %v3578_v53, %v1847_v55 }
 0x1fb   : > { %v2328_v49 = vpack.c.bf16 %v1916_v12, %v1916_v12  ;;  %v1917_v14 = vmax.f32 %v1885_v31, 0.0 }
 0x1fc   : > { %v2326_v17 = vpack.c.bf16 %v1914_v9, %v1914_v9  ;;  %v1915_v48 = vmax.f32 %v1883_v61, 0.0 }
 0x1fd   : > { %2077 = vst.msk [vmem:[%s3591_s18 + $0x18] sm:$0xf] %vm2070_vm1, %v2328_v49  ;;  %v2329_v41 = vpack.c.bf16 %v1917_v14, %v1917_v14 }
 0x1fe   : > { %2075 = vst.msk [vmem:[%s3591_s18 + $0x10] sm:$0xf] %vm2070_vm1, %v2326_v17  ;;  %v2327_v26 = vpack.c.bf16 %v1915_v48, %v1915_v48 }
 0x1ff   : > { %2078 = vst.msk [vmem:[%s3591_s18 + $0x1c] sm:$0xf] %vm2070_vm1, %v2329_v41 }
 0x200   : > { %2076 = vst.msk [vmem:[%s3591_s18 + $0x14] sm:$0xf] %vm2070_vm1, %v2327_v26 }
 0x22d   : > { %v2405_v39 = vpop.f32.mrb[8].mxu1 }
 0x22e   : > { %v1868_v28 = vmul.f32 %v2405_v39, %v3573_v43  ;;  %v1805_v62 = vpop.f32.mrb[9].mxu1 }
 0x22f   : > { %v1866_v56 = vmul.f32 %v3573_v43, %v1805_v62  ;;  %v2406_v30 = vpop.f32.mrb[10].mxu1 }
 0x230   : > { %v1904_v21 = vadd.f32 %v3578_v53, %v1868_v28  ;;  %v1869_v10 = vmul.f32 %v2406_v30, %v3573_v43  ;;  %v1808_v29 = vpop.f32.mrb[11].mxu1 }
 0x231   : > { %v1902_v6 = vadd.f32 %v3578_v53, %v1866_v56  ;;  %v1867_v24 = vmul.f32 %v3573_v43, %v1808_v29 }
 0x232   : > { %v1936_v4 = vmax.f32 %v1904_v21, 0.0  ;;  %v1905_v0 = vadd.f32 %v3578_v53, %v1869_v10 }
 0x233   : > { %v1934_v1 = vmax.f32 %v1902_v6, 0.0  ;;  %v1903_v36 = vadd.f32 %v3578_v53, %v1867_v24 }
 0x234   : > { %v2389_v25 = vpop.f32.mrb[8].mxu0  ;;  %v2348_v8 = vpack.c.bf16 %v1936_v4, %v1936_v4  ;;  %v1937_v38 = vmax.f32 %v1905_v0, 0.0 }
 0x235   : > { %v1852_v54 = vmul.f32 %v2389_v25, %v3573_v43  ;;  %v1741_v22 = vpop.f32.mrb[9].mxu0  ;;  %v2346_v46 = vpack.c.bf16 %v1934_v1, %v1934_v1  ;;  %v1935_v60 = vmax.f32 %v1903_v36, 0.0 }
 0x236   : > { %2097 = vst.msk [vmem:[%s3591_s18 + $0x68] sm:$0xf] %vm2070_vm1, %v2348_v8  ;;  %v1850_v50 = vmul.f32 %v3573_v43, %v1741_v22  ;;  %v2390_v13 = vpop.f32.mrb[10].mxu0  ;;  %v2349_v45 = vpack.c.bf16 %v1937_v38, %v1937_v38 }
 0x237   : > { %v1888_v51 = vadd.f32 %v3578_v53, %v1852_v54  ;;  %2095 = vst.msk [vmem:[%s3591_s18 + $0x60] sm:$0xf] %vm2070_vm1, %v2346_v46  ;;  %v1853_v11 = vmul.f32 %v2390_v13, %v3573_v43  ;;  %v1744_v15 = vpop.f32.mrb[11].mxu0  ;;  %v2347_v58 = vpack.c.bf16 %v1935_v60, %v1935_v60 }
 0x238   : > { %v1886_v34 = vadd.f32 %v3578_v53, %v1850_v50  ;;  %2098 = vst.msk [vmem:[%s3591_s18 + $0x6c] sm:$0xf] %vm2070_vm1, %v2349_v45  ;;  %v1851_v23 = vmul.f32 %v3573_v43, %v1744_v15 }
 0x239   : > { %v1920_v7 = vmax.f32 %v1888_v51, 0.0  ;;  %v1889_v35 = vadd.f32 %v3578_v53, %v1853_v11  ;;  %2096 = vst.msk [vmem:[%s3591_s18 + $0x64] sm:$0xf] %vm2070_vm1, %v2347_v58 }
 0x23a   : > { %v1918_v37 = vmax.f32 %v1886_v34, 0.0  ;;  %v1887_v57 = vadd.f32 %v3578_v53, %v1851_v23 }
 0x23b   : > { %v2332_v40 = vpack.c.bf16 %v1920_v7, %v1920_v7  ;;  %v1921_v3 = vmax.f32 %v1889_v35, 0.0 }
 0x23c   : > { %v2330_v16 = vpack.c.bf16 %v1918_v37, %v1918_v37  ;;  %v1919_v27 = vmax.f32 %v1887_v57, 0.0 }
 0x23d   : > { %2081 = vst.msk [vmem:[%s3591_s18 + $0x28] sm:$0xf] %vm2070_vm1, %v2332_v40  ;;  %v2333_v63 = vpack.c.bf16 %v1921_v3, %v1921_v3 }
 0x23e   : > { %2079 = vst.msk [vmem:[%s3591_s18 + $0x20] sm:$0xf] %vm2070_vm1, %v2330_v16  ;;  %v2331_v33 = vpack.c.bf16 %v1919_v27, %v1919_v27 }
 0x23f   : > { %2082 = vst.msk [vmem:[%s3591_s18 + $0x2c] sm:$0xf] %vm2070_vm1, %v2333_v63 }
 0x240   : > { %2080 = vst.msk [vmem:[%s3591_s18 + $0x24] sm:$0xf] %vm2070_vm1, %v2331_v33 }
 0x269   : > { %v2409_v44 = vpop.f32.mrb[12].mxu1 }
 0x26a   : > { %v1872_v5 = vmul.f32 %v2409_v44, %v3573_v43  ;;  %v1821_v20 = vpop.f32.mrb[13].mxu1 }
 0x26b   : > { %v1870_v52 = vmul.f32 %v3573_v43, %v1821_v20  ;;  %v2410_v2 = vpop.f32.mrb[14].mxu1 }
 0x26c   : > { %v1908_v32 = vadd.f32 %v3578_v53, %v1872_v5  ;;  %v1873_v18 = vmul.f32 %v2410_v2, %v3573_v43  ;;  %v1824_v19 = vpop.f32.mrb[15].mxu1 }
 0x26d   : > { %v1906_v42 = vadd.f32 %v3578_v53, %v1870_v52  ;;  %v1871_v47 = vmul.f32 %v3573_v43, %v1824_v19 }
 0x26e   : > { %v1940_v59 = vmax.f32 %v1908_v32, 0.0  ;;  %v1909_v55 = vadd.f32 %v3578_v53, %v1873_v18 }
 0x26f   : > { %v1938_v12 = vmax.f32 %v1906_v42, 0.0  ;;  %v1907_v31 = vadd.f32 %v3578_v53, %v1871_v47 }
 0x270   : > { %v2393_v9 = vpop.f32.mrb[12].mxu0  ;;  %v2352_v61 = vpack.c.bf16 %v1940_v59, %v1940_v59  ;;  %v1941_v49 = vmax.f32 %v1909_v55, 0.0 }
 0x271   : > { %v1856_v14 = vmul.f32 %v2393_v9, %v3573_v43  ;;  %v1757_v17 = vpop.f32.mrb[13].mxu0  ;;  %v2350_v48 = vpack.c.bf16 %v1938_v12, %v1938_v12  ;;  %v1939_v41 = vmax.f32 %v1907_v31, 0.0 }
 0x272   : > { %2101 = vst.msk [vmem:[%s3591_s18 + $0x78] sm:$0xf] %vm2070_vm1, %v2352_v61  ;;  %v1854_v26 = vmul.f32 %v3573_v43, %v1757_v17  ;;  %v2394_v39 = vpop.f32.mrb[14].mxu0  ;;  %v2353_v28 = vpack.c.bf16 %v1941_v49, %v1941_v49 }
 0x273   : > { %v1892_v62 = vadd.f32 %v3578_v53, %v1856_v14  ;;  %2099 = vst.msk [vmem:[%s3591_s18 + $0x70] sm:$0xf] %vm2070_vm1, %v2350_v48  ;;  %v1857_v56 = vmul.f32 %v2394_v39, %v3573_v43  ;;  %v1760_v30 = vpop.f32.mrb[15].mxu0  ;;  %v2351_v21 = vpack.c.bf16 %v1939_v41, %v1939_v41 }
 0x274   : > { %v1890_v10 = vadd.f32 %v3578_v53, %v1854_v26  ;;  %2102 = vst.msk [vmem:[%s3591_s18 + $0x7c] sm:$0xf] %vm2070_vm1, %v2353_v28  ;;  %v1855_v29 = vmul.f32 %v3573_v43, %v1760_v30 }
 0x275   : > { %v1924_v6 = vmax.f32 %v1892_v62, 0.0  ;;  %v1893_v24 = vadd.f32 %v3578_v53, %v1857_v56  ;;  %2100 = vst.msk [vmem:[%s3591_s18 + $0x74] sm:$0xf] %vm2070_vm1, %v2351_v21 }
 0x276   : > { %v1922_v4 = vmax.f32 %v1890_v10, 0.0  ;;  %v1891_v0 = vadd.f32 %v3578_v53, %v1855_v29 }
 0x277   : > { %v2336_v1 = vpack.c.bf16 %v1924_v6, %v1924_v6  ;;  %v1925_v36 = vmax.f32 %v1893_v24, 0.0 }
 0x278   : > { %v2334_v25 = vpack.c.bf16 %v1922_v4, %v1922_v4  ;;  %v1923_v8 = vmax.f32 %v1891_v0, 0.0 }
 0x279   : > { %2085 = vst.msk [vmem:[%s3591_s18 + $0x38] sm:$0xf] %vm2070_vm1, %v2336_v1  ;;  %v2337_v38 = vpack.c.bf16 %v1925_v36, %v1925_v36 }
 0x27a   : > { %2083 = vst.msk [vmem:[%s3591_s18 + $0x30] sm:$0xf] %vm2070_vm1, %v2334_v25  ;;  %v2335_v54 = vpack.c.bf16 %v1923_v8, %v1923_v8 }
 0x27b   : > { %2086 = vst.msk [vmem:[%s3591_s18 + $0x3c] sm:$0xf] %vm2070_vm1, %v2337_v38 }
 0x27c   : > { %2084 = vst.msk [vmem:[%s3591_s18 + $0x34] sm:$0xf] %vm2070_vm1, %v2335_v54 }
 0x27d PF: > { %s13_s14 = sadd.s32 1, %s2493_s14   ;;  %s3761_s12 = smov %s2489_s13 }
 0x27e   : > { %p10_p5 = scmp.ge.s32.totalorder %s13_s14, 4   ;;  %s3762_s13 = smov %s3764_s15 }
 0x280   :  { %12 = sbr.rel (!%p10_p5) target bundleno = 2 (0x2), region = 63 }

// kernel: cbr_forward.2
= control target key start
LH: loop header
LB: loop body
LE: loop exit
PB: predicated region body
PF: predicated region fallthrough
CT: control target
= control target key end

     0   :  { %s2242_s9 = smov 0   ;;  %s2244_s10 = smov 0   ;;  %s3176_s0 = inlined_call_operand.vmem [shape: bf16[2,18,18,4], index: 0, kind: input, shape index: {}]   ;;  %s3177_s1 = inlined_call_operand.vmem [shape: bf16[36,128], index: 1, kind: input, shape index: {}]   ;;  %s3178_s2 = inlined_call_operand.vmem [shape: f32[2,2,128], index: 2, kind: output, shape index: {}]  }
   0x1   :  { %s2246_s11 = smov 0  }
   0x2 LB: > { %s24_s12 = sadd.s32 1, %s2212_s10  ;;  %p1979_p0 = scmp.ge.s32.totalorder %s2216_s11, 1  ;;  %s2216_s11 = sphi %s2246_s11, %s12_s11   ;;  %s2212_s10 = sphi %s2244_s10, %s3184_s10   ;;  %s2208_s9 = sphi %s2242_s9, %s3183_s9  }
   0x3   : > { %p26_p1 = scmp.ge.s32.totalorder %s24_s12, 2  ;;  %p124_p2 = scmp.lt.s32.totalorder %s2216_s11, 3 }
   0x5   : > { %s3186_s12 = smov (%p26_p1, %s24_s12), 0  ;;  %p125_p3 = pnand %p1979_p0, %p124_p2 }
   0x6   : > { %p145_p4 = scmp.lt.s32.totalorder (!%p125_p3), %s2208_s9, 1  ;;  %vm314_vm0 = vcmask (!%p125_p3), 31744   ;;  %vm847_vm1 = vcmask (!%p125_p3), 1042432   ;;  %vm848_vm2 = vcmask (!%p125_p3), 1046532   ;;  %vm331_vm3 = vsmask.f32 (!%p125_p3), 3328 }
   0x7   : > { %128 = sbr.rel (%p125_p3) target bundleno = 643 (0x283), region = 28  ;;  %vm332_vm4 = vsmask.f32 (!%p125_p3), 7440  ;;  %vm2286_vm5 = vmor (!%p125_p3), %vm847_vm1, %vm848_vm2  ;;  %s2218_s17 = smov (!%p125_p3), 12   ;;  %vm1636_vm7 = vcmask (!%p125_p3), 1041408   ;;  %vm814_vm8 = vcmask (!%p125_p3), 64544  }
   0x8   : > { %s2219_s18 = smov (!%p125_p3), 20   ;;  %vm2323_vm6 = vmor (!%p125_p3), %vm331_vm3, %vm332_vm4  ;;  %s2220_s19 = smov (!%p125_p3), 8   ;;  %vm1058_vm9 = vcmask (!%p125_p3), 97344   ;;  %vm1128_vm10 = vcmask (!%p125_p3), 130144   ;;  %vm1220_vm11 = vcmask (!%p125_p3), 162944   ;;  %vm1296_vm12 = vcmask (!%p125_p3), 195744  }
   0x9   : > { %s2221_s20 = smov (!%p125_p3), 4   ;;  %s2222_s23 = smov (!%p125_p3), 16   ;;  %vm1366_vm13 = vcmask (!%p125_p3), 228544   ;;  %vm1458_vm14 = vcmask (!%p125_p3), 261344   ;;  %vm1534_vm15 = vcmask (!%p125_p3), 294144   ;;  %vm1908_vm1 = vcmask (!%p125_p3), 1040384  }
   0xa   : > { %s2223_s26 = smov (!%p125_p3), 24   ;;  %s2224_s27 = smov (!%p125_p3), 28  }
   0xb   : > { %s2225_s28 = smov (!%p125_p3), 32  }
   0xe   : > { %s3188_s9 = smov (!%p145_p4, %s2208_s9), 1 }
   0xf   : > { %s2140_s13 = smul.u32 216, %s3188_s9  ;;  %s1981_s3 = sshll.u32 %s3188_s9, 1 }
  0x10   : > { %s3162_s6 = scalar_lea.vmem %s3178_s2, %s1981_s3 }
  0x11   : > { %s2266_s16 = scalar_lea.vmem %s3176_s0, %s2140_s13 }
  0x12   : > { %v2269_v0 = vld [vmem:[%s2266_s16 + $0x18] sm:$0xf]  ;;  %v2272_v1 = vld [vmem:[%s2266_s16 + $0x1c] sm:$0xf]  ;;  %v167_v2 = vld [vmem:[%s2266_s16 + $0xc] sm:$0xf] }
  0x13   : > { %v2277_v3 = vcombine.low %v2269_v0, %v2272_v1  ;;  %v383_v4 = vshrl.u32 %v2269_v0, 16  ;;  %v386_v5 = vshll.u32 %v2269_v0, 16  ;;  %v396_v6 = vshrl.u32 %v2272_v1, 16  ;;  %v168_v7 = vld [vmem:[%s2266_s16 + $0x10] sm:$0xf] }
  0x14   : > { %v1983_v8 = vcombine.low %v167_v2, %v168_v7  ;;  %v359_v9 = vshrl.u32 %v167_v2, 16  ;;  %v362_v10 = vshll.u32 %v167_v2, 16  ;;  %v368_v11 = vshll.u32 %v168_v7, 16  ;;  %v169_v12 = vld [vmem:[%s2266_s16 + $0x14] sm:$0x1] }
  0x15   : > { %1082 = vrot.lane.b32.xlu1 %v2277_v3, %s2218_s17  ;;  %v372_v14 = vshrl.u32 %v168_v7, 16  ;;  %317 = vst.msk [vmem:[#allocation2 + $0x10] sm:$0xff] %vm314_vm0, %v2277_v3  ;;  %v2015_v15 = vrot.slane %v167_v2, 9  ;;  %v859_v16 = vrot.slane %v168_v7, 5  ;;  %v862_v17 = vrot.slane %v169_v12, 5 }
  0x16   : > { %v2295_v18 = vld [vmem:[%s2266_s16] sm:$0xf]  ;;  %v361_v19 = vrot.slane %v359_v9, 4  ;;  %v364_v20 = vrot.slane %v362_v10, 5  ;;  %1080 = vrot.lane.b32.xlu0 %v1983_v8, %s2218_s17  ;;  %316 = vst.msk [vmem:[#allocation2 + $0x8] sm:$0xff] %vm314_vm0, %v1983_v8  ;;  %v2016_v45 = vrot.slane %v2269_v0, 9 }
  0x17   : > { %v2300_v21 = vld [vmem:[%s2266_s16 + $0x4] sm:$0xf]  ;;  %v166_v22 = vld [vmem:[%s2266_s16 + $0x8] sm:$0x1]  ;;  %v374_v23 = vrot.slane %v372_v14, 4  ;;  %v860_v24 = vsel %vm2286_vm5, %v2015_v15, %v859_v16  ;;  %v861_v25 = vrot.slane %v859_v16, 4 }
  0x18   : > { %v2014_v26 = vrot.slane %v2295_v18, 9  ;;  %v852_v27 = vrot.slane %v2300_v21, 5  ;;  %v855_v28 = vrot.slane %v166_v22, 5  ;;  %v335_v29 = vshrl.u32 %v2295_v18, 16  ;;  %v172_v35 = vld [vmem:[%s2266_s16 + $0x20] sm:$0x1] }
  0x19   : > { %v338_v30 = vshll.u32 %v2295_v18, 16  ;;  %v863_v31 = vsel %vm2286_vm5, %v861_v25, %v862_v17  ;;  %v344_v32 = vshll.u32 %v2300_v21, 16  ;;  %v348_v33 = vshrl.u32 %v2300_v21, 16  ;;  %v2337_v7 = vld [vmem:[%s2266_s16 + $0x24] sm:$0xf] }
  0x1a   : > { %v354_v34 = vshll.u32 %v166_v22, 16  ;;  %v2031_v36 = vcombine.low %v860_v24, %v863_v31  ;;  %v853_v37 = vsel %vm2286_vm5, %v2014_v26, %v852_v27  ;;  %v854_v38 = vrot.slane %v852_v27, 4  ;;  %v175_v25 = vld [vmem:[%s2266_s16 + $0x2c] sm:$0x1] }
  0x1b   : > { %v337_v39 = vrot.slane %v335_v29, 4  ;;  %v340_v40 = vrot.slane %v338_v30, 5  ;;  %v346_v41 = vrot.slane %v344_v32, 5  ;;  %v350_v42 = vrot.slane %v348_v33, 4 }
  0x1c   : > { %v356_v43 = vrot.slane %v354_v34, 5  ;;  %1248 = vrot.lane.b32.xlu0 %v2031_v36, %s2219_s18  ;;  %v856_v44 = vsel %vm2286_vm5, %v854_v38, %v855_v28  ;;  %v866_v46 = vrot.slane %v2272_v1, 5  ;;  %v869_v47 = vrot.slane %v172_v35, 5  ;;  %v2369_v38 = vld [vmem:[%s2266_s16 + $0x30] sm:$0xf] }
  0x1d   : > { %v2030_v48 = vcombine.low %v853_v37, %v856_v44  ;;  %v341_v49 = vor.u32 %v340_v40, %v337_v39  ;;  %v351_v50 = vor.u32 %v350_v42, %v346_v41  ;;  %v365_v51 = vor.u32 %v364_v20, %v361_v19  ;;  %v2372_v39 = vld [vmem:[%s2266_s16 + $0x34] sm:$0xf] }
  0x1e   : > { %v867_v53 = vsel %vm2286_vm5, %v2016_v45, %v866_v46  ;;  %v868_v54 = vrot.slane %v866_v46, 4  ;;  %v370_v55 = vrot.slane %v368_v11, 5  ;;  %v378_v56 = vshll.u32 %v169_v12, 16  ;;  %v2184_v45 = vld [vmem:[%s3177_s1] sm:$0xff]  }
  0x1f   : > { %1010 = vrot.lane.b32.xlu1 %v2030_v48, %s2220_s19  ;;  %v342_v57 = vrot.slane %v341_v49, 4  ;;  %v352_v58 = vrot.slane %v351_v50, 4  ;;  %v366_v59 = vrot.slane %v365_v51, 4  ;;  %v385_v60 = vrot.slane %v383_v4, 4  ;;  %2094 = vmatprep.subr.bf16.mxu0 %v2184_v45 }
  0x20   : > { %v870_v61 = vsel %vm2286_vm5, %v868_v54, %v869_v47  ;;  %v375_v62 = vor.u32 %v374_v23, %v370_v55  ;;  %v380_v63 = vrot.slane %v378_v56, 5  ;;  %v388_v2 = vrot.slane %v386_v5, 5  ;;  %v174_v5 = vld [vmem:[%s2266_s16 + $0x28] sm:$0xf]  ;;  %v2394_v54 = vld [vmem:[%s2266_s16 + $0x38] sm:$0x1]  ;;  %2095 = vmatpush3.bf16.msra.mxu0 %v2184_v45  ;;  %2132 = vmatprep.subr.bf16.mxu1 %v2184_v45 }
  0x21   : > { %v347_v8 = vsel %vm2323_vm6, %v342_v57, %v346_v41  ;;  %v357_v9 = vsel %vm2323_vm6, %v352_v58, %v356_v43  ;;  %v2343_v10 = vcombine.low %v867_v53, %v870_v61  ;;  %v371_v4 = vsel %vm2323_vm6, %v366_v59, %v370_v55  ;;  %v2397_v55 = vld [vmem:[%s2266_s16 + $0x3c] sm:$0xf]  ;;  %v2185_v61 = vld [vmem:[%s3177_s1 + $0x8] sm:$0xff]   ;;  %2135 = vmatpush3.bf16.msra.mxu1 %v2184_v45 }
  0x22   : > { %v1998_v11 = vcombine.low %v347_v8, %v357_v9  ;;  %v376_v12 = vrot.slane %v375_v62, 4  ;;  %v389_v14 = vor.u32 %v388_v2, %v385_v60  ;;  %v392_v0 = vshll.u32 %v2272_v1, 16  ;;  %v2406_v60 = vld [vmem:[%s2266_s16 + $0x40] sm:$0xf]  ;;  %2096 = vmatprep.subr.bf16.mxu0 %v2185_v61  ;;  %2133 = vmatprep.subr.bf16.mxu1 %v2185_v61 }
  0x23   : > { %1012 = vrot.lane.b32.xlu1 %v2031_v36, %s2220_s19  ;;  %v398_v15 = vrot.slane %v396_v6, 4  ;;  %v402_v16 = vshll.u32 %v172_v35, 16  ;;  %v2353_v17 = vcombine.low %v2337_v7, %v174_v5  ;;  %v407_v19 = vshrl.u32 %v2337_v7, 16 }
  0x24   : > { %766 = vrot.lane.b32.xlu0 %v1998_v11, %s2221_s20  ;;  %v381_v20 = vsel %vm2323_vm6, %v376_v12, %v380_v63  ;;  %v390_v22 = vrot.slane %v389_v14, 4  ;;  %v394_v23 = vrot.slane %v392_v0, 5  ;;  %v410_v24 = vshll.u32 %v2337_v7, 16  ;;  %2097 = vmatpush3.bf16.msra.mxu0 %v2185_v61 }
  0x25   : > { %v1999_v26 = vcombine.low %v371_v4, %v381_v20  ;;  %v420_v1 = vshrl.u32 %v174_v5, 16  ;;  %318 = vst.msk [vmem:[#allocation2 + $0x18] sm:$0xff] %vm314_vm0, %v2353_v17  ;;  %v409_v6 = vrot.slane %v407_v19, 4  ;;  %v404_v28 = vrot.slane %v402_v16, 5  ;;  %2136 = vmatpush3.bf16.msra.mxu1 %v2185_v61 }
  0x26   : > { %v399_v27 = vor.u32 %v398_v15, %v394_v23  ;;  %v412_v29 = vrot.slane %v410_v24, 5  ;;  %v416_v30 = vshll.u32 %v174_v5, 16  ;;  %v426_v32 = vshll.u32 %v175_v25, 16 }
  0x27   : > { %1250 = vrot.lane.b32.xlu1 %v2343_v10, %s2219_s18  ;;  %v422_v31 = vrot.slane %v420_v1, 4  ;;  %v873_v33 = vrot.slane %v174_v5, 5  ;;  %v395_v34 = vsel %vm2323_vm6, %v390_v22, %v394_v23  ;;  %v2376_v40 = vcombine.low %v2369_v38, %v2372_v39  ;;  %v2434_v5 = vld [vmem:[%s2266_s16 + $0x44] sm:$0x1]  ;;  %v2440_v23 = vld [vmem:[%s2266_s16 + $0x48] sm:$0xf] }
  0x28   : > { %768 = vrot.lane.b32.xlu0 %v1999_v26, %s2221_s20  ;;  %v400_v35 = vrot.slane %v399_v27, 4  ;;  %v413_v36 = vor.u32 %v412_v29, %v409_v6  ;;  %v418_v37 = vrot.slane %v416_v30, 5  ;;  %v428_v44 = vrot.slane %v426_v32, 5 }
  0x29   : > { %v2017_v47 = vrot.slane %v2337_v7, 9  ;;  %v875_v48 = vrot.slane %v873_v33, 4  ;;  %v876_v49 = vrot.slane %v175_v25, 5  ;;  %319 = vst.msk [vmem:[#allocation2 + $0x20] sm:$0xff] %vm314_vm0, %v2376_v40  ;;  %v431_v51 = vshrl.u32 %v2369_v38, 16 }
  0x2a   : > { %v405_v41 = vsel %vm2323_vm6, %v400_v35, %v404_v28  ;;  %v414_v42 = vrot.slane %v413_v36, 4  ;;  %v423_v43 = vor.u32 %v422_v31, %v418_v37  ;;  %v434_v53 = vshll.u32 %v2369_v38, 16  ;;  %v2454_v28 = vld [vmem:[%s2266_s16 + $0x4c] sm:$0xf] }
  0x2b   : > { %v2383_v46 = vcombine.low %v395_v34, %v405_v41  ;;  %v444_v58 = vshrl.u32 %v2372_v39, 16  ;;  %v440_v59 = vshll.u32 %v2372_v39, 16  ;;  %v874_v62 = vsel %vm2286_vm5, %v2017_v47, %v873_v33  ;;  %v2464_v33 = vld [vmem:[%s2266_s16 + $0x50] sm:$0x1] }
  0x2c   : > { %1172 = vrot.lane.b32.xlu0 %v1999_v26, %s2222_s23  ;;  %v424_v50 = vrot.slane %v423_v43, 4  ;;  %v419_v56 = vsel %vm2323_vm6, %v414_v42, %v418_v37  ;;  %v877_v63 = vsel %vm2286_vm5, %v875_v48, %v876_v49  ;;  %v433_v2 = vrot.slane %v431_v51, 4 }
  0x2d   : > { %1174 = vrot.lane.b32.xlu1 %v2383_v46, %s2222_s23  ;;  %v436_v7 = vrot.slane %v434_v53, 5  ;;  %v2419_v8 = vcombine.low %v2397_v55, %v2406_v60  ;;  %v455_v9 = vshrl.u32 %v2397_v55, 16  ;;  %v450_v11 = vshll.u32 %v2394_v54, 16  ;;  %v2483_v53 = vld [vmem:[%s2266_s16 + $0x54] sm:$0xf] }
  0x2e   : > { %v429_v57 = vsel %vm2323_vm6, %v424_v50, %v428_v44  ;;  %v458_v12 = vshll.u32 %v2397_v55, 16  ;;  %v2429_v14 = vrot.slane %v440_v59, 5  ;;  %v446_v0 = vrot.slane %v444_v58, 4  ;;  %v2488_v59 = vld [vmem:[%s2266_s16 + $0x58] sm:$0xf] }
  0x2f   : > { %v2424_v4 = vcombine.low %v419_v56, %v429_v57  ;;  %320 = vst.msk [vmem:[#allocation2 + $0x28] sm:$0xff] %vm314_vm0, %v2419_v8  ;;  %v464_v15 = vshll.u32 %v2406_v60, 16  ;;  %v2018_v16 = vrot.slane %v2369_v38, 9  ;;  %v880_v19 = vrot.slane %v2372_v39, 5 }
  0x30   : > { %1318 = vrot.lane.b32.xlu0 %v2277_v3, %s2223_s26  ;;  %v468_v3 = vshrl.u32 %v2406_v60, 16  ;;  %v457_v20 = vrot.slane %v455_v9, 4  ;;  %v460_v22 = vrot.slane %v458_v12, 5  ;;  %v2444_v24 = vcombine.low %v874_v62, %v877_v63 }
  0x31   : > { %1320 = vrot.lane.b32.xlu1 %v2353_v17, %s2223_s26  ;;  %v883_v25 = vrot.slane %v2394_v54, 5  ;;  %v437_v26 = vor.u32 %v436_v7, %v433_v2  ;;  %v2449_v1 = vrot.slane %v450_v11, 5  ;;  %v2451_v6 = vrot.slane %v464_v15, 5 }
  0x32   : > { %v470_v27 = vrot.slane %v468_v3, 4  ;;  %v447_v29 = vor.u32 %v446_v0, %v2429_v14  ;;  %v474_v30 = vshll.u32 %v2434_v5, 16  ;;  %v2460_v31 = vcombine.low %v2440_v23, %v2454_v28 }
  0x33   : > { %v479_v32 = vshrl.u32 %v2440_v23, 16  ;;  %v2468_v34 = vsel %vm2286_vm5, %v2018_v16, %v880_v19  ;;  %v882_v35 = vrot.slane %v880_v19, 4  ;;  %v461_v36 = vor.u32 %v460_v22, %v457_v20  ;;  %v2518_v22 = vld [vmem:[%s2266_s16 + $0x5c] sm:$0x1] }
  0x34   : > { %1410 = vrot.lane.b32.xlu0 %v2383_v46, %s2224_s27  ;;  %v482_v37 = vshll.u32 %v2440_v23, 16  ;;  %v887_v38 = vrot.slane %v2406_v60, 5  ;;  %v492_v39 = vshrl.u32 %v2454_v28, 16  ;;  %321 = vst.msk [vmem:[#allocation2 + $0x30] sm:$0xff] %vm314_vm0, %v2460_v31  ;;  %v488_v42 = vshll.u32 %v2454_v28, 16 }
  0x35   : > { %1412 = vrot.lane.b32.xlu1 %v2424_v4, %s2224_s27  ;;  %v481_v41 = vrot.slane %v479_v32, 4  ;;  %v438_v43 = vrot.slane %v437_v26, 4  ;;  %v471_v44 = vor.u32 %v470_v27, %v2451_v6  ;;  %v498_v47 = vshll.u32 %v2464_v33, 16  ;;  %v2541_v32 = vld [vmem:[%s2266_s16 + $0x64] sm:$0xf] }
  0x36   : > { %v484_v45 = vrot.slane %v482_v37, 5  ;;  %v448_v48 = vrot.slane %v447_v29, 4  ;;  %v476_v49 = vrot.slane %v474_v30, 5  ;;  %v490_v50 = vrot.slane %v488_v42, 5 }
  0x37   : > { %v494_v51 = vrot.slane %v492_v39, 4  ;;  %v462_v54 = vrot.slane %v461_v36, 4  ;;  %v2019_v56 = vrot.slane %v2397_v55, 9  ;;  %v890_v57 = vrot.slane %v2434_v5, 5 }
  0x38   : > { %1486 = vrot.lane.b32.xlu0 %v2343_v10, %s2225_s28  ;;  %v485_v58 = vor.u32 %v484_v45, %v481_v41  ;;  %v894_v61 = vrot.slane %v2454_v28, 5  ;;  %v2495_v62 = vcombine.low %v2483_v53, %v2488_v59  ;;  %v472_v55 = vrot.slane %v471_v44, 4 }
  0x39   : > { %770 = vrot.lane.b32.xlu1 %v2383_v46, %s2221_s20  ;;  %v889_v46 = vrot.slane %v887_v38, 4  ;;  %v495_v60 = vor.u32 %v494_v51, %v490_v50  ;;  %v500_v63 = vrot.slane %v498_v47, 5  ;;  %v503_v2 = vshrl.u32 %v2483_v53, 16  ;;  %v2573_v47 = vld [vmem:[%s2266_s16 + $0x68] sm:$0x1] }
  0x3a   : > { %v506_v7 = vshll.u32 %v2483_v53, 16  ;;  %v486_v9 = vrot.slane %v485_v58, 4  ;;  %v2020_v12 = vrot.slane %v2440_v23, 9  ;;  %v516_v3 = vshrl.u32 %v2488_v59, 16  ;;  %322 = vst.msk [vmem:[#allocation2 + $0x38] sm:$0xff] %vm314_vm0, %v2495_v62 }
  0x3b   : > { %v496_v11 = vrot.slane %v495_v60, 4  ;;  %v884_v0 = vsel %vm2286_vm5, %v882_v35, %v883_v25  ;;  %v896_v5 = vrot.slane %v894_v61, 4  ;;  %v897_v15 = vrot.slane %v2464_v33, 5 }
  0x3c   : > { %1488 = vrot.lane.b32.xlu0 %v2444_v24, %s2225_s28  ;;  %v512_v16 = vshll.u32 %v2488_v59, 16  ;;  %v443_v19 = vsel %vm2323_vm6, %v438_v43, %v2429_v14  ;;  %v453_v20 = vsel %vm2323_vm6, %v448_v48, %v2449_v1  ;;  %v505_v23 = vrot.slane %v503_v2, 4  ;;  %v191_v48 = vld [vmem:[%s2266_s16 + $0x6c] sm:$0xf] }
  0x3d   : > { %772 = vrot.lane.b32.xlu1 %v2424_v4, %s2221_s20  ;;  %v508_v25 = vrot.slane %v506_v7, 5  ;;  %v477_v26 = vsel %vm2323_vm6, %v472_v55, %v476_v49  ;;  %v888_v14 = vsel %vm2286_vm5, %v2019_v56, %v887_v38  ;;  %v891_v1 = vsel %vm2286_vm5, %v889_v46, %v890_v57  ;;  %v193_v55 = vld [vmem:[%s2266_s16 + $0x74] sm:$0x1] }
  0x3e   : > { %v491_v27 = vsel %vm2323_vm6, %v486_v9, %v490_v50  ;;  %v501_v28 = vsel %vm2323_vm6, %v496_v11, %v500_v63  ;;  %v895_v29 = vsel %vm2286_vm5, %v2020_v12, %v894_v61  ;;  %v518_v30 = vrot.slane %v516_v3, 4 }
  0x3f   : > { %v898_v33 = vsel %vm2286_vm5, %v896_v5, %v897_v15  ;;  %v2545_v35 = vrot.slane %v512_v16, 5  ;;  %v522_v36 = vshll.u32 %v2518_v22, 16  ;;  %v509_v38 = vor.u32 %v508_v25, %v505_v23 }
  0x40   : > { %1014 = vrot.lane.b32.xlu0 %v2343_v10, %s2220_s19  ;;  %v467_v10 = vsel %vm2323_vm6, %v462_v54, %v2451_v6  ;;  %v2538_v6 = vld [vmem:[%s2266_s16 + $0x60] sm:$0xf]  ;;  %v2556_v39 = vcombine.low %v443_v19, %v453_v20  ;;  %v2559_v41 = vcombine.low %v2468_v34, %v884_v0  ;;  %v2561_v42 = vcombine.low %v888_v14, %v891_v1  ;;  %v192_v54 = vld [vmem:[%s2266_s16 + $0x70] sm:$0xf] }
  0x41   : > { %1016 = vrot.lane.b32.xlu1 %v2444_v24, %s2220_s19  ;;  %v2550_v37 = vcombine.low %v2538_v6, %v2541_v32  ;;  %v2565_v43 = vcombine.low %v467_v10, %v477_v26  ;;  %v2567_v44 = vcombine.low %v491_v27, %v501_v28  ;;  %v2021_v45 = vrot.slane %v2483_v53, 9 }
  0x42   : > { %v519_v34 = vor.u32 %v518_v30, %v2545_v35  ;;  %v2577_v49 = vrot.slane %v522_v36, 5  ;;  %v901_v50 = vrot.slane %v2488_v59, 5  ;;  %v904_v51 = vrot.slane %v2518_v22, 5  ;;  %v195_v36 = vld [vmem:[%s2266_s16 + $0x7c] sm:$0xf] }
  0x43   : > { %323 = vst.msk [vmem:[#allocation2 + $0x40] sm:$0xff] %vm314_vm0, %v2550_v37  ;;  %v2584_v56 = vrot.slane %v509_v38, 4  ;;  %v2022_v53 = vrot.slane %v2538_v6, 9  ;;  %v908_v57 = vrot.slane %v2541_v32, 5  ;;  %v911_v58 = vrot.slane %v2573_v47, 5 }
  0x44   : > { %1084 = vrot.lane.b32.xlu0 %v2353_v17, %s2218_s17  ;;  %v2569_v17 = vcombine.low %v895_v29, %v898_v33  ;;  %v527_v46 = vshrl.u32 %v2538_v6, 16  ;;  %v530_v59 = vshll.u32 %v2538_v6, 16  ;;  %v2593_v60 = vcombine.low %v191_v48, %v192_v54  ;;  %v194_v29 = vld [vmem:[%s2266_s16 + $0x78] sm:$0xf] }
  0x45   : > { %1086 = vrot.lane.b32.xlu1 %v2376_v40, %s2218_s17  ;;  %v551_v61 = vshrl.u32 %v191_v48, 16  ;;  %v910_v63 = vrot.slane %v908_v57, 4  ;;  %v554_v2 = vshll.u32 %v191_v48, 16  ;;  %v564_v7 = vshrl.u32 %v192_v54, 16 }
  0x46   : > { %v520_v9 = vrot.slane %v519_v34, 4  ;;  %v2600_v11 = vsel %vm2286_vm5, %v2021_v45, %v901_v50  ;;  %324 = vst.msk [vmem:[#allocation2 + $0x48] sm:$0xff] %vm314_vm0, %v2593_v60  ;;  %v560_v3 = vshll.u32 %v192_v54, 16  ;;  %v570_v16 = vshll.u32 %v193_v55, 16 }
  0x47   : > { %v553_v12 = vrot.slane %v551_v61, 4  ;;  %v912_v0 = vsel %vm2286_vm5, %v910_v63, %v911_v58  ;;  %v556_v5 = vrot.slane %v554_v2, 5  ;;  %v566_v15 = vrot.slane %v564_v7, 4  ;;  %v198_v2 = vld [vmem:[%s2266_s16 + $0x88] sm:$0xf] }
  0x48   : > { %1176 = vrot.lane.b32.xlu0 %v2424_v4, %s2222_s23  ;;  %v909_v4 = vsel %vm2286_vm5, %v2022_v53, %v908_v57  ;;  %v903_v19 = vrot.slane %v901_v50, 4  ;;  %v540_v20 = vshrl.u32 %v2541_v32, 16  ;;  %v562_v23 = vrot.slane %v560_v3, 5  ;;  %v196_v50 = vld [vmem:[%s2266_s16 + $0x80] sm:$0x1] }
  0x49   : > { %1178 = vrot.lane.b32.xlu1 %v2556_v39, %s2222_s23  ;;  %v2611_v22 = vcombine.low %v909_v4, %v912_v0  ;;  %v2617_v25 = vrot.slane %v527_v46, 4  ;;  %v557_v10 = vor.u32 %v556_v5, %v553_v12  ;;  %v572_v26 = vrot.slane %v570_v16, 5  ;;  %v2187_v0 = vld [vmem:[%s3177_s1 + $0x10] ss:$0 sps:$4 sm:$0x33]  }
  0x4a   : > { %v567_v14 = vor.u32 %v566_v15, %v562_v23  ;;  %v1982_v1 = vcombine.low %v2295_v18, %v2300_v21  ;;  %v2023_v27 = vrot.slane %v191_v48, 9  ;;  %v915_v28 = vrot.slane %v192_v54, 5  ;;  %2138 = vmatprep.subr.msk.bf16.mxu0 %vm1636_vm7, %v2187_v0  ;;  %2139 = vmatprep.subr.msk.bf16.mxu1 %vm1636_vm7, %v2187_v0 }
  0x4b   : > { %v2624_v30 = vrot.slane %v530_v59, 5  ;;  %v536_v6 = vshll.u32 %v2541_v32, 16  ;;  %v558_v33 = vrot.slane %v557_v10, 4  ;;  %v525_v18 = vsel %vm2323_vm6, %v520_v9, %v2577_v49  ;;  %v197_v59 = vld [vmem:[%s2266_s16 + $0x84] sm:$0xf] }
  0x4c   : > { %1252 = vrot.lane.b32.xlu0 %v2444_v24, %s2219_s18  ;;  %v515_v24 = vsel %vm2323_vm6, %v2584_v56, %v2545_v35  ;;  %v918_v35 = vrot.slane %v193_v55, 5  ;;  %v568_v21 = vrot.slane %v567_v14, 4  ;;  %315 = vst.msk [vmem:[#allocation2] sm:$0xff] %vm314_vm0, %v1982_v1  ;;  %v917_v38 = vrot.slane %v915_v28, 4 }
  0x4d   : > { %1254 = vrot.lane.b32.xlu1 %v2559_v41, %s2219_s18  ;;  %v2638_v32 = vsel %vm2286_vm5, %v903_v19, %v904_v51  ;;  %v563_v45 = vsel %vm2323_vm6, %v558_v33, %v562_v23  ;;  %v2642_v48 = vcombine.low %v194_v29, %v195_v36  ;;  %v575_v34 = vshrl.u32 %v194_v29, 16 }
  0x4e   : > { %v573_v49 = vsel %vm2323_vm6, %v568_v21, %v572_v26  ;;  %v919_v54 = vsel %vm2286_vm5, %v917_v38, %v918_v35  ;;  %v578_v56 = vshll.u32 %v194_v29, 16  ;;  %v588_v53 = vshrl.u32 %v195_v36, 16 }
  0x4f   : > { %v2651_v51 = vrot.slane %v540_v20, 4  ;;  %v2653_v57 = vcombine.low %v563_v45, %v573_v49  ;;  %325 = vst.msk [vmem:[#allocation2 + $0x50] sm:$0xff] %vm314_vm0, %v2642_v48  ;;  %v577_v46 = vrot.slane %v575_v34, 4  ;;  %v584_v55 = vshll.u32 %v195_v36, 16  ;;  %v200_v34 = vld [vmem:[%s2266_s16 + $0x90] sm:$0xf] }
  0x50   : > { %1322 = vrot.lane.b32.xlu0 %v2376_v40, %s2223_s26  ;;  %v916_v40 = vsel %vm2286_vm5, %v2023_v27, %v915_v28  ;;  %v580_v61 = vrot.slane %v578_v56, 5  ;;  %v590_v4 = vrot.slane %v588_v53, 4  ;;  %v594_v63 = vshll.u32 %v196_v50, 16  ;;  %v199_v27 = vld [vmem:[%s2266_s16 + $0x8c] sm:$0x1] }
  0x51   : > { %1324 = vrot.lane.b32.xlu1 %v2419_v8, %s2223_s26  ;;  %v2655_v58 = vcombine.low %v916_v40, %v919_v54  ;;  %v2663_v7 = vcombine.low %v515_v24, %v525_v18  ;;  %v2024_v9 = vrot.slane %v194_v29, 9  ;;  %v922_v12 = vrot.slane %v195_v36, 5  ;;  %v201_v53 = vld [vmem:[%s2266_s16 + $0x94] sm:$0xf] }
  0x52   : > { %v925_v3 = vrot.slane %v196_v50, 5  ;;  %v581_v5 = vor.u32 %v580_v61, %v577_v46  ;;  %v586_v15 = vrot.slane %v584_v55, 5  ;;  %v596_v16 = vrot.slane %v594_v63, 5  ;;  %v202_v63 = vld [vmem:[%s2266_s16 + $0x98] sm:$0x1] }
  0x53   : > { %v2668_v19 = vcombine.low %v197_v59, %v198_v2  ;;  %v923_v20 = vsel %vm2286_vm5, %v2024_v9, %v922_v12  ;;  %v924_v23 = vrot.slane %v922_v12, 4  ;;  %v599_v24 = vshrl.u32 %v197_v59, 16 }
  0x54   : > { %1414 = vrot.lane.b32.xlu0 %v2556_v39, %s2224_s27  ;;  %v602_v10 = vshll.u32 %v197_v59, 16  ;;  %v582_v26 = vrot.slane %v581_v5, 4  ;;  %v591_v14 = vor.u32 %v590_v4, %v586_v15  ;;  %v612_v1 = vshrl.u32 %v198_v2, 16 }
  0x55   : > { %1416 = vrot.lane.b32.xlu1 %v2565_v43, %s2224_s27  ;;  %326 = vst.msk [vmem:[#allocation2 + $0x58] sm:$0xff] %vm314_vm0, %v2668_v19  ;;  %v2679_v28 = vrot.slane %v536_v6, 5  ;;  %v926_v29 = vsel %vm2286_vm5, %v924_v23, %v925_v3  ;;  %v1638_v33 = vsel %vm1636_vm7, %v2187_v0, 0  ;;  %v601_v35 = vrot.slane %v599_v24, 4 }
  0x56   : > { %v592_v36 = vrot.slane %v591_v14, 4  ;;  %v2685_v18 = vcombine.low %v923_v20, %v926_v29  ;;  %2099 = vmatpush3.bf16.msra.mxu0 %v1638_v33  ;;  %v604_v21 = vrot.slane %v602_v10, 5  ;;  %2137 = vmatpush3.bf16.msra.mxu1 %v1638_v33  ;;  %v608_v6 = vshll.u32 %v198_v2, 16 }
  0x57   : > { %v614_v40 = vrot.slane %v612_v1, 4  ;;  %v618_v38 = vshll.u32 %v199_v27, 16  ;;  %v2025_v45 = vrot.slane %v197_v59, 9  ;;  %v929_v54 = vrot.slane %v198_v2, 5  ;;  %v203_v1 = vld [vmem:[%s2266_s16 + $0x9c] sm:$0xf] }
  0x58   : > { %1490 = vrot.lane.b32.xlu0 %v2559_v41, %s2225_s28  ;;  %v597_v50 = vsel %vm2323_vm6, %v592_v36, %v596_v16  ;;  %v605_v49 = vor.u32 %v604_v21, %v601_v35  ;;  %v932_v56 = vrot.slane %v199_v27, 5  ;;  %v610_v61 = vrot.slane %v608_v6, 5 }
  0x59   : > { %774 = vrot.lane.b32.xlu1 %v2556_v39, %s2221_s20  ;;  %v587_v39 = vsel %vm2323_vm6, %v582_v26, %v586_v15  ;;  %v620_v55 = vrot.slane %v618_v38, 5  ;;  %v2697_v4 = vcombine.low %v200_v34, %v201_v53  ;;  %v930_v59 = vsel %vm2286_vm5, %v2025_v45, %v929_v54  ;;  %v205_v38 = vld [vmem:[%s2266_s16 + $0xa4] sm:$0x1] }
  0x5a   : > { %v2695_v46 = vcombine.low %v587_v39, %v597_v50  ;;  %v606_v9 = vrot.slane %v605_v49, 4  ;;  %v931_v12 = vrot.slane %v929_v54, 4  ;;  %v623_v3 = vshrl.u32 %v200_v34, 16  ;;  %v204_v39 = vld [vmem:[%s2266_s16 + $0xa0] sm:$0xf] }
  0x5b   : > { %v615_v2 = vor.u32 %v614_v40, %v610_v61  ;;  %v626_v0 = vshll.u32 %v200_v34, 16  ;;  %v636_v5 = vshrl.u32 %v201_v53, 16  ;;  %327 = vst.msk [vmem:[#allocation2 + $0x60] sm:$0xff] %vm314_vm0, %v2697_v4  ;;  %v632_v15 = vshll.u32 %v201_v53, 16 }
  0x5c   : > { %1492 = vrot.lane.b32.xlu0 %v2561_v42, %s2225_s28  ;;  %v611_v16 = vsel %vm2323_vm6, %v606_v9, %v610_v61  ;;  %v933_v20 = vsel %vm2286_vm5, %v931_v12, %v932_v56  ;;  %v625_v23 = vrot.slane %v623_v3, 4  ;;  %v642_v24 = vshll.u32 %v202_v63, 16 }
  0x5d   : > { %776 = vrot.lane.b32.xlu1 %v2565_v43, %s2221_s20  ;;  %v2712_v10 = vcombine.low %v930_v59, %v933_v20  ;;  %v628_v26 = vrot.slane %v626_v0, 5  ;;  %v634_v14 = vrot.slane %v632_v15, 5  ;;  %v638_v27 = vrot.slane %v636_v5, 4  ;;  %v206_v0 = vld [vmem:[%s2266_s16 + $0xa8] sm:$0xf] }
  0x5e   : > { %v644_v29 = vrot.slane %v642_v24, 5  ;;  %v2026_v33 = vrot.slane %v200_v34, 9  ;;  %v936_v35 = vrot.slane %v201_v53, 5  ;;  %v939_v6 = vrot.slane %v202_v63, 5 }
  0x5f   : > { %v629_v21 = vor.u32 %v628_v26, %v625_v23  ;;  %v2720_v40 = vcombine.low %v203_v1, %v204_v39  ;;  %v639_v50 = vor.u32 %v638_v27, %v634_v14  ;;  %v647_v54 = vshrl.u32 %v203_v1, 16  ;;  %v207_v26 = vld [vmem:[%s2266_s16 + $0xac] sm:$0xf] }
  0x60   : > { %1018 = vrot.lane.b32.xlu0 %v2559_v41, %s2220_s19  ;;  %v616_v41 = vrot.slane %v615_v2, 4  ;;  %v937_v34 = vsel %vm2286_vm5, %v2026_v33, %v936_v35  ;;  %v938_v49 = vrot.slane %v936_v35, 4  ;;  %v650_v56 = vshll.u32 %v203_v1, 16 }
  0x61   : > { %1020 = vrot.lane.b32.xlu1 %v2561_v42, %s2220_s19  ;;  %v660_v53 = vshrl.u32 %v204_v39, 16  ;;  %328 = vst.msk [vmem:[#allocation2 + $0x68] sm:$0xff] %vm314_vm0, %v2720_v40  ;;  %v640_v61 = vrot.slane %v639_v50, 4  ;;  %v656_v63 = vshll.u32 %v204_v39, 16  ;;  %v666_v9 = vshll.u32 %v205_v38, 16 }
  0x62   : > { %v621_v36 = vsel %vm2323_vm6, %v616_v41, %v620_v55  ;;  %v940_v55 = vsel %vm2286_vm5, %v938_v49, %v939_v6  ;;  %v649_v3 = vrot.slane %v647_v54, 4  ;;  %v652_v2 = vrot.slane %v650_v56, 5 }
  0x63   : > { %v2725_v45 = vcombine.low %v611_v16, %v621_v36  ;;  %v2737_v12 = vcombine.low %v937_v34, %v940_v55  ;;  %v645_v5 = vsel %vm2323_vm6, %v640_v61, %v644_v29  ;;  %v658_v15 = vrot.slane %v656_v63, 5  ;;  %v208_v36 = vld [vmem:[%s2266_s16 + $0xb0] sm:$0x1]  ;;  %v209_v63 = vld [vmem:[%s2266_s16 + $0xb4] sm:$0xf] }
  0x64   : > { %1088 = vrot.lane.b32.xlu0 %v2419_v8, %s2218_s17  ;;  %v630_v8 = vrot.slane %v629_v21, 4  ;;  %v662_v16 = vrot.slane %v660_v53, 4  ;;  %v668_v20 = vrot.slane %v666_v9, 5  ;;  %v2027_v24 = vrot.slane %v203_v1, 9  ;;  %v210_v9 = vld [vmem:[%s2266_s16 + $0xb8] sm:$0xf] }
  0x65   : > { %1090 = vrot.lane.b32.xlu1 %v2460_v31, %s2218_s17  ;;  %v943_v41 = vrot.slane %v204_v39, 5  ;;  %v946_v27 = vrot.slane %v205_v38, 5  ;;  %v2747_v33 = vcombine.low %v206_v0, %v207_v26  ;;  %v671_v35 = vshrl.u32 %v206_v0, 16 }
  0x66   : > { %v635_v59 = vsel %vm2323_vm6, %v630_v8, %v634_v14  ;;  %v663_v14 = vor.u32 %v662_v16, %v658_v15  ;;  %v674_v50 = vshll.u32 %v206_v0, 16  ;;  %v684_v39 = vshrl.u32 %v207_v26, 16 }
  0x67   : > { %v2744_v23 = vcombine.low %v635_v59, %v645_v5  ;;  %v944_v29 = vsel %vm2286_vm5, %v2027_v24, %v943_v41  ;;  %v945_v6 = vrot.slane %v943_v41, 4  ;;  %329 = vst.msk [vmem:[#allocation2 + $0x70] sm:$0xff] %vm314_vm0, %v2747_v33  ;;  %v673_v38 = vrot.slane %v671_v35, 4  ;;  %v211_v35 = vld [vmem:[%s2266_s16 + $0xbc] sm:$0x1] }
  0x68   : > { %1180 = vrot.lane.b32.xlu0 %v2565_v43, %s2222_s23  ;;  %v653_v43 = vor.u32 %v652_v2, %v649_v3  ;;  %v664_v1 = vrot.slane %v663_v14, 4  ;;  %v680_v34 = vshll.u32 %v207_v26, 16  ;;  %v676_v8 = vrot.slane %v674_v50, 5 }
  0x69   : > { %1182 = vrot.lane.b32.xlu1 %v2567_v44, %s2222_s23  ;;  %v947_v49 = vsel %vm2286_vm5, %v945_v6, %v946_v27  ;;  %v690_v54 = vshll.u32 %v208_v36, 16  ;;  %v686_v55 = vrot.slane %v684_v39, 4  ;;  %v2028_v5 = vrot.slane %v206_v0, 9 }
  0x6a   : > { %v654_v21 = vrot.slane %v653_v43, 4  ;;  %v669_v56 = vsel %vm2323_vm6, %v664_v1, %v668_v20  ;;  %v2764_v53 = vcombine.low %v944_v29, %v947_v49  ;;  %v682_v61 = vrot.slane %v680_v34, 5 }
  0x6b   : > { %v677_v3 = vor.u32 %v676_v8, %v673_v38  ;;  %v692_v2 = vrot.slane %v690_v54, 5  ;;  %v950_v16 = vrot.slane %v207_v26, 5  ;;  %v953_v20 = vrot.slane %v208_v36, 5 }
  0x6c   : > { %1256 = vrot.lane.b32.xlu0 %v2561_v42, %s2219_s18  ;;  %v659_v42 = vsel %vm2323_vm6, %v654_v21, %v658_v15  ;;  %v687_v15 = vor.u32 %v686_v55, %v682_v61  ;;  %v2774_v43 = vcombine.low %v209_v63, %v210_v9  ;;  %v695_v41 = vshrl.u32 %v209_v63, 16 }
  0x6d   : > { %1258 = vrot.lane.b32.xlu1 %v2569_v17, %s2219_s18  ;;  %v2770_v59 = vcombine.low %v659_v42, %v669_v56  ;;  %v678_v24 = vrot.slane %v677_v3, 4  ;;  %v698_v14 = vshll.u32 %v209_v63, 16  ;;  %v708_v27 = vshrl.u32 %v210_v9, 16 }
  0x6e   : > { %v688_v21 = vrot.slane %v687_v15, 4  ;;  %v952_v29 = vrot.slane %v950_v16, 4  ;;  %330 = vst.msk [vmem:[#allocation2 + $0x78] sm:$0xff] %vm314_vm0, %v2774_v43  ;;  %v704_v0 = vshll.u32 %v210_v9, 16  ;;  %v697_v36 = vrot.slane %v695_v41, 4 }
  0x6f   : > { %v683_v26 = vsel %vm2323_vm6, %v678_v24, %v682_v61  ;;  %v700_v6 = vrot.slane %v698_v14, 5  ;;  %v710_v50 = vrot.slane %v708_v27, 4  ;;  %v714_v34 = vshll.u32 %v211_v35, 16 }
  0x70   : > { %1326 = vrot.lane.b32.xlu0 %v2460_v31, %s2223_s26  ;;  %v951_v31 = vsel %vm2286_vm5, %v2028_v5, %v950_v16  ;;  %v693_v1 = vsel %vm2323_vm6, %v688_v21, %v692_v2  ;;  %v954_v39 = vsel %vm2286_vm5, %v952_v29, %v953_v20  ;;  %v706_v38 = vrot.slane %v704_v0, 5 }
  0x71   : > { %1328 = vrot.lane.b32.xlu1 %v2495_v62, %s2223_s26  ;;  %v2791_v42 = vcombine.low %v683_v26, %v693_v1  ;;  %v2793_v49 = vcombine.low %v951_v31, %v954_v39  ;;  %v701_v8 = vor.u32 %v700_v6, %v697_v36  ;;  %v957_v54 = vrot.slane %v210_v9, 5 }
  0x72   : > { %v2037_v56 = vcombine.low %v2600_v11, %v2638_v32  ;;  %v711_v61 = vor.u32 %v710_v50, %v706_v38  ;;  %v716_v55 = vrot.slane %v714_v34, 5  ;;  %v2029_v2 = vrot.slane %v209_v63, 9 }
  0x73   : > { %v702_v3 = vrot.slane %v701_v8, 4  ;;  %v959_v5 = vrot.slane %v957_v54, 4  ;;  %v960_v15 = vrot.slane %v211_v35, 5  ;;  %v533_v16 = vor.u32 %v2624_v30, %v2617_v25 }
  0x74   : > { %1418 = vrot.lane.b32.xlu0 %v2567_v44, %s2224_s27  ;;  %v546_v9 = vshll.u32 %v2573_v47, 16  ;;  %v712_v20 = vrot.slane %v711_v61, 4  ;;  %v543_v11 = vor.u32 %v2651_v51, %v2679_v28  ;;  %v958_v63 = vsel %vm2286_vm5, %v2029_v2, %v957_v54 }
  0x75   : > { %1420 = vrot.lane.b32.xlu1 %v2663_v7, %s2224_s27  ;;  %v707_v32 = vsel %vm2323_vm6, %v702_v3, %v706_v38  ;;  %v961_v24 = vsel %vm2286_vm5, %v959_v5, %v960_v15  ;;  %v534_v25 = vrot.slane %v533_v16, 4  ;;  %vm1587_vm0 = vcmask 293888  }
  0x76   : > { %v2814_v41 = vcombine.low %v958_v63, %v961_v24  ;;  %v544_v30 = vrot.slane %v543_v11, 4  ;;  %v548_v51 = vrot.slane %v546_v9, 5 }
  0x77   : > { %v539_v14 = vsel %vm2323_vm6, %v534_v25, %v2679_v28 }
  0x78   : > { %1494 = vrot.lane.b32.xlu0 %v2569_v17, %s2225_s28  ;;  %v549_v27 = vsel %vm2323_vm6, %v544_v30, %v548_v51 }
  0x79   : > { %778 = vrot.lane.b32.xlu1 %v2567_v44, %s2221_s20  ;;  %v717_v44 = vsel %vm2323_vm6, %v712_v20, %v716_v55  ;;  %v2006_v35 = vcombine.low %v539_v14, %v549_v27  ;;  %v2986_v27 = vld [vmem:[%s2266_s16 + $0xc0] sm:$0xf] }
  0x7a   : > { %v2817_v47 = vcombine.low %v707_v32, %v717_v44 }
  0x7c   : > { %1496 = vrot.lane.b32.xlu0 %v2037_v56, %s2225_s28 }
  0x7d   : > { %780 = vrot.lane.b32.xlu1 %v2663_v7, %s2221_s20 }
  0x80   : > { %1022 = vrot.lane.b32.xlu0 %v2569_v17, %s2220_s19 }
  0x81   : > { %1024 = vrot.lane.b32.xlu1 %v2037_v56, %s2220_s19 }
  0x84   : > { %1092 = vrot.lane.b32.xlu0 %v2495_v62, %s2218_s17 }
  0x85   : > { %1094 = vrot.lane.b32.xlu1 %v2550_v37, %s2218_s17 }
  0x87   : > { %v1083_v21 = vpop.permute.xlu1 %1082 }
  0x88   : > { %1184 = vrot.lane.b32.xlu0 %v2663_v7, %s2222_s23  ;;  %v1081_v17 = vpop.permute.xlu0 %1080 }
  0x89   : > { %1186 = vrot.lane.b32.xlu1 %v2006_v35, %s2222_s23 }
  0x8c   : > { %1260 = vrot.lane.b32.xlu0 %v2037_v56, %s2219_s18 }
  0x8d   : > { %1262 = vrot.lane.b32.xlu1 %v2611_v22, %s2219_s18 }
  0x8e   : > { %v1249_v62 = vpop.permute.xlu0 %1248 }
  0x90   : > { %1330 = vrot.lane.b32.xlu0 %v2550_v37, %s2223_s26 }
  0x91   : > { %1332 = vrot.lane.b32.xlu1 %v2593_v60, %s2223_s26  ;;  %v1011_v28 = vpop.permute.xlu1 %1010 }
  0x94   : > { %1422 = vrot.lane.b32.xlu0 %v2006_v35, %s2224_s27 }
  0x95   : > { %1424 = vrot.lane.b32.xlu1 %v2653_v57, %s2224_s27  ;;  %v1013_v7 = vpop.permute.xlu1 %1012 }
  0x96   : > { %v767_v31 = vpop.permute.xlu0 %766 }
  0x97   : > { %815 = vst.msk [vmem:[#allocation2] sm:$0xff] %vm814_vm8, %v767_v31 }
  0x98   : > { %1059 = vst.msk [vmem:[#allocation2] sm:$0xff] %vm1058_vm9, %v1011_v28  ;;  %1498 = vrot.lane.b32.xlu0 %v2611_v22, %s2225_s28 }
  0x99   : > { %782 = vrot.lane.b32.xlu1 %v2006_v35, %s2221_s20  ;;  %v1251_v37 = vpop.permute.xlu1 %1250  ;;  %1129 = vst.msk [vmem:[#allocation2] sm:$0xff] %vm1128_vm10, %v1081_v17  ;;  %v2989_v17 = vld [vmem:[%s2266_s16 + $0xc4] sm:$0xf] }
  0x9a   : > { %v769_v29 = vpop.permute.xlu0 %768  ;;  %v1155_v28 = vshll.u32 %v2989_v17, 16 }
  0x9b   : > { %816 = vst.msk [vmem:[#allocation2 + $0x8] sm:$0xff] %vm814_vm8, %v769_v29 }
  0x9c   : > { %1060 = vst.msk [vmem:[#allocation2 + $0x8] sm:$0xff] %vm1058_vm9, %v1013_v7  ;;  %1500 = vrot.lane.b32.xlu0 %v2655_v58, %s2225_s28 }
  0x9d   : > { %784 = vrot.lane.b32.xlu1 %v2653_v57, %s2221_s20  ;;  %1130 = vst.msk [vmem:[#allocation2 + $0x8] sm:$0xff] %vm1128_vm10, %v1083_v21  ;;  %v1146_v21 = vshrl.u32 %v2986_v27, 16 }
  0x9e   : > { %v1173_v0 = vpop.permute.xlu0 %1172 }
  0x9f   : > { %v1175_v26 = vpop.permute.xlu1 %1174  ;;  %1221 = vst.msk [vmem:[#allocation2] sm:$0xff] %vm1220_vm11, %v1173_v0  ;;  %v1157_v0 = vrot.slane %v1155_v28, 5 }
  0xa0   : > { %1222 = vst.msk [vmem:[#allocation2 + $0x8] sm:$0xff] %vm1220_vm11, %v1175_v26  ;;  %1026 = vrot.lane.b32.xlu0 %v2611_v22, %s2220_s19 }
  0xa1   : > { %1297 = vst.msk [vmem:[#allocation2] sm:$0xff] %vm1296_vm12, %v1249_v62  ;;  %1028 = vrot.lane.b32.xlu1 %v2655_v58, %s2220_s19  ;;  %1298 = vst.msk [vmem:[#allocation2 + $0x8] sm:$0xff] %vm1296_vm12, %v1251_v37  ;;  %v1159_v62 = vshrl.u32 %v2989_v17, 16 }
  0xa2   : > { %v1319_v36 = vpop.permute.xlu0 %1318 }
  0xa3   : > { %1367 = vst.msk [vmem:[#allocation2] sm:$0xff] %vm1366_vm13, %v1319_v36  ;;  %v1321_v6 = vpop.permute.xlu1 %1320  ;;  %v1161_v26 = vrot.slane %v1159_v62, 4 }
  0xa4   : > { %1368 = vst.msk [vmem:[#allocation2 + $0x8] sm:$0xff] %vm1366_vm13, %v1321_v6  ;;  %1096 = vrot.lane.b32.xlu0 %v2593_v60, %s2218_s17 }
  0xa5   : > { %1098 = vrot.lane.b32.xlu1 %v2642_v48, %s2218_s17 }
  0xa6   : > { %v1411_v22 = vpop.permute.xlu0 %1410 }
  0xa7   : > { %1459 = vst.msk [vmem:[#allocation2] sm:$0xff] %vm1458_vm14, %v1411_v22  ;;  %v1413_v50 = vpop.permute.xlu1 %1412  ;;  %v214_v22 = vld [vmem:[%s2266_s16 + $0xc8] sm:$0x1] }
  0xa8   : > { %1460 = vst.msk [vmem:[#allocation2 + $0x8] sm:$0xff] %vm1458_vm14, %v1413_v50  ;;  %1188 = vrot.lane.b32.xlu0 %v2653_v57, %s2222_s23 }
  0xa9   : > { %1190 = vrot.lane.b32.xlu1 %v2695_v46, %s2222_s23 }
  0xaa   : > { %v1487_v1 = vpop.permute.xlu0 %1486 }
  0xab   : > { %1535 = vst.msk [vmem:[#allocation2] sm:$0xff] %vm1534_vm15, %v1487_v1  ;;  %v771_v60 = vpop.permute.xlu1 %770 }
  0xac   : > { %817 = vst.msk [vmem:[#allocation2 + $0x10] sm:$0xff] %vm814_vm8, %v771_v60  ;;  %1264 = vrot.lane.b32.xlu0 %v2655_v58, %s2219_s18  ;;  %v1162_v60 = vor.u32 %v1161_v26, %v1157_v0 }
  0xad   : > { %1266 = vrot.lane.b32.xlu1 %v2685_v18, %s2219_s18 }
  0xae   : > { %v1489_v39 = vpop.permute.xlu0 %1488 }
  0xaf   : > { %1536 = vst.msk [vmem:[#allocation2 + $0x8] sm:$0xff] %vm1534_vm15, %v1489_v39  ;;  %v773_v57 = vpop.permute.xlu1 %772  ;;  %v1165_v39 = vshll.u32 %v214_v22, 16 }
  0xb0   : > { %818 = vst.msk [vmem:[#allocation2 + $0x18] sm:$0xff] %vm814_vm8, %v773_v57  ;;  %1334 = vrot.lane.b32.xlu0 %v2642_v48, %s2223_s26 }
  0xb1   : > { %1336 = vrot.lane.b32.xlu1 %v2668_v19, %s2223_s26 }
  0xb2   : > { %v1015_v38 = vpop.permute.xlu0 %1014  ;;  %v1551_v34 = vld [vmem:[#allocation2] sm:$0xff] }
  0xb3   : > { %1061 = vst.msk [vmem:[#allocation2 + $0x10] sm:$0xff] %vm1058_vm9, %v1015_v38  ;;  %v1017_v58 = vpop.permute.xlu1 %1016  ;;  %2100 = vmatprep.mubr.msk.bf16.mxu0 %vm1587_vm0, %v1551_v34  ;;  %v3017_v38 = vld [vmem:[%s2266_s16 + $0xcc] sm:$0xf] }
  0xb4   : > { %1062 = vst.msk [vmem:[#allocation2 + $0x18] sm:$0xff] %vm1058_vm9, %v1017_v58  ;;  %1426 = vrot.lane.b32.xlu0 %v2695_v46, %s2224_s27  ;;  %v3021_v58 = vld [vmem:[%s2266_s16 + $0xd0] sm:$0xf]  ;;  %v2052_v28 = vrot.slane %v3017_v38, 9 }
  0xb5   : > { %1428 = vrot.lane.b32.xlu1 %v2725_v45, %s2224_s27 }
  0xb6   : > { %v1085_v48 = vpop.permute.xlu0 %1084  ;;  %v1552_v8 = vld [vmem:[#allocation2 + $0x8] sm:$0xff] }
  0xb7   : > { %1131 = vst.msk [vmem:[#allocation2 + $0x10] sm:$0xff] %vm1128_vm10, %v1085_v48  ;;  %v1087_v54 = vpop.permute.xlu1 %1086  ;;  %2101 = vmatmul.mubr.msk.bf16.vlgmr.msra.gmra.mrb[0].mxu0 %vm1587_vm0, %v1552_v8  ;;  %v1167_v8 = vrot.slane %v1165_v39, 5 }
  0xb8   : > { %1132 = vst.msk [vmem:[#allocation2 + $0x18] sm:$0xff] %vm1128_vm10, %v1087_v54  ;;  %1502 = vrot.lane.b32.xlu0 %v2685_v18, %s2225_s28  ;;  %v1384_v54 = vshrl.u32 %v3017_v38, 16 }
  0xb9   : > { %786 = vrot.lane.b32.xlu1 %v2695_v46, %s2221_s20 }
  0xba   : > { %v1177_v56 = vpop.permute.xlu0 %1176 }
  0xbb   : > { %1223 = vst.msk [vmem:[#allocation2 + $0x10] sm:$0xff] %vm1220_vm11, %v1177_v56  ;;  %v1179_v61 = vpop.permute.xlu1 %1178  ;;  %v1387_v56 = vshll.u32 %v3017_v38, 16 }
  0xbc   : > { %1224 = vst.msk [vmem:[#allocation2 + $0x18] sm:$0xff] %vm1220_vm11, %v1179_v61  ;;  %1504 = vrot.lane.b32.xlu0 %v2712_v10, %s2225_s28 }
  0xbd   : > { %788 = vrot.lane.b32.xlu1 %v2725_v45, %s2221_s20 }
  0xbe   : > { %v1253_v55 = vpop.permute.xlu0 %1252 }
  0xbf   : > { %1299 = vst.msk [vmem:[#allocation2 + $0x10] sm:$0xff] %vm1296_vm12, %v1253_v55  ;;  %v1255_v3 = vpop.permute.xlu1 %1254  ;;  %v1240_v55 = vrot.slane %v2989_v17, 5 }
  0xc0   : > { %1300 = vst.msk [vmem:[#allocation2 + $0x18] sm:$0xff] %vm1296_vm12, %v1255_v3  ;;  %1030 = vrot.lane.b32.xlu0 %v2685_v18, %s2220_s19  ;;  %v1397_v3 = vshrl.u32 %v3021_v58, 16 }
  0xc1   : > { %1032 = vrot.lane.b32.xlu1 %v2712_v10, %s2220_s19 }
  0xc2   : > { %v1323_v46 = vpop.permute.xlu0 %1322 }
  0xc3   : > { %1369 = vst.msk [vmem:[#allocation2 + $0x10] sm:$0xff] %vm1366_vm13, %v1323_v46  ;;  %v1325_v2 = vpop.permute.xlu1 %1324  ;;  %v1393_v46 = vshll.u32 %v3021_v58, 16 }
  0xc4   : > { %1370 = vst.msk [vmem:[#allocation2 + $0x18] sm:$0xff] %vm1366_vm13, %v1325_v2  ;;  %1100 = vrot.lane.b32.xlu0 %v2668_v19, %s2218_s17 }
  0xc5   : > { %1102 = vrot.lane.b32.xlu1 %v2697_v4, %s2218_s17 }
  0xc6   : > { %v1415_v5 = vpop.permute.xlu0 %1414 }
  0xc7   : > { %1461 = vst.msk [vmem:[#allocation2 + $0x10] sm:$0xff] %vm1458_vm14, %v1415_v5  ;;  %v1417_v15 = vpop.permute.xlu1 %1416  ;;  %v2046_v5 = vcombine.low %v2986_v27, %v2989_v17  ;;  %v1478_v17 = vrot.slane %v3021_v58, 5 }
  0xc8   : > { %1462 = vst.msk [vmem:[#allocation2 + $0x18] sm:$0xff] %vm1458_vm14, %v1417_v15  ;;  %1192 = vrot.lane.b32.xlu0 %v2725_v45, %s2222_s23 }
  0xc9   : > { %1194 = vrot.lane.b32.xlu1 %v2744_v23, %s2222_s23  ;;  %v1479_v52 = vsel %vm2286_vm5, %v2052_v28, %v1478_v17 }
  0xca   : > { %v1491_v18 = vpop.permute.xlu0 %1490 }
  0xcb   : > { %1537 = vst.msk [vmem:[#allocation2 + $0x10] sm:$0xff] %vm1534_vm15, %v1491_v18  ;;  %v775_v16 = vpop.permute.xlu1 %774 }
  0xcc   : > { %819 = vst.msk [vmem:[#allocation2 + $0x20] sm:$0xff] %vm814_vm8, %v775_v16  ;;  %1268 = vrot.lane.b32.xlu0 %v2712_v10, %s2219_s18  ;;  %v2048_v16 = vrot.slane %v2986_v27, 9 }
  0xcd   : > { %1270 = vrot.lane.b32.xlu1 %v2737_v12, %s2219_s18 }
  0xce   : > { %v1493_v19 = vpop.permute.xlu0 %1492 }
  0xcf   : > { %1538 = vst.msk [vmem:[#allocation2 + $0x18] sm:$0xff] %vm1534_vm15, %v1493_v19  ;;  %v777_v9 = vpop.permute.xlu1 %776  ;;  %v1386_v19 = vrot.slane %v1384_v54, 4 }
  0xd0   : > { %820 = vst.msk [vmem:[#allocation2 + $0x28] sm:$0xff] %vm814_vm8, %v777_v9  ;;  %1338 = vrot.lane.b32.xlu0 %v2697_v4, %s2223_s26  ;;  %v1389_v9 = vrot.slane %v1387_v56, 5 }
  0xd1   : > { %1340 = vrot.lane.b32.xlu1 %v2720_v40, %s2223_s26 }
  0xd2   : > { %v1019_v45 = vpop.permute.xlu0 %1018  ;;  %v1553_v20 = vld [vmem:[#allocation2 + $0x10] sm:$0xff] }
  0xd3   : > { %1063 = vst.msk [vmem:[#allocation2 + $0x20] sm:$0xff] %vm1058_vm9, %v1019_v45  ;;  %v1021_v10 = vpop.permute.xlu1 %1020  ;;  %2104 = vmatprep.mubr.msk.bf16.mxu0 %vm1587_vm0, %v1553_v20  ;;  %v1242_v20 = vrot.slane %v1240_v55, 4 }
  0xd4   : > { %1064 = vst.msk [vmem:[#allocation2 + $0x28] sm:$0xff] %vm1058_vm9, %v1021_v10  ;;  %1430 = vrot.lane.b32.xlu0 %v2744_v23, %s2224_s27  ;;  %v1243_v10 = vrot.slane %v214_v22, 5 }
  0xd5   : > { %1432 = vrot.lane.b32.xlu1 %v2770_v59, %s2224_s27 }
  0xd6   : > { %v1089_v11 = vpop.permute.xlu0 %1088  ;;  %v1554_v4 = vld [vmem:[#allocation2 + $0x18] sm:$0xff] }
  0xd7   : > { %1133 = vst.msk [vmem:[#allocation2 + $0x20] sm:$0xff] %vm1128_vm10, %v1089_v11  ;;  %v1091_v32 = vpop.permute.xlu1 %1090  ;;  %2105 = vmatmul.mubr.msk.bf16.gmra.mrb[4].mxu0 %vm1587_vm0, %v1554_v4  ;;  %v1399_v11 = vrot.slane %v1397_v3, 4 }
  0xd8   : > { %1134 = vst.msk [vmem:[#allocation2 + $0x28] sm:$0xff] %vm1128_vm10, %v1091_v32  ;;  %1506 = vrot.lane.b32.xlu0 %v2737_v12, %s2225_s28  ;;  %v217_v32 = vld [vmem:[%s2266_s16 + $0xd4] sm:$0x1] }
  0xd9   : > { %790 = vrot.lane.b32.xlu1 %v2744_v23, %s2221_s20 }
  0xda   : > { %v1181_v63 = vpop.permute.xlu0 %1180 }
  0xdb   : > { %1225 = vst.msk [vmem:[#allocation2 + $0x20] sm:$0xff] %vm1220_vm11, %v1181_v63  ;;  %v1183_v24 = vpop.permute.xlu1 %1182 }
  0xdc   : > { %1226 = vst.msk [vmem:[#allocation2 + $0x28] sm:$0xff] %vm1220_vm11, %v1183_v24  ;;  %1508 = vrot.lane.b32.xlu0 %v2764_v53, %s2225_s28  ;;  %v1390_v24 = vor.u32 %v1389_v9, %v1386_v19 }
  0xdd   : > { %792 = vrot.lane.b32.xlu1 %v2770_v59, %s2221_s20 }
  0xde   : > { %v1257_v44 = vpop.permute.xlu0 %1256 }
  0xdf   : > { %1301 = vst.msk [vmem:[#allocation2 + $0x20] sm:$0xff] %vm1296_vm12, %v1257_v44  ;;  %v1259_v25 = vpop.permute.xlu1 %1258 }
  0xe0   : > { %1302 = vst.msk [vmem:[#allocation2 + $0x28] sm:$0xff] %vm1296_vm12, %v1259_v25  ;;  %1034 = vrot.lane.b32.xlu0 %v2737_v12, %s2220_s19  ;;  %v1241_v25 = vsel %vm2286_vm5, %v2048_v16, %v1240_v55 }
  0xe1   : > { %1036 = vrot.lane.b32.xlu1 %v2764_v53, %s2220_s19 }
  0xe2   : > { %v1327_v23 = vpop.permute.xlu0 %1326 }
  0xe3   : > { %1371 = vst.msk [vmem:[#allocation2 + $0x20] sm:$0xff] %vm1366_vm13, %v1327_v23  ;;  %v1329_v30 = vpop.permute.xlu1 %1328  ;;  %v1244_v23 = vsel %vm2286_vm5, %v1242_v20, %v1243_v10 }
  0xe4   : > { %1372 = vst.msk [vmem:[#allocation2 + $0x28] sm:$0xff] %vm1366_vm13, %v1329_v30  ;;  %1104 = vrot.lane.b32.xlu0 %v2720_v40, %s2218_s17 }
  0xe5   : > { %1106 = vrot.lane.b32.xlu1 %v2747_v33, %s2218_s17 }
  0xe6   : > { %v1419_v51 = vpop.permute.xlu0 %1418 }
  0xe7   : > { %1463 = vst.msk [vmem:[#allocation2 + $0x20] sm:$0xff] %vm1458_vm14, %v1419_v51  ;;  %v1421_v12 = vpop.permute.xlu1 %1420  ;;  %v1403_v51 = vshll.u32 %v217_v32, 16 }
  0xe8   : > { %1464 = vst.msk [vmem:[#allocation2 + $0x28] sm:$0xff] %vm1458_vm14, %v1421_v12  ;;  %1196 = vrot.lane.b32.xlu0 %v2770_v59, %s2222_s23 }
  0xe9   : > { %1198 = vrot.lane.b32.xlu1 %v2791_v42, %s2222_s23 }
  0xea   : > { %v1495_v14 = vpop.permute.xlu0 %1494 }
  0xeb   : > { %1539 = vst.msk [vmem:[#allocation2 + $0x20] sm:$0xff] %vm1534_vm15, %v1495_v14  ;;  %v779_v40 = vpop.permute.xlu1 %778  ;;  %v1391_v14 = vrot.slane %v1390_v24, 4 }
  0xec   : > { %821 = vst.msk [vmem:[#allocation2 + $0x30] sm:$0xff] %vm814_vm8, %v779_v40  ;;  %1272 = vrot.lane.b32.xlu0 %v2764_v53, %s2219_s18  ;;  %v1149_v53 = vshll.u32 %v2986_v27, 16 }
  0xed   : > { %1274 = vrot.lane.b32.xlu1 %v2793_v49, %s2219_s18 }
  0xee   : > { %v1497_v35 = vpop.permute.xlu0 %1496  ;;  %v1151_v29 = vrot.slane %v1149_v53, 5 }
  0xef   : > { %1540 = vst.msk [vmem:[#allocation2 + $0x28] sm:$0xff] %vm1534_vm15, %v1497_v35  ;;  %v781_v59 = vpop.permute.xlu1 %780  ;;  %v1405_v35 = vrot.slane %v1403_v51, 5 }
  0xf0   : > { %822 = vst.msk [vmem:[#allocation2 + $0x38] sm:$0xff] %vm814_vm8, %v781_v59  ;;  %1342 = vrot.lane.b32.xlu0 %v2747_v33, %s2223_s26  ;;  %v1148_v33 = vrot.slane %v1146_v21, 4 }
  0xf1   : > { %1344 = vrot.lane.b32.xlu1 %v2774_v43, %s2223_s26 }
  0xf2   : > { %v1023_v7 = vpop.permute.xlu0 %1022  ;;  %v1555_v31 = vld [vmem:[#allocation2 + $0x20] sm:$0xff]  ;;  %v1152_v1 = vor.u32 %v1151_v29, %v1148_v33 }
  0xf3   : > { %1065 = vst.msk [vmem:[#allocation2 + $0x30] sm:$0xff] %vm1058_vm9, %v1023_v7  ;;  %v1025_v37 = vpop.permute.xlu1 %1024  ;;  %2108 = vmatprep.mubr.msk.bf16.mxu0 %vm1587_vm0, %v1555_v31  ;;  %v1480_v7 = vrot.slane %v1478_v17, 4  ;;  %v1481_v31 = vrot.slane %v217_v32, 5 }
  0xf4   : > { %1066 = vst.msk [vmem:[#allocation2 + $0x38] sm:$0xff] %vm1058_vm9, %v1025_v37  ;;  %1434 = vrot.lane.b32.xlu0 %v2791_v42, %s2224_s27  ;;  %v1153_v48 = vrot.slane %v1152_v1, 4 }
  0xf5   : > { %1436 = vrot.lane.b32.xlu1 %v2817_v47, %s2224_s27 }
  0xf6   : > { %v1093_v36 = vpop.permute.xlu0 %1092  ;;  %v1556_v6 = vld [vmem:[#allocation2 + $0x28] sm:$0xff]  ;;  %v1158_v15 = vsel %vm2323_vm6, %v1153_v48, %v1157_v0  ;;  %v1482_v0 = vsel %vm2286_vm5, %v1480_v7, %v1481_v31 }
  0xf7   : > { %1135 = vst.msk [vmem:[#allocation2 + $0x30] sm:$0xff] %vm1128_vm10, %v1093_v36  ;;  %v1095_v50 = vpop.permute.xlu1 %1094  ;;  %2109 = vmatmul.mubr.msk.bf16.gmra.mrb[8].mxu0 %vm1587_vm0, %v1556_v6  ;;  %v2053_v36 = vcombine.low %v1479_v52, %v1482_v0 }
  0xf8   : > { %1136 = vst.msk [vmem:[#allocation2 + $0x38] sm:$0xff] %vm1128_vm10, %v1095_v50  ;;  %1510 = vrot.lane.b32.xlu0 %v2793_v49, %s2225_s28 }
  0xf9   : > { %794 = vrot.lane.b32.xlu1 %v2791_v42, %s2221_s20  ;;  %v1163_v42 = vrot.slane %v1162_v60, 4 }
  0xfa   : > { %v1185_v57 = vpop.permute.xlu0 %1184 }
  0xfb   : > { %1227 = vst.msk [vmem:[#allocation2 + $0x30] sm:$0xff] %vm1220_vm11, %v1185_v57  ;;  %v1187_v34 = vpop.permute.xlu1 %1186  ;;  %v1168_v18 = vsel %vm2323_vm6, %v1163_v42, %v1167_v8 }
  0xfc   : > { %1228 = vst.msk [vmem:[#allocation2 + $0x38] sm:$0xff] %vm1220_vm11, %v1187_v34  ;;  %1512 = vrot.lane.b32.xlu0 %v2814_v41, %s2225_s28  ;;  %v2047_v63 = vcombine.low %v1158_v15, %v1168_v18 }
  0xfd   : > { %796 = vrot.lane.b32.xlu1 %v2817_v47, %s2221_s20 }
  0xfe   : > { %v1261_v61 = vpop.permute.xlu0 %1260 }
  0xff   : > { %1303 = vst.msk [vmem:[#allocation2 + $0x30] sm:$0xff] %vm1296_vm12, %v1261_v61  ;;  %v1263_v2 = vpop.permute.xlu1 %1262 }
 0x100   : > { %1304 = vst.msk [vmem:[#allocation2 + $0x38] sm:$0xff] %vm1296_vm12, %v1263_v2  ;;  %1038 = vrot.lane.b32.xlu0 %v2793_v49, %s2220_s19  ;;  %v1395_v49 = vrot.slane %v1393_v46, 5 }
 0x101   : > { %1040 = vrot.lane.b32.xlu1 %v2814_v41, %s2220_s19 }
 0x102   : > { %v1331_v45 = vpop.permute.xlu0 %1330  ;;  %v1400_v30 = vor.u32 %v1399_v11, %v1395_v49  ;;  %v1396_v21 = vsel %vm2323_vm6, %v1391_v14, %v1395_v49 }
 0x103   : > { %1373 = vst.msk [vmem:[#allocation2 + $0x30] sm:$0xff] %vm1366_vm13, %v1331_v45  ;;  %v1333_v4 = vpop.permute.xlu1 %1332 }
 0x104   : > { %1374 = vst.msk [vmem:[#allocation2 + $0x38] sm:$0xff] %vm1366_vm13, %v1333_v4  ;;  %1108 = vrot.lane.b32.xlu0 %v2774_v43, %s2218_s17  ;;  %v2049_v43 = vcombine.low %v1241_v25, %v1244_v23  ;;  %v1401_v27 = vrot.slane %v1400_v30, 4 }
 0x105   : > { %1110 = vrot.lane.b32.xlu1 %v2046_v5, %s2218_s17 }
 0x106   : > { %v1423_v44 = vpop.permute.xlu0 %1422  ;;  %v1406_v62 = vsel %vm2323_vm6, %v1401_v27, %v1405_v35 }
 0x107   : > { %1465 = vst.msk [vmem:[#allocation2 + $0x30] sm:$0xff] %vm1458_vm14, %v1423_v44  ;;  %v1425_v12 = vpop.permute.xlu1 %1424 }
 0x108   : > { %1466 = vst.msk [vmem:[#allocation2 + $0x38] sm:$0xff] %vm1458_vm14, %v1425_v12  ;;  %1200 = vrot.lane.b32.xlu0 %v2817_v47, %s2222_s23  ;;  %v2050_v47 = vcombine.low %v3017_v38, %v3021_v58 }
 0x109   : > { %1202 = vrot.lane.b32.xlu1 %v2047_v63, %s2222_s23 }
 0x10a   : > { %v1499_v40 = vpop.permute.xlu0 %1498 }
 0x10b   : > { %1541 = vst.msk [vmem:[#allocation2 + $0x30] sm:$0xff] %vm1534_vm15, %v1499_v40  ;;  %v783_v59 = vpop.permute.xlu1 %782 }
 0x10c   : > { %823 = vst.msk [vmem:[#allocation2 + $0x40] sm:$0xff] %vm814_vm8, %v783_v59  ;;  %1276 = vrot.lane.b32.xlu0 %v2814_v41, %s2219_s18  ;;  %v2051_v41 = vcombine.low %v1396_v21, %v1406_v62 }
 0x10d   : > { %1278 = vrot.lane.b32.xlu1 %v2049_v43, %s2219_s18 }
 0x10e   : > { %v1501_v53 = vpop.permute.xlu0 %1500 }
 0x10f   : > { %1542 = vst.msk [vmem:[#allocation2 + $0x38] sm:$0xff] %vm1534_vm15, %v1501_v53  ;;  %v785_v37 = vpop.permute.xlu1 %784 }
 0x110   : > { %824 = vst.msk [vmem:[#allocation2 + $0x48] sm:$0xff] %vm814_vm8, %v785_v37  ;;  %1346 = vrot.lane.b32.xlu0 %v2046_v5, %s2223_s26 }
 0x111   : > { %1348 = vrot.lane.b32.xlu1 %v2050_v47, %s2223_s26 }
 0x112   : > { %v1027_v33 = vpop.permute.xlu0 %1026  ;;  %v1557_v29 = vld [vmem:[#allocation2 + $0x30] sm:$0xff] }
 0x113   : > { %1067 = vst.msk [vmem:[#allocation2 + $0x40] sm:$0xff] %vm1058_vm9, %v1027_v33  ;;  %v1029_v26 = vpop.permute.xlu1 %1028  ;;  %2112 = vmatprep.mubr.msk.bf16.mxu0 %vm1587_vm0, %v1557_v29 }
 0x114   : > { %1068 = vst.msk [vmem:[#allocation2 + $0x48] sm:$0xff] %vm1058_vm9, %v1029_v26  ;;  %1438 = vrot.lane.b32.xlu0 %v2047_v63, %s2224_s27 }
 0x115   : > { %1440 = vrot.lane.b32.xlu1 %v2051_v41, %s2224_s27 }
 0x116   : > { %v1097_v6 = vpop.permute.xlu0 %1096  ;;  %v1558_v22 = vld [vmem:[#allocation2 + $0x38] sm:$0xff] }
 0x117   : > { %1137 = vst.msk [vmem:[#allocation2 + $0x40] sm:$0xff] %vm1128_vm10, %v1097_v6  ;;  %v1099_v50 = vpop.permute.xlu1 %1098  ;;  %2113 = vmatmul.mubr.msk.bf16.gmra.mrb[12].mxu0 %vm1587_vm0, %v1558_v22 }
 0x118   : > { %1138 = vst.msk [vmem:[#allocation2 + $0x48] sm:$0xff] %vm1128_vm10, %v1099_v50  ;;  %1514 = vrot.lane.b32.xlu0 %v2049_v43, %s2225_s28 }
 0x119   : > { %1516 = vrot.lane.b32.xlu1 %v2053_v36, %s2225_s28 }
 0x11a   : > { %v1189_v13 = vpop.permute.xlu0 %1188 }
 0x11b   : > { %1229 = vst.msk [vmem:[#allocation2 + $0x40] sm:$0xff] %vm1220_vm11, %v1189_v13  ;;  %v1191_v1 = vpop.permute.xlu1 %1190 }
 0x11c   : > { %1230 = vst.msk [vmem:[#allocation2 + $0x48] sm:$0xff] %vm1220_vm11, %v1191_v1 }
 0x11e   : > { %v1265_v60 = vpop.permute.xlu0 %1264 }
 0x11f   : > { %1305 = vst.msk [vmem:[#allocation2 + $0x40] sm:$0xff] %vm1296_vm12, %v1265_v60  ;;  %v1267_v39 = vpop.permute.xlu1 %1266 }
 0x120   : > { %1306 = vst.msk [vmem:[#allocation2 + $0x48] sm:$0xff] %vm1296_vm12, %v1267_v39 }
 0x122   : > { %v1335_v57 = vpop.permute.xlu0 %1334 }
 0x123   : > { %1375 = vst.msk [vmem:[#allocation2 + $0x40] sm:$0xff] %vm1366_vm13, %v1335_v57  ;;  %v1337_v38 = vpop.permute.xlu1 %1336 }
 0x124   : > { %1376 = vst.msk [vmem:[#allocation2 + $0x48] sm:$0xff] %vm1366_vm13, %v1337_v38 }
 0x126   : > { %v1427_v34 = vpop.permute.xlu0 %1426 }
 0x127   : > { %1467 = vst.msk [vmem:[#allocation2 + $0x40] sm:$0xff] %vm1458_vm14, %v1427_v34  ;;  %v1429_v58 = vpop.permute.xlu1 %1428 }
 0x128   : > { %1468 = vst.msk [vmem:[#allocation2 + $0x48] sm:$0xff] %vm1458_vm14, %v1429_v58 }
 0x12a   : > { %v1503_v48 = vpop.permute.xlu0 %1502 }
 0x12b   : > { %1543 = vst.msk [vmem:[#allocation2 + $0x40] sm:$0xff] %vm1534_vm15, %v1503_v48  ;;  %v787_v42 = vpop.permute.xlu1 %786 }
 0x12c   : > { %825 = vst.msk [vmem:[#allocation2 + $0x50] sm:$0xff] %vm814_vm8, %v787_v42 }
 0x12e   : > { %v1505_v8 = vpop.permute.xlu0 %1504 }
 0x12f   : > { %1544 = vst.msk [vmem:[#allocation2 + $0x48] sm:$0xff] %vm1534_vm15, %v1505_v8  ;;  %v789_v54 = vpop.permute.xlu1 %788 }
 0x130   : > { %826 = vst.msk [vmem:[#allocation2 + $0x58] sm:$0xff] %vm814_vm8, %v789_v54 }
 0x132   : > { %v1031_v56 = vpop.permute.xlu0 %1030  ;;  %v1559_v61 = vld [vmem:[#allocation2 + $0x40] sm:$0xff] }
 0x133   : > { %1069 = vst.msk [vmem:[#allocation2 + $0x50] sm:$0xff] %vm1058_vm9, %v1031_v56  ;;  %v1033_v55 = vpop.permute.xlu1 %1032  ;;  %2116 = vmatprep.mubr.msk.bf16.mxu1 %vm1587_vm0, %v1559_v61 }
 0x134   : > { %1070 = vst.msk [vmem:[#allocation2 + $0x58] sm:$0xff] %vm1058_vm9, %v1033_v55 }
 0x136   : > { %v1101_v3 = vpop.permute.xlu0 %1100  ;;  %v1560_v46 = vld [vmem:[#allocation2 + $0x48] sm:$0xff] }
 0x137   : > { %1139 = vst.msk [vmem:[#allocation2 + $0x50] sm:$0xff] %vm1128_vm10, %v1101_v3  ;;  %v1103_v2 = vpop.permute.xlu1 %1102  ;;  %2117 = vmatmul.mubr.msk.bf16.vlgmr.msra.gmra.mrb[0].mxu1 %vm1587_vm0, %v1560_v46 }
 0x138   : > { %1140 = vst.msk [vmem:[#allocation2 + $0x58] sm:$0xff] %vm1128_vm10, %v1103_v2 }
 0x13a   : > { %v1193_v5 = vpop.permute.xlu0 %1192 }
 0x13b   : > { %1231 = vst.msk [vmem:[#allocation2 + $0x50] sm:$0xff] %vm1220_vm11, %v1193_v5  ;;  %v1195_v15 = vpop.permute.xlu1 %1194 }
 0x13c   : > { %1232 = vst.msk [vmem:[#allocation2 + $0x58] sm:$0xff] %vm1220_vm11, %v1195_v15 }
 0x13e   : > { %v1269_v18 = vpop.permute.xlu0 %1268 }
 0x13f   : > { %1307 = vst.msk [vmem:[#allocation2 + $0x50] sm:$0xff] %vm1296_vm12, %v1269_v18  ;;  %v1271_v16 = vpop.permute.xlu1 %1270 }
 0x140   : > { %1308 = vst.msk [vmem:[#allocation2 + $0x58] sm:$0xff] %vm1296_vm12, %v1271_v16 }
 0x142   : > { %v1339_v19 = vpop.permute.xlu0 %1338 }
 0x143   : > { %1377 = vst.msk [vmem:[#allocation2 + $0x50] sm:$0xff] %vm1366_vm13, %v1339_v19  ;;  %v1341_v9 = vpop.permute.xlu1 %1340 }
 0x144   : > { %1378 = vst.msk [vmem:[#allocation2 + $0x58] sm:$0xff] %vm1366_vm13, %v1341_v9 }
 0x146   : > { %v1431_v45 = vpop.permute.xlu0 %1430 }
 0x147   : > { %1469 = vst.msk [vmem:[#allocation2 + $0x50] sm:$0xff] %vm1458_vm14, %v1431_v45  ;;  %v1433_v20 = vpop.permute.xlu1 %1432 }
 0x148   : > { %1470 = vst.msk [vmem:[#allocation2 + $0x58] sm:$0xff] %vm1458_vm14, %v1433_v20 }
 0x14a   : > { %v1507_v10 = vpop.permute.xlu0 %1506 }
 0x14b   : > { %1545 = vst.msk [vmem:[#allocation2 + $0x50] sm:$0xff] %vm1534_vm15, %v1507_v10  ;;  %v791_v49 = vpop.permute.xlu1 %790 }
 0x14c   : > { %827 = vst.msk [vmem:[#allocation2 + $0x60] sm:$0xff] %vm814_vm8, %v791_v49 }
 0x14e   : > { %v1509_v11 = vpop.permute.xlu0 %1508 }
 0x14f   : > { %1546 = vst.msk [vmem:[#allocation2 + $0x58] sm:$0xff] %vm1534_vm15, %v1509_v11  ;;  %v793_v4 = vpop.permute.xlu1 %792 }
 0x150   : > { %828 = vst.msk [vmem:[#allocation2 + $0x68] sm:$0xff] %vm814_vm8, %v793_v4 }
 0x152   : > { %v1035_v32 = vpop.permute.xlu0 %1034  ;;  %v1561_v63 = vld [vmem:[#allocation2 + $0x50] sm:$0xff] }
 0x153   : > { %1071 = vst.msk [vmem:[#allocation2 + $0x60] sm:$0xff] %vm1058_vm9, %v1035_v32  ;;  %v1037_v24 = vpop.permute.xlu1 %1036  ;;  %2120 = vmatprep.mubr.msk.bf16.mxu1 %vm1587_vm0, %v1561_v63 }
 0x154   : > { %1072 = vst.msk [vmem:[#allocation2 + $0x68] sm:$0xff] %vm1058_vm9, %v1037_v24 }
 0x156   : > { %v1105_v44 = vpop.permute.xlu0 %1104  ;;  %v1562_v25 = vld [vmem:[#allocation2 + $0x58] sm:$0xff] }
 0x157   : > { %1141 = vst.msk [vmem:[#allocation2 + $0x60] sm:$0xff] %vm1128_vm10, %v1105_v44  ;;  %v1107_v23 = vpop.permute.xlu1 %1106  ;;  %2121 = vmatmul.mubr.msk.bf16.gmra.mrb[4].mxu1 %vm1587_vm0, %v1562_v25 }
 0x158   : > { %1142 = vst.msk [vmem:[#allocation2 + $0x68] sm:$0xff] %vm1128_vm10, %v1107_v23 }
 0x15a   : > { %v1197_v30 = vpop.permute.xlu0 %1196 }
 0x15b   : > { %1233 = vst.msk [vmem:[#allocation2 + $0x60] sm:$0xff] %vm1220_vm11, %v1197_v30  ;;  %v1199_v51 = vpop.permute.xlu1 %1198 }
 0x15c   : > { %1234 = vst.msk [vmem:[#allocation2 + $0x68] sm:$0xff] %vm1220_vm11, %v1199_v51 }
 0x15e   : > { %v1273_v12 = vpop.permute.xlu0 %1272 }
 0x15f   : > { %1309 = vst.msk [vmem:[#allocation2 + $0x60] sm:$0xff] %vm1296_vm12, %v1273_v12  ;;  %v1275_v43 = vpop.permute.xlu1 %1274 }
 0x160   : > { %1310 = vst.msk [vmem:[#allocation2 + $0x68] sm:$0xff] %vm1296_vm12, %v1275_v43 }
 0x162   : > { %v1343_v14 = vpop.permute.xlu0 %1342 }
 0x163   : > { %1379 = vst.msk [vmem:[#allocation2 + $0x60] sm:$0xff] %vm1366_vm13, %v1343_v14  ;;  %v1345_v40 = vpop.permute.xlu1 %1344 }
 0x164   : > { %1380 = vst.msk [vmem:[#allocation2 + $0x68] sm:$0xff] %vm1366_vm13, %v1345_v40 }
 0x166   : > { %v1435_v27 = vpop.permute.xlu0 %1434 }
 0x167   : > { %1471 = vst.msk [vmem:[#allocation2 + $0x60] sm:$0xff] %vm1458_vm14, %v1435_v27  ;;  %v1437_v35 = vpop.permute.xlu1 %1436 }
 0x168   : > { %1472 = vst.msk [vmem:[#allocation2 + $0x68] sm:$0xff] %vm1458_vm14, %v1437_v35 }
 0x16a   : > { %v1511_v17 = vpop.permute.xlu0 %1510 }
 0x16b   : > { %1547 = vst.msk [vmem:[#allocation2 + $0x60] sm:$0xff] %vm1534_vm15, %v1511_v17  ;;  %v795_v59 = vpop.permute.xlu1 %794 }
 0x16c   : > { %829 = vst.msk [vmem:[#allocation2 + $0x70] sm:$0xff] %vm814_vm8, %v795_v59 }
 0x16e   : > { %v1513_v47 = vpop.permute.xlu0 %1512 }
 0x16f   : > { %1548 = vst.msk [vmem:[#allocation2 + $0x68] sm:$0xff] %vm1534_vm15, %v1513_v47  ;;  %v797_v21 = vpop.permute.xlu1 %796 }
 0x170   : > { %830 = vst.msk [vmem:[#allocation2 + $0x78] sm:$0xff] %vm814_vm8, %v797_v21 }
 0x172   : > { %v1039_v53 = vpop.permute.xlu0 %1038  ;;  %v1563_v62 = vld [vmem:[#allocation2 + $0x60] sm:$0xff] }
 0x173   : > { %1073 = vst.msk [vmem:[#allocation2 + $0x70] sm:$0xff] %vm1058_vm9, %v1039_v53  ;;  %v1041_v28 = vpop.permute.xlu1 %1040  ;;  %2124 = vmatprep.mubr.msk.bf16.mxu1 %vm1587_vm0, %v1563_v62 }
 0x174   : > { %1074 = vst.msk [vmem:[#allocation2 + $0x78] sm:$0xff] %vm1058_vm9, %v1041_v28 }
 0x176   : > { %v1109_v7 = vpop.permute.xlu0 %1108  ;;  %v1564_v31 = vld [vmem:[#allocation2 + $0x68] sm:$0xff] }
 0x177   : > { %1143 = vst.msk [vmem:[#allocation2 + $0x70] sm:$0xff] %vm1128_vm10, %v1109_v7  ;;  %v1111_v37 = vpop.permute.xlu1 %1110  ;;  %2125 = vmatmul.mubr.msk.bf16.gmra.mrb[8].mxu1 %vm1587_vm0, %v1564_v31 }
 0x178   : > { %1144 = vst.msk [vmem:[#allocation2 + $0x78] sm:$0xff] %vm1128_vm10, %v1111_v37 }
 0x17a   : > { %v1201_v41 = vpop.permute.xlu0 %1200 }
 0x17b   : > { %1235 = vst.msk [vmem:[#allocation2 + $0x70] sm:$0xff] %vm1220_vm11, %v1201_v41  ;;  %v1203_v33 = vpop.permute.xlu1 %1202  ;;  %v2226_v41 = vmov 0.0  }
 0x17c   : > { %1236 = vst.msk [vmem:[#allocation2 + $0x78] sm:$0xff] %vm1220_vm11, %v1203_v33  ;;  %159 = vst [vmem:[%s3162_s6] sm:$0x3] %v2226_v41 }
 0x17e   : > { %v1277_v29 = vpop.permute.xlu0 %1276 }
 0x17f   : > { %1311 = vst.msk [vmem:[#allocation2 + $0x70] sm:$0xff] %vm1296_vm12, %v1277_v29  ;;  %v1279_v52 = vpop.permute.xlu1 %1278 }
 0x180   : > { %1312 = vst.msk [vmem:[#allocation2 + $0x78] sm:$0xff] %vm1296_vm12, %v1279_v52 }
 0x182   : > { %v1347_v0 = vpop.permute.xlu0 %1346 }
 0x183   : > { %1381 = vst.msk [vmem:[#allocation2 + $0x70] sm:$0xff] %vm1366_vm13, %v1347_v0  ;;  %v1349_v26 = vpop.permute.xlu1 %1348 }
 0x184   : > { %1382 = vst.msk [vmem:[#allocation2 + $0x78] sm:$0xff] %vm1366_vm13, %v1349_v26 }
 0x186   : > { %v1439_v36 = vpop.permute.xlu0 %1438 }
 0x187   : > { %1473 = vst.msk [vmem:[#allocation2 + $0x70] sm:$0xff] %vm1458_vm14, %v1439_v36  ;;  %v1441_v6 = vpop.permute.xlu1 %1440 }
 0x188   : > { %1474 = vst.msk [vmem:[#allocation2 + $0x78] sm:$0xff] %vm1458_vm14, %v1441_v6 }
 0x18a   : > { %v1515_v22 = vpop.permute.xlu0 %1514  ;;  %v2102_v50 = vpop.f32.mrb[0].mxu0 }
 0x18b   : > { %1549 = vst.msk [vmem:[#allocation2 + $0x70] sm:$0xff] %vm1534_vm15, %v1515_v22  ;;  %v1517_v13 = vpop.permute.xlu1 %1516  ;;  %v1674_v1 = vpop.f32.mrb[1].mxu0  ;;  %v1840_v58 = vmul.f32 %v2102_v50, %v2102_v50 }
 0x18c   : > { %1550 = vst.msk [vmem:[#allocation2 + $0x78] sm:$0xff] %vm1534_vm15, %v1517_v13  ;;  %v2103_v60 = vpop.f32.mrb[2].mxu0  ;;  %v1838_v57 = vmul.f32 %v1674_v1, %v1674_v1 }
 0x18d   : > { %v1677_v39 = vpop.f32.mrb[3].mxu0  ;;  %v1841_v8 = vmul.f32 %v2103_v60, %v2103_v60 }
 0x18e   : > { %v1801_v38 = vadd.f32 %v1677_v39, %v1674_v1  ;;  %v1839_v34 = vmul.f32 %v1677_v39, %v1677_v39 }
 0x190   : > { %v1802_v48 = vadd.f32 %v2102_v50, %v1801_v38  ;;  %v1870_v42 = vadd.f32 %v1839_v34, %v1838_v57 }
 0x192   : > { %v1871_v54 = vadd.f32 %v1870_v42, %v1840_v58  ;;  %v1565_v56 = vld [vmem:[#allocation2 + $0x70] sm:$0xff]  ;;  %v1803_v61 = vadd.f32 %v2103_v60, %v1802_v48 }
 0x193   : > { %2128 = vmatprep.mubr.msk.bf16.mxu1 %vm1587_vm0, %v1565_v56  ;;  %v1566_v55 = vld [vmem:[#allocation2 + $0x78] sm:$0xff] }
 0x194   : > { %2129 = vmatmul.mubr.msk.bf16.gmra.mrb[12].mxu1 %vm1587_vm0, %v1566_v55  ;;  %v1872_v3 = vadd.f32 %v1871_v54, %v1841_v8 }
 0x1aa   : > { %v2106_v46 = vpop.f32.mrb[4].mxu0 }
 0x1ab   : > { %v1690_v2 = vpop.f32.mrb[5].mxu0  ;;  %v1844_v20 = vmul.f32 %v2106_v46, %v2106_v46 }
 0x1ac   : > { %v1804_v5 = vadd.f32 %v1803_v61, %v1690_v2  ;;  %v1842_v15 = vmul.f32 %v1690_v2, %v1690_v2  ;;  %v2107_v18 = vpop.f32.mrb[6].mxu0 }
 0x1ad   : > { %v1693_v16 = vpop.f32.mrb[7].mxu0  ;;  %v1845_v11 = vmul.f32 %v2107_v18, %v2107_v18 }
 0x1ae   : > { %v1873_v19 = vadd.f32 %v1872_v3, %v1842_v15  ;;  %v1805_v9 = vadd.f32 %v1804_v5, %v1693_v16  ;;  %v1843_v45 = vmul.f32 %v1693_v16, %v1693_v16 }
 0x1b0   : > { %v1806_v10 = vadd.f32 %v2106_v46, %v1805_v9  ;;  %v1874_v49 = vadd.f32 %v1873_v19, %v1843_v45 }
 0x1b2   : > { %v1875_v4 = vadd.f32 %v1874_v49, %v1844_v20  ;;  %v1807_v32 = vadd.f32 %v2107_v18, %v1806_v10 }
 0x1b4   : > { %v1876_v63 = vadd.f32 %v1875_v4, %v1845_v11 }
 0x1ca   : > { %v2110_v24 = vpop.f32.mrb[8].mxu0 }
 0x1cb   : > { %v1706_v44 = vpop.f32.mrb[9].mxu0  ;;  %v1848_v40 = vmul.f32 %v2110_v24, %v2110_v24 }
 0x1cc   : > { %v1808_v25 = vadd.f32 %v1807_v32, %v1706_v44  ;;  %v1846_v23 = vmul.f32 %v1706_v44, %v1706_v44  ;;  %v2111_v30 = vpop.f32.mrb[10].mxu0 }
 0x1cd   : > { %v1709_v51 = vpop.f32.mrb[11].mxu0  ;;  %v1849_v17 = vmul.f32 %v2111_v30, %v2111_v30 }
 0x1ce   : > { %v1877_v12 = vadd.f32 %v1876_v63, %v1846_v23  ;;  %v1809_v43 = vadd.f32 %v1808_v25, %v1709_v51  ;;  %v1847_v14 = vmul.f32 %v1709_v51, %v1709_v51 }
 0x1d0   : > { %v1810_v27 = vadd.f32 %v2110_v24, %v1809_v43  ;;  %v1878_v35 = vadd.f32 %v1877_v12, %v1847_v14 }
 0x1d2   : > { %v1879_v59 = vadd.f32 %v1878_v35, %v1848_v40  ;;  %v1811_v47 = vadd.f32 %v2111_v30, %v1810_v27 }
 0x1d4   : > { %v1880_v21 = vadd.f32 %v1879_v59, %v1849_v17 }
 0x1ea   : > { %v2114_v53 = vpop.f32.mrb[12].mxu0 }
 0x1eb   : > { %v1722_v62 = vpop.f32.mrb[13].mxu0  ;;  %v1852_v0 = vmul.f32 %v2114_v53, %v2114_v53 }
 0x1ec   : > { %v1812_v28 = vadd.f32 %v1811_v47, %v1722_v62  ;;  %v1850_v7 = vmul.f32 %v1722_v62, %v1722_v62  ;;  %v2115_v31 = vpop.f32.mrb[14].mxu0 }
 0x1ed   : > { %v1725_v37 = vpop.f32.mrb[15].mxu0  ;;  %v1853_v6 = vmul.f32 %v2115_v31, %v2115_v31 }
 0x1ee   : > { %v1881_v33 = vadd.f32 %v1880_v21, %v1850_v7  ;;  %v1813_v29 = vadd.f32 %v1812_v28, %v1725_v37  ;;  %v1851_v52 = vmul.f32 %v1725_v37, %v1725_v37 }
 0x1f0   : > { %v1814_v26 = vadd.f32 %v2114_v53, %v1813_v29  ;;  %v1882_v36 = vadd.f32 %v1881_v33, %v1851_v52 }
 0x1f2   : > { %v1883_v22 = vadd.f32 %v1882_v36, %v1852_v0  ;;  %v1815_v50 = vadd.f32 %v2115_v31, %v1814_v26 }
 0x1f4   : > { %v1884_v13 = vadd.f32 %v1883_v22, %v1853_v6 }
 0x20a   : > { %v2118_v1 = vpop.f32.mrb[0].mxu1 }
 0x20b   : > { %v1738_v60 = vpop.f32.mrb[1].mxu1  ;;  %v1856_v8 = vmul.f32 %v2118_v1, %v2118_v1 }
 0x20c   : > { %v1816_v39 = vadd.f32 %v1815_v50, %v1738_v60  ;;  %v1854_v57 = vmul.f32 %v1738_v60, %v1738_v60  ;;  %v2119_v38 = vpop.f32.mrb[2].mxu1 }
 0x20d   : > { %v1741_v34 = vpop.f32.mrb[3].mxu1  ;;  %v1857_v61 = vmul.f32 %v2119_v38, %v2119_v38 }
 0x20e   : > { %v1885_v58 = vadd.f32 %v1884_v13, %v1854_v57  ;;  %v1817_v48 = vadd.f32 %v1816_v39, %v1741_v34  ;;  %v1855_v42 = vmul.f32 %v1741_v34, %v1741_v34 }
 0x210   : > { %v1818_v54 = vadd.f32 %v2118_v1, %v1817_v48  ;;  %v1886_v56 = vadd.f32 %v1885_v58, %v1855_v42 }
 0x212   : > { %v1887_v55 = vadd.f32 %v1886_v56, %v1856_v8  ;;  %v1819_v3 = vadd.f32 %v2119_v38, %v1818_v54 }
 0x214   : > { %v1888_v46 = vadd.f32 %v1887_v55, %v1857_v61  ;;  %v1907_v61 = vld [vmem:[%s3162_s6] sm:$0x3] }
 0x22a   : > { %v2122_v2 = vpop.f32.mrb[4].mxu1 }
 0x22b   : > { %v1754_v5 = vpop.f32.mrb[5].mxu1  ;;  %v1860_v10 = vmul.f32 %v2122_v2, %v2122_v2 }
 0x22c   : > { %v1820_v15 = vadd.f32 %v1819_v3, %v1754_v5  ;;  %v1858_v18 = vmul.f32 %v1754_v5, %v1754_v5  ;;  %v2123_v16 = vpop.f32.mrb[6].mxu1 }
 0x22d   : > { %v1757_v19 = vpop.f32.mrb[7].mxu1  ;;  %v1861_v4 = vmul.f32 %v2123_v16, %v2123_v16 }
 0x22e   : > { %v1889_v9 = vadd.f32 %v1888_v46, %v1858_v18  ;;  %v1821_v45 = vadd.f32 %v1820_v15, %v1757_v19  ;;  %v1859_v20 = vmul.f32 %v1757_v19, %v1757_v19 }
 0x230   : > { %v1822_v49 = vadd.f32 %v2122_v2, %v1821_v45  ;;  %v1890_v11 = vadd.f32 %v1889_v9, %v1859_v20 }
 0x232   : > { %v1891_v32 = vadd.f32 %v1890_v11, %v1860_v10  ;;  %v1823_v63 = vadd.f32 %v2123_v16, %v1822_v49 }
 0x234   : > { %v1892_v24 = vadd.f32 %v1891_v32, %v1861_v4 }
 0x24a   : > { %v2126_v44 = vpop.f32.mrb[8].mxu1 }
 0x24b   : > { %v1770_v25 = vpop.f32.mrb[9].mxu1  ;;  %v1864_v27 = vmul.f32 %v2126_v44, %v2126_v44 }
 0x24c   : > { %v1824_v23 = vadd.f32 %v1823_v63, %v1770_v25  ;;  %v1862_v30 = vmul.f32 %v1770_v25, %v1770_v25  ;;  %v2127_v51 = vpop.f32.mrb[10].mxu1 }
 0x24d   : > { %v1773_v12 = vpop.f32.mrb[11].mxu1  ;;  %v1865_v59 = vmul.f32 %v2127_v51, %v2127_v51 }
 0x24e   : > { %v1893_v43 = vadd.f32 %v1892_v24, %v1862_v30  ;;  %v1825_v14 = vadd.f32 %v1824_v23, %v1773_v12  ;;  %v1863_v40 = vmul.f32 %v1773_v12, %v1773_v12 }
 0x250   : > { %v1826_v35 = vadd.f32 %v2126_v44, %v1825_v14  ;;  %v1894_v17 = vadd.f32 %v1893_v43, %v1863_v40 }
 0x252   : > { %v1895_v47 = vadd.f32 %v1894_v17, %v1864_v27  ;;  %v1827_v21 = vadd.f32 %v2127_v51, %v1826_v35 }
 0x254   : > { %v1896_v53 = vadd.f32 %v1895_v47, %v1865_v59 }
 0x267   : > { %v2130_v62 = vpop.f32.mrb[12].mxu1 }
 0x268   : > { %v1786_v28 = vpop.f32.mrb[13].mxu1  ;;  %v1868_v0 = vmul.f32 %v2130_v62, %v2130_v62 }
 0x269   : > { %v1828_v7 = vadd.f32 %v1827_v21, %v1786_v28  ;;  %v1866_v31 = vmul.f32 %v1786_v28, %v1786_v28  ;;  %v2131_v37 = vpop.f32.mrb[14].mxu1 }
 0x26a   : > { %v1789_v41 = vpop.f32.mrb[15].mxu1  ;;  %v1869_v6 = vmul.f32 %v2131_v37, %v2131_v37 }
 0x26b   : > { %v1897_v33 = vadd.f32 %v1896_v53, %v1866_v31  ;;  %v1829_v29 = vadd.f32 %v1828_v7, %v1789_v41  ;;  %v1867_v52 = vmul.f32 %v1789_v41, %v1789_v41 }
 0x26d   : > { %v1830_v26 = vadd.f32 %v2130_v62, %v1829_v29  ;;  %v1898_v36 = vadd.f32 %v1897_v33, %v1867_v52 }
 0x26f   : > { %v1831_v22 = vadd.f32 %v2131_v37, %v1830_v26  ;;  %v1899_v50 = vadd.f32 %v1898_v36, %v1868_v0 }
 0x271   : > { %v1832_v13 = vrot.slane %v1831_v22, 4  ;;  %v1900_v1 = vadd.f32 %v1899_v50, %v1869_v6 }
 0x273   : > { %v1833_v60 = vadd.f32 %v1832_v13, %v1831_v22  ;;  %v1901_v39 = vrot.slane %v1900_v1, 4 }
 0x275   : > { %v1834_v57 = vrot.slane %v1833_v60, 2  ;;  %v1902_v38 = vadd.f32 %v1901_v39, %v1900_v1 }
 0x277   : > { %v1835_v34 = vadd.f32 %v1834_v57, %v1833_v60  ;;  %v1903_v58 = vrot.slane %v1902_v38, 2 }
 0x279   : > { %v1836_v48 = vrot.slane %v1835_v34, 1  ;;  %v1904_v42 = vadd.f32 %v1903_v58, %v1902_v38 }
 0x27b   : > { %v1905_v8 = vrot.slane %v1904_v42, 1  ;;  %v1837_v54 = vadd.f32 %v1836_v48, %v1835_v34 }
 0x27d   : > { %v1906_v56 = vadd.f32 %v1905_v8, %v1904_v42 }
 0x27f   : > { %v1909_v55 = vsel %vm1908_vm1, %v1837_v54, %v1906_v56 }
 0x280   : > { %v1910_v3 = vadd.f32 %v1909_v55, %v1907_v61 }
 0x282   : > { %1911 = vst [vmem:[%s3162_s6] sm:$0x3] %v1910_v3 }
 0x283 PF: > { %s12_s11 = sadd.s32 1, %s2216_s11   ;;  %s3183_s9 = smov %s2212_s10 }
 0x284   : > { %p9_p5 = scmp.ge.s32.totalorder %s12_s11, 4   ;;  %s3184_s10 = smov %s3186_s12 }
 0x286   :  { %11 = sbr.rel (!%p9_p5) target bundleno = 2 (0x2), region = 63 }

</bundles_post_ra>
